<compile_context>
chip_gen: v6e
topology: v6e:2x2x1
jax: 0.10.0
libtpu: 0.0.40
codegen_flags: <defaults>
</compile_context>

<pallas_src>
import functools

import jax
import jax.numpy as jnp
import numpy as np
from jax.experimental import pallas as pl
from jax.experimental.pallas import tpu as pltpu

EPS = 1e-5  # torch.nn.InstanceNorm3d default eps


# ------------------------------ fused Pallas kernel -------------------------------

def _silu(x):
    # x * sigmoid(x); the reciprocal goes to the EUP slot (approx) next to the exp
    # instead of a VPU divide/Newton sequence.
    return x * pl.reciprocal(1.0 + jnp.exp(-x), approx=True)


def _im2col(act, col_ref, mask_ref, offsets, s_len, c):
    """Write the 27 lane-shifted + boundary-masked copies of `act` into col_ref.

    act:      (C, S)      activation, channels-first, flattened spatial on lanes.
    col_ref:  (27*C, S)   VMEM scratch; row k*C + c_in holds tap k of channel c_in.
    mask_ref: (27, S)     1.0 where the shifted spatial index is in bounds, else 0.
    offsets:  static tuple of the 27 flat offsets kd*H*W + kh*W + kw.
    """
    for k, off in enumerate(offsets):
        if off == 0:
            shifted = act                                  # center tap: mask is all ones
        else:
            # shifted[s] = act[(s + off) % S]; circular-wrap / row-crossing taps are
            # zeroed by the mask, which is exactly the zero-padding of the conv.
            shifted = pltpu.roll(act, (-off) % s_len, axis=1) * mask_ref[k:k + 1, :]
        col_ref[k * c:(k + 1) * c, :] = shifted


def res_block_kernel(x_ref, in_g_ref, in_b_ref, w_in_ref,
                     gam_ref, bet_ref, w_out_ref, b_out_ref,
                     w_skip_ref, b_skip_ref, mask_ref,
                     o_ref, col_in_ref, col_out_ref,
                     *, offsets, s_len, cin, cout):
    del cout  # shapes are carried by the refs
    x = x_ref[0]                                                    # (Cin, S)

    # ---- skip_connection: 1x1 conv (Cin != Cout) ----
    skip = (jnp.dot(w_skip_ref[...], x, preferred_element_type=jnp.float32)
            + b_skip_ref[...])                                      # (Cout, S)

    # ---- in_layers[0:2]: InstanceNorm3d(affine=True) + SiLU (two-pass stats) ----
    mean = jnp.mean(x, axis=1, keepdims=True)
    xc = x - mean
    var = jnp.mean(xc * xc, axis=1, keepdims=True)
    a = xc * jax.lax.rsqrt(var + EPS) * in_g_ref[...] + in_b_ref[...]
    a = _silu(a)

    # ---- in_layers[2]: Conv3d(Cin->Cout, 3, pad=1): in-VMEM im2col + ONE matmul ----
    # (conv bias dropped: a per-channel constant cancels in the InstanceNorm below)
    _im2col(a, col_in_ref, mask_ref, offsets, s_len, cin)
    h = jnp.dot(w_in_ref[...], col_in_ref[...],
                preferred_element_type=jnp.float32)                 # (Cout, S)

    # ---- out_layers[0:2]: scale/shift norm (emb folded into gamma/beta) + SiLU ----
    mean_h = jnp.mean(h, axis=1, keepdims=True)
    hc = h - mean_h
    var_h = jnp.mean(hc * hc, axis=1, keepdims=True)
    y = hc * jax.lax.rsqrt(var_h + EPS) * gam_ref[0] + bet_ref[0]
    h2 = _silu(y)

    # ---- out_layers[2]: Conv3d(Cout->Cout, 3, pad=1) + bias, fused residual add ----
    _im2col(h2, col_out_ref, mask_ref, offsets, s_len, o_ref.shape[1])
    out = jnp.dot(w_out_ref[...], col_out_ref[...],
                  preferred_element_type=jnp.float32)               # (Cout, S)
    o_ref[0] = out + b_out_ref[...] + skip


# --------------------------------- host-side glue ---------------------------------

def _conv_taps_2d(w):
    """PyTorch Conv3d weight (Cout, Cin, 3, 3, 3) -> (Cout, 27*Cin).

    Column index = tap*Cin + cin with tap = (kd*3 + kh)*3 + kw, matching the row
    order produced by _im2col (tap-major, channel within tap).
    """
    cout, cin = w.shape[0], w.shape[1]
    return jnp.transpose(w, (0, 2, 3, 4, 1)).reshape(cout, 27 * cin)


def _shift_offsets_and_masks(D, H, W):
    """Flat lane offsets and validity masks for the 27 taps of a 3x3x3 / pad=1 conv."""
    d = np.arange(D)[:, None, None]
    h = np.arange(H)[None, :, None]
    w = np.arange(W)[None, None, :]
    offsets, masks = [], []
    for kd in (-1, 0, 1):
        for kh in (-1, 0, 1):
            for kw in (-1, 0, 1):
                offsets.append(kd * H * W + kh * W + kw)
                m = ((d + kd >= 0) & (d + kd < D) &
                     (h + kh >= 0) & (h + kh < H) &
                     (w + kw >= 0) & (w + kw < W))
                masks.append(m.reshape(-1))
    masks = np.stack(masks).astype(np.float32)          # (27, S), lane-dense
    return tuple(offsets), jnp.asarray(masks)


def res_conv_block_forward(params, x, label_time):
    """x: (N, Cin, D, H, W) f32 (NCDHW); label_time: (N, Temb). -> (N, Cout, D, H, W)."""
    N, Cin, D, H, W = x.shape
    S = D * H * W
    Cout = params["out_conv_b"].shape[0]

    # emb_layers: SiLU + Linear(Temb -> 2*Cout), then fold the scale/shift into the
    # out-norm affine (16 floats of work) so the kernel applies a single affine.
    emb = jax.nn.silu(label_time) @ params["emb_w"] + params["emb_b"]   # (N, 2*Cout)
    scale = emb[:, :Cout]                       # torch.chunk(emb, 2, dim=1): scale first
    shift = emb[:, Cout:]
    gamma_eff = (params["out_norm_gamma"][None] * (1.0 + scale)).reshape(N, Cout, 1)
    beta_eff = (params["out_norm_beta"][None] * (1.0 + scale) + shift).reshape(N, Cout, 1)

    offsets, masks = _shift_offsets_and_masks(D, H, W)

    col = lambda v: v.reshape(-1, 1)            # (C,) -> (C, 1) broadcast columns
    args = (
        x.reshape(N, Cin, S),
        col(params["in_norm_gamma"]), col(params["in_norm_beta"]),
        _conv_taps_2d(params["in_conv_w"]),                   # in-conv bias dropped
        gamma_eff, beta_eff,
        _conv_taps_2d(params["out_conv_w"]), col(params["out_conv_b"]),
        params["skip_w"].reshape(Cout, Cin), col(params["skip_b"]),
        masks,
    )

    def const(*shape):
        return pl.BlockSpec(shape, lambda n, _s=len(shape): (0,) * _s)

    in_specs = [
        pl.BlockSpec((1, Cin, S), lambda n: (n, 0, 0)),        # x
        const(Cin, 1), const(Cin, 1),                          # in-norm gamma/beta
        const(Cout, 27 * Cin),                                 # in-conv taps, 2D repacked
        pl.BlockSpec((1, Cout, 1), lambda n: (n, 0, 0)),       # gamma_eff (per batch)
        pl.BlockSpec((1, Cout, 1), lambda n: (n, 0, 0)),       # beta_eff  (per batch)
        const(Cout, 27 * Cout), const(Cout, 1),                # out-conv taps / bias
        const(Cout, Cin), const(Cout, 1),                      # skip 1x1 conv
        const(27, S),                                          # conv boundary masks
    ]

    out = pl.pallas_call(
        functools.partial(res_block_kernel, offsets=offsets, s_len=S,
                          cin=Cin, cout=Cout),
        out_shape=jax.ShapeDtypeStruct((N, Cout, S), jnp.float32),
        grid=(N,),
        in_specs=in_specs,
        out_specs=pl.BlockSpec((1, Cout, S), lambda n: (n, 0, 0)),
        scratch_shapes=[pltpu.VMEM((27 * Cin, S), jnp.float32),    # im2col, in-conv
                        pltpu.VMEM((27 * Cout, S), jnp.float32)],  # im2col, out-conv
        compiler_params=pltpu.CompilerParams(
            dimension_semantics=("parallel",)),   # batch -> v7x's 2 TCs; loop on v5e/v6e
    )(*args)
    return out.reshape(N, Cout, D, H, W)


# ----------------------------- pure-JAX reference ---------------------------------

def res_conv_block_reference(params, x, label_time):
    """Straightforward XLA implementation of the same forward pass (for checking)."""
    Cout = params["out_conv_b"].shape[0]
    bc = lambda v: v.reshape(1, -1, 1, 1, 1)

    def inorm(v, g, b):
        m = jnp.mean(v, axis=(2, 3, 4), keepdims=True)
        var = jnp.var(v, axis=(2, 3, 4), keepdims=True)
        return (v - m) * jax.lax.rsqrt(var + EPS) * bc(g) + bc(b)

    def conv(v, w, b, pad):
        out = jax.lax.conv_general_dilated(
            v, w, window_strides=(1, 1, 1), padding=[(pad, pad)] * 3,
            dimension_numbers=("NCDHW", "OIDHW", "NCDHW"),
            precision=jax.lax.Precision.HIGHEST)
        return out + bc(b)

    a = jax.nn.silu(inorm(x, params["in_norm_gamma"], params["in_norm_beta"]))
    h = conv(a, params["in_conv_w"], params["in_conv_b"], pad=1)
    emb = jax.nn.silu(label_time) @ params["emb_w"] + params["emb_b"]
    scale = emb[:, :Cout].reshape(-1, Cout, 1, 1, 1)
    shift = emb[:, Cout:].reshape(-1, Cout, 1, 1, 1)
    hn = inorm(h, params["out_norm_gamma"], params["out_norm_beta"])
    h2 = jax.nn.silu(hn * (1.0 + scale) + shift)
    h3 = conv(h2, params["out_conv_w"], params["out_conv_b"], pad=1)
    skip = conv(x, params["skip_w"], params["skip_b"], pad=0)
    return skip + h3


# ------------------------------------ params ---------------------------------------

def init_params(key, Cin, Cout, Temb):
    ks = jax.random.split(key, 12)
    nrm = lambda k, shape, scale=1.0: scale * jax.random.normal(k, shape, jnp.float32)
    return {
        "in_norm_gamma": 1.0 + 0.1 * nrm(ks[0], (Cin,)),
        "in_norm_beta": 0.1 * nrm(ks[1], (Cin,)),
        "in_conv_w": nrm(ks[2], (Cout, Cin, 3, 3, 3), (Cin * 27) ** -0.5),
        "in_conv_b": 0.1 * nrm(ks[3], (Cout,)),
        # emb Linear stored as (in, out); PyTorch stores (out, in) -- same math.
        "emb_w": nrm(ks[4], (Temb, 2 * Cout), Temb ** -0.5),
        "emb_b": 0.1 * nrm(ks[5], (2 * Cout,)),
        "out_norm_gamma": 1.0 + 0.1 * nrm(ks[6], (Cout,)),
        "out_norm_beta": 0.1 * nrm(ks[7], (Cout,)),
        "out_conv_w": nrm(ks[8], (Cout, Cout, 3, 3, 3), (Cout * 27) ** -0.5),  # zero_conv=False
        "out_conv_b": 0.1 * nrm(ks[9], (Cout,)),
        "skip_w": nrm(ks[10], (Cout, Cin, 1, 1, 1), Cin ** -0.5),
        "skip_b": 0.1 * nrm(ks[11], (Cout,)),
    }


if __name__ == "__main__":
    key = jax.random.PRNGKey(0)
    k_x, k_t, k_p = jax.random.split(key, 3)

    N, Cin, Cout, D, H, W, Temb = 2, 4, 8, 8, 8, 8, 16
    x = jax.random.normal(k_x, (N, Cin, D, H, W), jnp.float32)
    label_time = jax.random.normal(k_t, (N, Temb), jnp.float32)
    params = init_params(k_p, Cin, Cout, Temb)

    out = jax.block_until_ready(jax.jit(res_conv_block_forward)(params, x, label_time))

    assert out.shape == (N, Cout, D, H, W), out.shape
    assert bool(jnp.isfinite(out).all())

    # Correctness check against a pure-JAX reference.  All math is f32; the only
    # approximation is the EUP approx-reciprocal inside SiLU, which dominates the
    # (still small) error budget -- hence the 2e-2 tolerance.
    ref = jax.block_until_ready(jax.jit(res_conv_block_reference)(params, x, label_time))
    max_err = float(jnp.max(jnp.abs(out - ref)))
    assert max_err < 2e-2, f"mismatch vs pure-JAX reference: max abs err = {max_err}"

    print("KERNEL_OK")
</pallas_src>

<mosaic_0001>
module attributes {stable_mosaic.version = 11 : i64} {
  func.func @res_block_kernel(%arg0: i32, %arg1: memref<1x4x512xf32, #tpu.memory_space<vmem>>, %arg2: memref<4x1xf32, #tpu.memory_space<vmem>>, %arg3: memref<4x1xf32, #tpu.memory_space<vmem>>, %arg4: memref<8x108xf32, #tpu.memory_space<vmem>>, %arg5: memref<1x8x1xf32, #tpu.memory_space<vmem>>, %arg6: memref<1x8x1xf32, #tpu.memory_space<vmem>>, %arg7: memref<8x216xf32, #tpu.memory_space<vmem>>, %arg8: memref<8x1xf32, #tpu.memory_space<vmem>>, %arg9: memref<8x4xf32, #tpu.memory_space<vmem>>, %arg10: memref<8x1xf32, #tpu.memory_space<vmem>>, %arg11: memref<27x512xf32, #tpu.memory_space<vmem>>, %arg12: memref<1x8x512xf32, #tpu.memory_space<vmem>>, %arg13: memref<108x512xf32, #tpu.memory_space<vmem>>, %arg14: memref<216x512xf32, #tpu.memory_space<vmem>>) attributes {dimension_semantics = [#tpu.dimension_semantics<parallel>], iteration_bounds = array<i64: 2>, scalar_prefetch = 0 : i64, scratch_operands = 2 : i64, tpu.core_type = #tpu.core_type<tc>, window_params = [{transform_indices = @transform_0, window_bounds = array<i64: 1, 4, 512>}, {pipeline_mode = #tpu.pipeline_mode<synchronous>, transform_indices = @transform_1, window_bounds = array<i64: 4, 1>}, {pipeline_mode = #tpu.pipeline_mode<synchronous>, transform_indices = @transform_2, window_bounds = array<i64: 4, 1>}, {pipeline_mode = #tpu.pipeline_mode<synchronous>, transform_indices = @transform_3, window_bounds = array<i64: 8, 108>}, {transform_indices = @transform_4, window_bounds = array<i64: 1, 8, 1>}, {transform_indices = @transform_5, window_bounds = array<i64: 1, 8, 1>}, {pipeline_mode = #tpu.pipeline_mode<synchronous>, transform_indices = @transform_6, window_bounds = array<i64: 8, 216>}, {pipeline_mode = #tpu.pipeline_mode<synchronous>, transform_indices = @transform_7, window_bounds = array<i64: 8, 1>}, {pipeline_mode = #tpu.pipeline_mode<synchronous>, transform_indices = @transform_8, window_bounds = array<i64: 8, 4>}, {pipeline_mode = #tpu.pipeline_mode<synchronous>, transform_indices = @transform_9, window_bounds = array<i64: 8, 1>}, {pipeline_mode = #tpu.pipeline_mode<synchronous>, transform_indices = @transform_10, window_bounds = array<i64: 27, 512>}, {transform_indices = @transform_11, window_bounds = array<i64: 1, 8, 512>}]} {
    %c0 = arith.constant 0 : index
    %c0_0 = arith.constant 0 : index
    %c0_1 = arith.constant 0 : index
    %0 = vector.load %arg1[%c0, %c0_0, %c0_1] : memref<1x4x512xf32, #tpu.memory_space<vmem>>, vector<1x4x512xf32>
    %1 = vector.shape_cast %0 : vector<1x4x512xf32> to vector<4x512xf32>
    %c0_2 = arith.constant 0 : index
    %c0_3 = arith.constant 0 : index
    %2 = vector.load %arg9[%c0_2, %c0_3] : memref<8x4xf32, #tpu.memory_space<vmem>>, vector<8x4xf32>
    %cst = arith.constant dense<0.000000e+00> : vector<8x512xf32>
    %3 = tpu.matmul %2, %1, %cst {dimension_numbers = #tpu.dot_dimension_numbers<[1], [0], [0], [1], [0, 0, 1, 1], [], []>} : vector<8x4xf32>, vector<4x512xf32>, vector<8x512xf32> -> vector<8x512xf32>
    %c0_4 = arith.constant 0 : index
    %c0_5 = arith.constant 0 : index
    %4 = vector.load %arg10[%c0_4, %c0_5] : memref<8x1xf32, #tpu.memory_space<vmem>>, vector<8x1xf32>
    %5 = vector.broadcast %4 : vector<8x1xf32> to vector<8x512xf32>
    %6 = arith.addf %3, %5 : vector<8x512xf32>
    %cst_6 = arith.constant dense<0.000000e+00> : vector<4xf32>
    %7 = vector.multi_reduction <add>, %1, %cst_6 [1] : vector<4x512xf32> to vector<4xf32>
    %8 = vector.shape_cast %7 : vector<4xf32> to vector<4x1xf32>
    %cst_7 = arith.constant 5.120000e+02 : f32
    %9 = vector.broadcast %cst_7 : f32 to vector<4x1xf32>
    %10 = arith.divf %8, %9 : vector<4x1xf32>
    %11 = vector.broadcast %10 : vector<4x1xf32> to vector<4x512xf32>
    %12 = arith.subf %1, %11 : vector<4x512xf32>
    %13 = arith.mulf %12, %12 : vector<4x512xf32>
    %cst_8 = arith.constant dense<0.000000e+00> : vector<4xf32>
    %14 = vector.multi_reduction <add>, %13, %cst_8 [1] : vector<4x512xf32> to vector<4xf32>
    %15 = vector.shape_cast %14 : vector<4xf32> to vector<4x1xf32>
    %cst_9 = arith.constant 5.120000e+02 : f32
    %16 = vector.broadcast %cst_9 : f32 to vector<4x1xf32>
    %17 = arith.divf %15, %16 : vector<4x1xf32>
    %cst_10 = arith.constant 9.99999974E-6 : f32
    %18 = vector.broadcast %cst_10 : f32 to vector<4x1xf32>
    %19 = arith.addf %17, %18 : vector<4x1xf32>
    %20 = math.rsqrt %19 : vector<4x1xf32>
    %21 = vector.broadcast %20 : vector<4x1xf32> to vector<4x512xf32>
    %22 = arith.mulf %12, %21 : vector<4x512xf32>
    %c0_11 = arith.constant 0 : index
    %c0_12 = arith.constant 0 : index
    %23 = vector.load %arg2[%c0_11, %c0_12] : memref<4x1xf32, #tpu.memory_space<vmem>>, vector<4x1xf32>
    %24 = vector.broadcast %23 : vector<4x1xf32> to vector<4x512xf32>
    %25 = arith.mulf %22, %24 : vector<4x512xf32>
    %c0_13 = arith.constant 0 : index
    %c0_14 = arith.constant 0 : index
    %26 = vector.load %arg3[%c0_13, %c0_14] : memref<4x1xf32, #tpu.memory_space<vmem>>, vector<4x1xf32>
    %27 = vector.broadcast %26 : vector<4x1xf32> to vector<4x512xf32>
    %28 = arith.addf %25, %27 : vector<4x512xf32>
    %cst_15 = arith.constant 0.000000e+00 : f32
    %29 = vector.broadcast %cst_15 : f32 to vector<4x512xf32>
    %30 = arith.subf %29, %28 : vector<4x512xf32>
    %31 = math.exp %30 : vector<4x512xf32>
    %cst_16 = arith.constant 1.000000e+00 : f32
    %32 = vector.broadcast %cst_16 : f32 to vector<4x512xf32>
    %33 = arith.addf %32, %31 : vector<4x512xf32>
    %34 = tpu.reciprocal %33 {approx = true} : vector<4x512xf32> -> vector<4x512xf32>
    %35 = arith.mulf %28, %34 : vector<4x512xf32>
    %c73_i32 = arith.constant 73 : i32
    %36 = tpu.dynamic_rotate %35 by %c73_i32 dim 1 : vector<4x512xf32>, i32 -> vector<4x512xf32>
    %c0_17 = arith.constant 0 : index
    %c0_18 = arith.constant 0 : index
    %37 = vector.load %arg11[%c0_17, %c0_18] : memref<27x512xf32, #tpu.memory_space<vmem>>, vector<1x512xf32>
    %38 = vector.broadcast %37 : vector<1x512xf32> to vector<4x512xf32>
    %39 = arith.mulf %36, %38 : vector<4x512xf32>
    %c0_19 = arith.constant 0 : index
    %c0_20 = arith.constant 0 : index
    %40 = vector.load %arg13[%c0_19, %c0_20] : memref<108x512xf32, #tpu.memory_space<vmem>>, vector<4x512xf32>
    tpu.vector_store %arg13[%c0_19, %c0_20], %39 {strides = array<i32>} : memref<108x512xf32, #tpu.memory_space<vmem>>, vector<4x512xf32>,
    %c72_i32 = arith.constant 72 : i32
    %41 = tpu.dynamic_rotate %35 by %c72_i32 dim 1 : vector<4x512xf32>, i32 -> vector<4x512xf32>
    %c1 = arith.constant 1 : index
    %c0_21 = arith.constant 0 : index
    %42 = vector.load %arg11[%c1, %c0_21] : memref<27x512xf32, #tpu.memory_space<vmem>>, vector<1x512xf32>
    %43 = vector.broadcast %42 : vector<1x512xf32> to vector<4x512xf32>
    %44 = arith.mulf %41, %43 : vector<4x512xf32>
    %c4 = arith.constant 4 : index
    %c0_22 = arith.constant 0 : index
    %45 = vector.load %arg13[%c4, %c0_22] : memref<108x512xf32, #tpu.memory_space<vmem>>, vector<4x512xf32>
    tpu.vector_store %arg13[%c4, %c0_22], %44 {strides = array<i32>} : memref<108x512xf32, #tpu.memory_space<vmem>>, vector<4x512xf32>,
    %c71_i32 = arith.constant 71 : i32
    %46 = tpu.dynamic_rotate %35 by %c71_i32 dim 1 : vector<4x512xf32>, i32 -> vector<4x512xf32>
    %c2 = arith.constant 2 : index
    %c0_23 = arith.constant 0 : index
    %47 = vector.load %arg11[%c2, %c0_23] : memref<27x512xf32, #tpu.memory_space<vmem>>, vector<1x512xf32>
    %48 = vector.broadcast %47 : vector<1x512xf32> to vector<4x512xf32>
    %49 = arith.mulf %46, %48 : vector<4x512xf32>
    %c8 = arith.constant 8 : index
    %c0_24 = arith.constant 0 : index
    %50 = vector.load %arg13[%c8, %c0_24] : memref<108x512xf32, #tpu.memory_space<vmem>>, vector<4x512xf32>
    tpu.vector_store %arg13[%c8, %c0_24], %49 {strides = array<i32>} : memref<108x512xf32, #tpu.memory_space<vmem>>, vector<4x512xf32>,
    %c65_i32 = arith.constant 65 : i32
    %51 = tpu.dynamic_rotate %35 by %c65_i32 dim 1 : vector<4x512xf32>, i32 -> vector<4x512xf32>
    %c3 = arith.constant 3 : index
    %c0_25 = arith.constant 0 : index
    %52 = vector.load %arg11[%c3, %c0_25] : memref<27x512xf32, #tpu.memory_space<vmem>>, vector<1x512xf32>
    %53 = vector.broadcast %52 : vector<1x512xf32> to vector<4x512xf32>
    %54 = arith.mulf %51, %53 : vector<4x512xf32>
    %c12 = arith.constant 12 : index
    %c0_26 = arith.constant 0 : index
    %55 = vector.load %arg13[%c12, %c0_26] : memref<108x512xf32, #tpu.memory_space<vmem>>, vector<4x512xf32>
    tpu.vector_store %arg13[%c12, %c0_26], %54 {strides = array<i32>} : memref<108x512xf32, #tpu.memory_space<vmem>>, vector<4x512xf32>,
    %c64_i32 = arith.constant 64 : i32
    %56 = tpu.dynamic_rotate %35 by %c64_i32 dim 1 : vector<4x512xf32>, i32 -> vector<4x512xf32>
    %c4_27 = arith.constant 4 : index
    %c0_28 = arith.constant 0 : index
    %57 = vector.load %arg11[%c4_27, %c0_28] : memref<27x512xf32, #tpu.memory_space<vmem>>, vector<1x512xf32>
    %58 = vector.broadcast %57 : vector<1x512xf32> to vector<4x512xf32>
    %59 = arith.mulf %56, %58 : vector<4x512xf32>
    %c16 = arith.constant 16 : index
    %c0_29 = arith.constant 0 : index
    %60 = vector.load %arg13[%c16, %c0_29] : memref<108x512xf32, #tpu.memory_space<vmem>>, vector<4x512xf32>
    tpu.vector_store %arg13[%c16, %c0_29], %59 {strides = array<i32>} : memref<108x512xf32, #tpu.memory_space<vmem>>, vector<4x512xf32>,
    %c63_i32 = arith.constant 63 : i32
    %61 = tpu.dynamic_rotate %35 by %c63_i32 dim 1 : vector<4x512xf32>, i32 -> vector<4x512xf32>
    %c5 = arith.constant 5 : index
    %c0_30 = arith.constant 0 : index
    %62 = vector.load %arg11[%c5, %c0_30] : memref<27x512xf32, #tpu.memory_space<vmem>>, vector<1x512xf32>
    %63 = vector.broadcast %62 : vector<1x512xf32> to vector<4x512xf32>
    %64 = arith.mulf %61, %63 : vector<4x512xf32>
    %c20 = arith.constant 20 : index
    %c0_31 = arith.constant 0 : index
    %65 = vector.load %arg13[%c20, %c0_31] : memref<108x512xf32, #tpu.memory_space<vmem>>, vector<4x512xf32>
    tpu.vector_store %arg13[%c20, %c0_31], %64 {strides = array<i32>} : memref<108x512xf32, #tpu.memory_space<vmem>>, vector<4x512xf32>,
    %c57_i32 = arith.constant 57 : i32
    %66 = tpu.dynamic_rotate %35 by %c57_i32 dim 1 : vector<4x512xf32>, i32 -> vector<4x512xf32>
    %c6 = arith.constant 6 : index
    %c0_32 = arith.constant 0 : index
    %67 = vector.load %arg11[%c6, %c0_32] : memref<27x512xf32, #tpu.memory_space<vmem>>, vector<1x512xf32>
    %68 = vector.broadcast %67 : vector<1x512xf32> to vector<4x512xf32>
    %69 = arith.mulf %66, %68 : vector<4x512xf32>
    %c24 = arith.constant 24 : index
    %c0_33 = arith.constant 0 : index
    %70 = vector.load %arg13[%c24, %c0_33] : memref<108x512xf32, #tpu.memory_space<vmem>>, vector<4x512xf32>
    tpu.vector_store %arg13[%c24, %c0_33], %69 {strides = array<i32>} : memref<108x512xf32, #tpu.memory_space<vmem>>, vector<4x512xf32>,
    %c56_i32 = arith.constant 56 : i32
    %71 = tpu.dynamic_rotate %35 by %c56_i32 dim 1 : vector<4x512xf32>, i32 -> vector<4x512xf32>
    %c7 = arith.constant 7 : index
    %c0_34 = arith.constant 0 : index
    %72 = vector.load %arg11[%c7, %c0_34] : memref<27x512xf32, #tpu.memory_space<vmem>>, vector<1x512xf32>
    %73 = vector.broadcast %72 : vector<1x512xf32> to vector<4x512xf32>
    %74 = arith.mulf %71, %73 : vector<4x512xf32>
    %c28 = arith.constant 28 : index
    %c0_35 = arith.constant 0 : index
    %75 = vector.load %arg13[%c28, %c0_35] : memref<108x512xf32, #tpu.memory_space<vmem>>, vector<4x512xf32>
    tpu.vector_store %arg13[%c28, %c0_35], %74 {strides = array<i32>} : memref<108x512xf32, #tpu.memory_space<vmem>>, vector<4x512xf32>,
    %c55_i32 = arith.constant 55 : i32
    %76 = tpu.dynamic_rotate %35 by %c55_i32 dim 1 : vector<4x512xf32>, i32 -> vector<4x512xf32>
    %c8_36 = arith.constant 8 : index
    %c0_37 = arith.constant 0 : index
    %77 = vector.load %arg11[%c8_36, %c0_37] : memref<27x512xf32, #tpu.memory_space<vmem>>, vector<1x512xf32>
    %78 = vector.broadcast %77 : vector<1x512xf32> to vector<4x512xf32>
    %79 = arith.mulf %76, %78 : vector<4x512xf32>
    %c32 = arith.constant 32 : index
    %c0_38 = arith.constant 0 : index
    %80 = vector.load %arg13[%c32, %c0_38] : memref<108x512xf32, #tpu.memory_space<vmem>>, vector<4x512xf32>
    tpu.vector_store %arg13[%c32, %c0_38], %79 {strides = array<i32>} : memref<108x512xf32, #tpu.memory_space<vmem>>, vector<4x512xf32>,
    %c9_i32 = arith.constant 9 : i32
    %81 = tpu.dynamic_rotate %35 by %c9_i32 dim 1 : vector<4x512xf32>, i32 -> vector<4x512xf32>
    %c9 = arith.constant 9 : index
    %c0_39 = arith.constant 0 : index
    %82 = vector.load %arg11[%c9, %c0_39] : memref<27x512xf32, #tpu.memory_space<vmem>>, vector<1x512xf32>
    %83 = vector.broadcast %82 : vector<1x512xf32> to vector<4x512xf32>
    %84 = arith.mulf %81, %83 : vector<4x512xf32>
    %c36 = arith.constant 36 : index
    %c0_40 = arith.constant 0 : index
    %85 = vector.load %arg13[%c36, %c0_40] : memref<108x512xf32, #tpu.memory_space<vmem>>, vector<4x512xf32>
    tpu.vector_store %arg13[%c36, %c0_40], %84 {strides = array<i32>} : memref<108x512xf32, #tpu.memory_space<vmem>>, vector<4x512xf32>,
    %c8_i32 = arith.constant 8 : i32
    %86 = tpu.dynamic_rotate %35 by %c8_i32 dim 1 : vector<4x512xf32>, i32 -> vector<4x512xf32>
    %c10 = arith.constant 10 : index
    %c0_41 = arith.constant 0 : index
    %87 = vector.load %arg11[%c10, %c0_41] : memref<27x512xf32, #tpu.memory_space<vmem>>, vector<1x512xf32>
    %88 = vector.broadcast %87 : vector<1x512xf32> to vector<4x512xf32>
    %89 = arith.mulf %86, %88 : vector<4x512xf32>
    %c40 = arith.constant 40 : index
    %c0_42 = arith.constant 0 : index
    %90 = vector.load %arg13[%c40, %c0_42] : memref<108x512xf32, #tpu.memory_space<vmem>>, vector<4x512xf32>
    tpu.vector_store %arg13[%c40, %c0_42], %89 {strides = array<i32>} : memref<108x512xf32, #tpu.memory_space<vmem>>, vector<4x512xf32>,
    %c7_i32 = arith.constant 7 : i32
    %91 = tpu.dynamic_rotate %35 by %c7_i32 dim 1 : vector<4x512xf32>, i32 -> vector<4x512xf32>
    %c11 = arith.constant 11 : index
    %c0_43 = arith.constant 0 : index
    %92 = vector.load %arg11[%c11, %c0_43] : memref<27x512xf32, #tpu.memory_space<vmem>>, vector<1x512xf32>
    %93 = vector.broadcast %92 : vector<1x512xf32> to vector<4x512xf32>
    %94 = arith.mulf %91, %93 : vector<4x512xf32>
    %c44 = arith.constant 44 : index
    %c0_44 = arith.constant 0 : index
    %95 = vector.load %arg13[%c44, %c0_44] : memref<108x512xf32, #tpu.memory_space<vmem>>, vector<4x512xf32>
    tpu.vector_store %arg13[%c44, %c0_44], %94 {strides = array<i32>} : memref<108x512xf32, #tpu.memory_space<vmem>>, vector<4x512xf32>,
    %c1_i32 = arith.constant 1 : i32
    %96 = tpu.dynamic_rotate %35 by %c1_i32 dim 1 : vector<4x512xf32>, i32 -> vector<4x512xf32>
    %c12_45 = arith.constant 12 : index
    %c0_46 = arith.constant 0 : index
    %97 = vector.load %arg11[%c12_45, %c0_46] : memref<27x512xf32, #tpu.memory_space<vmem>>, vector<1x512xf32>
    %98 = vector.broadcast %97 : vector<1x512xf32> to vector<4x512xf32>
    %99 = arith.mulf %96, %98 : vector<4x512xf32>
    %c48 = arith.constant 48 : index
    %c0_47 = arith.constant 0 : index
    %100 = vector.load %arg13[%c48, %c0_47] : memref<108x512xf32, #tpu.memory_space<vmem>>, vector<4x512xf32>
    tpu.vector_store %arg13[%c48, %c0_47], %99 {strides = array<i32>} : memref<108x512xf32, #tpu.memory_space<vmem>>, vector<4x512xf32>,
    %c52 = arith.constant 52 : index
    %c0_48 = arith.constant 0 : index
    %101 = vector.load %arg13[%c52, %c0_48] : memref<108x512xf32, #tpu.memory_space<vmem>>, vector<4x512xf32>
    tpu.vector_store %arg13[%c52, %c0_48], %35 {strides = array<i32>} : memref<108x512xf32, #tpu.memory_space<vmem>>, vector<4x512xf32>,
    %c511_i32 = arith.constant 511 : i32
    %102 = tpu.dynamic_rotate %35 by %c511_i32 dim 1 : vector<4x512xf32>, i32 -> vector<4x512xf32>
    %c14 = arith.constant 14 : index
    %c0_49 = arith.constant 0 : index
    %103 = vector.load %arg11[%c14, %c0_49] : memref<27x512xf32, #tpu.memory_space<vmem>>, vector<1x512xf32>
    %104 = vector.broadcast %103 : vector<1x512xf32> to vector<4x512xf32>
    %105 = arith.mulf %102, %104 : vector<4x512xf32>
    %c56 = arith.constant 56 : index
    %c0_50 = arith.constant 0 : index
    %106 = vector.load %arg13[%c56, %c0_50] : memref<108x512xf32, #tpu.memory_space<vmem>>, vector<4x512xf32>
    tpu.vector_store %arg13[%c56, %c0_50], %105 {strides = array<i32>} : memref<108x512xf32, #tpu.memory_space<vmem>>, vector<4x512xf32>,
    %c505_i32 = arith.constant 505 : i32
    %107 = tpu.dynamic_rotate %35 by %c505_i32 dim 1 : vector<4x512xf32>, i32 -> vector<4x512xf32>
    %c15 = arith.constant 15 : index
    %c0_51 = arith.constant 0 : index
    %108 = vector.load %arg11[%c15, %c0_51] : memref<27x512xf32, #tpu.memory_space<vmem>>, vector<1x512xf32>
    %109 = vector.broadcast %108 : vector<1x512xf32> to vector<4x512xf32>
    %110 = arith.mulf %107, %109 : vector<4x512xf32>
    %c60 = arith.constant 60 : index
    %c0_52 = arith.constant 0 : index
    %111 = vector.load %arg13[%c60, %c0_52] : memref<108x512xf32, #tpu.memory_space<vmem>>, vector<4x512xf32>
    tpu.vector_store %arg13[%c60, %c0_52], %110 {strides = array<i32>} : memref<108x512xf32, #tpu.memory_space<vmem>>, vector<4x512xf32>,
    %c504_i32 = arith.constant 504 : i32
    %112 = tpu.dynamic_rotate %35 by %c504_i32 dim 1 : vector<4x512xf32>, i32 -> vector<4x512xf32>
    %c16_53 = arith.constant 16 : index
    %c0_54 = arith.constant 0 : index
    %113 = vector.load %arg11[%c16_53, %c0_54] : memref<27x512xf32, #tpu.memory_space<vmem>>, vector<1x512xf32>
    %114 = vector.broadcast %113 : vector<1x512xf32> to vector<4x512xf32>
    %115 = arith.mulf %112, %114 : vector<4x512xf32>
    %c64 = arith.constant 64 : index
    %c0_55 = arith.constant 0 : index
    %116 = vector.load %arg13[%c64, %c0_55] : memref<108x512xf32, #tpu.memory_space<vmem>>, vector<4x512xf32>
    tpu.vector_store %arg13[%c64, %c0_55], %115 {strides = array<i32>} : memref<108x512xf32, #tpu.memory_space<vmem>>, vector<4x512xf32>,
    %c503_i32 = arith.constant 503 : i32
    %117 = tpu.dynamic_rotate %35 by %c503_i32 dim 1 : vector<4x512xf32>, i32 -> vector<4x512xf32>
    %c17 = arith.constant 17 : index
    %c0_56 = arith.constant 0 : index
    %118 = vector.load %arg11[%c17, %c0_56] : memref<27x512xf32, #tpu.memory_space<vmem>>, vector<1x512xf32>
    %119 = vector.broadcast %118 : vector<1x512xf32> to vector<4x512xf32>
    %120 = arith.mulf %117, %119 : vector<4x512xf32>
    %c68 = arith.constant 68 : index
    %c0_57 = arith.constant 0 : index
    %121 = vector.load %arg13[%c68, %c0_57] : memref<108x512xf32, #tpu.memory_space<vmem>>, vector<4x512xf32>
    tpu.vector_store %arg13[%c68, %c0_57], %120 {strides = array<i32>} : memref<108x512xf32, #tpu.memory_space<vmem>>, vector<4x512xf32>,
    %c457_i32 = arith.constant 457 : i32
    %122 = tpu.dynamic_rotate %35 by %c457_i32 dim 1 : vector<4x512xf32>, i32 -> vector<4x512xf32>
    %c18 = arith.constant 18 : index
    %c0_58 = arith.constant 0 : index
    %123 = vector.load %arg11[%c18, %c0_58] : memref<27x512xf32, #tpu.memory_space<vmem>>, vector<1x512xf32>
    %124 = vector.broadcast %123 : vector<1x512xf32> to vector<4x512xf32>
    %125 = arith.mulf %122, %124 : vector<4x512xf32>
    %c72 = arith.constant 72 : index
    %c0_59 = arith.constant 0 : index
    %126 = vector.load %arg13[%c72, %c0_59] : memref<108x512xf32, #tpu.memory_space<vmem>>, vector<4x512xf32>
    tpu.vector_store %arg13[%c72, %c0_59], %125 {strides = array<i32>} : memref<108x512xf32, #tpu.memory_space<vmem>>, vector<4x512xf32>,
    %c456_i32 = arith.constant 456 : i32
    %127 = tpu.dynamic_rotate %35 by %c456_i32 dim 1 : vector<4x512xf32>, i32 -> vector<4x512xf32>
    %c19 = arith.constant 19 : index
    %c0_60 = arith.constant 0 : index
    %128 = vector.load %arg11[%c19, %c0_60] : memref<27x512xf32, #tpu.memory_space<vmem>>, vector<1x512xf32>
    %129 = vector.broadcast %128 : vector<1x512xf32> to vector<4x512xf32>
    %130 = arith.mulf %127, %129 : vector<4x512xf32>
    %c76 = arith.constant 76 : index
    %c0_61 = arith.constant 0 : index
    %131 = vector.load %arg13[%c76, %c0_61] : memref<108x512xf32, #tpu.memory_space<vmem>>, vector<4x512xf32>
    tpu.vector_store %arg13[%c76, %c0_61], %130 {strides = array<i32>} : memref<108x512xf32, #tpu.memory_space<vmem>>, vector<4x512xf32>,
    %c455_i32 = arith.constant 455 : i32
    %132 = tpu.dynamic_rotate %35 by %c455_i32 dim 1 : vector<4x512xf32>, i32 -> vector<4x512xf32>
    %c20_62 = arith.constant 20 : index
    %c0_63 = arith.constant 0 : index
    %133 = vector.load %arg11[%c20_62, %c0_63] : memref<27x512xf32, #tpu.memory_space<vmem>>, vector<1x512xf32>
    %134 = vector.broadcast %133 : vector<1x512xf32> to vector<4x512xf32>
    %135 = arith.mulf %132, %134 : vector<4x512xf32>
    %c80 = arith.constant 80 : index
    %c0_64 = arith.constant 0 : index
    %136 = vector.load %arg13[%c80, %c0_64] : memref<108x512xf32, #tpu.memory_space<vmem>>, vector<4x512xf32>
    tpu.vector_store %arg13[%c80, %c0_64], %135 {strides = array<i32>} : memref<108x512xf32, #tpu.memory_space<vmem>>, vector<4x512xf32>,
    %c449_i32 = arith.constant 449 : i32
    %137 = tpu.dynamic_rotate %35 by %c449_i32 dim 1 : vector<4x512xf32>, i32 -> vector<4x512xf32>
    %c21 = arith.constant 21 : index
    %c0_65 = arith.constant 0 : index
    %138 = vector.load %arg11[%c21, %c0_65] : memref<27x512xf32, #tpu.memory_space<vmem>>, vector<1x512xf32>
    %139 = vector.broadcast %138 : vector<1x512xf32> to vector<4x512xf32>
    %140 = arith.mulf %137, %139 : vector<4x512xf32>
    %c84 = arith.constant 84 : index
    %c0_66 = arith.constant 0 : index
    %141 = vector.load %arg13[%c84, %c0_66] : memref<108x512xf32, #tpu.memory_space<vmem>>, vector<4x512xf32>
    tpu.vector_store %arg13[%c84, %c0_66], %140 {strides = array<i32>} : memref<108x512xf32, #tpu.memory_space<vmem>>, vector<4x512xf32>,
    %c448_i32 = arith.constant 448 : i32
    %142 = tpu.dynamic_rotate %35 by %c448_i32 dim 1 : vector<4x512xf32>, i32 -> vector<4x512xf32>
    %c22 = arith.constant 22 : index
    %c0_67 = arith.constant 0 : index
    %143 = vector.load %arg11[%c22, %c0_67] : memref<27x512xf32, #tpu.memory_space<vmem>>, vector<1x512xf32>
    %144 = vector.broadcast %143 : vector<1x512xf32> to vector<4x512xf32>
    %145 = arith.mulf %142, %144 : vector<4x512xf32>
    %c88 = arith.constant 88 : index
    %c0_68 = arith.constant 0 : index
    %146 = vector.load %arg13[%c88, %c0_68] : memref<108x512xf32, #tpu.memory_space<vmem>>, vector<4x512xf32>
    tpu.vector_store %arg13[%c88, %c0_68], %145 {strides = array<i32>} : memref<108x512xf32, #tpu.memory_space<vmem>>, vector<4x512xf32>,
    %c447_i32 = arith.constant 447 : i32
    %147 = tpu.dynamic_rotate %35 by %c447_i32 dim 1 : vector<4x512xf32>, i32 -> vector<4x512xf32>
    %c23 = arith.constant 23 : index
    %c0_69 = arith.constant 0 : index
    %148 = vector.load %arg11[%c23, %c0_69] : memref<27x512xf32, #tpu.memory_space<vmem>>, vector<1x512xf32>
    %149 = vector.broadcast %148 : vector<1x512xf32> to vector<4x512xf32>
    %150 = arith.mulf %147, %149 : vector<4x512xf32>
    %c92 = arith.constant 92 : index
    %c0_70 = arith.constant 0 : index
    %151 = vector.load %arg13[%c92, %c0_70] : memref<108x512xf32, #tpu.memory_space<vmem>>, vector<4x512xf32>
    tpu.vector_store %arg13[%c92, %c0_70], %150 {strides = array<i32>} : memref<108x512xf32, #tpu.memory_space<vmem>>, vector<4x512xf32>,
    %c441_i32 = arith.constant 441 : i32
    %152 = tpu.dynamic_rotate %35 by %c441_i32 dim 1 : vector<4x512xf32>, i32 -> vector<4x512xf32>
    %c24_71 = arith.constant 24 : index
    %c0_72 = arith.constant 0 : index
    %153 = vector.load %arg11[%c24_71, %c0_72] : memref<27x512xf32, #tpu.memory_space<vmem>>, vector<1x512xf32>
    %154 = vector.broadcast %153 : vector<1x512xf32> to vector<4x512xf32>
    %155 = arith.mulf %152, %154 : vector<4x512xf32>
    %c96 = arith.constant 96 : index
    %c0_73 = arith.constant 0 : index
    %156 = vector.load %arg13[%c96, %c0_73] : memref<108x512xf32, #tpu.memory_space<vmem>>, vector<4x512xf32>
    tpu.vector_store %arg13[%c96, %c0_73], %155 {strides = array<i32>} : memref<108x512xf32, #tpu.memory_space<vmem>>, vector<4x512xf32>,
    %c440_i32 = arith.constant 440 : i32
    %157 = tpu.dynamic_rotate %35 by %c440_i32 dim 1 : vector<4x512xf32>, i32 -> vector<4x512xf32>
    %c25 = arith.constant 25 : index
    %c0_74 = arith.constant 0 : index
    %158 = vector.load %arg11[%c25, %c0_74] : memref<27x512xf32, #tpu.memory_space<vmem>>, vector<1x512xf32>
    %159 = vector.broadcast %158 : vector<1x512xf32> to vector<4x512xf32>
    %160 = arith.mulf %157, %159 : vector<4x512xf32>
    %c100 = arith.constant 100 : index
    %c0_75 = arith.constant 0 : index
    %161 = vector.load %arg13[%c100, %c0_75] : memref<108x512xf32, #tpu.memory_space<vmem>>, vector<4x512xf32>
    tpu.vector_store %arg13[%c100, %c0_75], %160 {strides = array<i32>} : memref<108x512xf32, #tpu.memory_space<vmem>>, vector<4x512xf32>,
    %c439_i32 = arith.constant 439 : i32
    %162 = tpu.dynamic_rotate %35 by %c439_i32 dim 1 : vector<4x512xf32>, i32 -> vector<4x512xf32>
    %c26 = arith.constant 26 : index
    %c0_76 = arith.constant 0 : index
    %163 = vector.load %arg11[%c26, %c0_76] : memref<27x512xf32, #tpu.memory_space<vmem>>, vector<1x512xf32>
    %164 = vector.broadcast %163 : vector<1x512xf32> to vector<4x512xf32>
    %165 = arith.mulf %162, %164 : vector<4x512xf32>
    %c104 = arith.constant 104 : index
    %c0_77 = arith.constant 0 : index
    %166 = vector.load %arg13[%c104, %c0_77] : memref<108x512xf32, #tpu.memory_space<vmem>>, vector<4x512xf32>
    tpu.vector_store %arg13[%c104, %c0_77], %165 {strides = array<i32>} : memref<108x512xf32, #tpu.memory_space<vmem>>, vector<4x512xf32>,
    %c0_78 = arith.constant 0 : index
    %c0_79 = arith.constant 0 : index
    %167 = vector.load %arg4[%c0_78, %c0_79] : memref<8x108xf32, #tpu.memory_space<vmem>>, vector<8x108xf32>
    %c0_80 = arith.constant 0 : index
    %c0_81 = arith.constant 0 : index
    %168 = vector.load %arg13[%c0_80, %c0_81] : memref<108x512xf32, #tpu.memory_space<vmem>>, vector<108x512xf32>
    %cst_82 = arith.constant dense<0.000000e+00> : vector<8x512xf32>
    %169 = tpu.matmul %167, %168, %cst_82 {dimension_numbers = #tpu.dot_dimension_numbers<[1], [0], [0], [1], [0, 0, 1, 1], [], []>} : vector<8x108xf32>, vector<108x512xf32>, vector<8x512xf32> -> vector<8x512xf32>
    %cst_83 = arith.constant dense<0.000000e+00> : vector<8xf32>
    %170 = vector.multi_reduction <add>, %169, %cst_83 [1] : vector<8x512xf32> to vector<8xf32>
    %171 = vector.shape_cast %170 : vector<8xf32> to vector<8x1xf32>
    %cst_84 = arith.constant 5.120000e+02 : f32
    %172 = vector.broadcast %cst_84 : f32 to vector<8x1xf32>
    %173 = arith.divf %171, %172 : vector<8x1xf32>
    %174 = vector.broadcast %173 : vector<8x1xf32> to vector<8x512xf32>
    %175 = arith.subf %169, %174 : vector<8x512xf32>
    %176 = arith.mulf %175, %175 : vector<8x512xf32>
    %cst_85 = arith.constant dense<0.000000e+00> : vector<8xf32>
    %177 = vector.multi_reduction <add>, %176, %cst_85 [1] : vector<8x512xf32> to vector<8xf32>
    %178 = vector.shape_cast %177 : vector<8xf32> to vector<8x1xf32>
    %cst_86 = arith.constant 5.120000e+02 : f32
    %179 = vector.broadcast %cst_86 : f32 to vector<8x1xf32>
    %180 = arith.divf %178, %179 : vector<8x1xf32>
    %cst_87 = arith.constant 9.99999974E-6 : f32
    %181 = vector.broadcast %cst_87 : f32 to vector<8x1xf32>
    %182 = arith.addf %180, %181 : vector<8x1xf32>
    %183 = math.rsqrt %182 : vector<8x1xf32>
    %184 = vector.broadcast %183 : vector<8x1xf32> to vector<8x512xf32>
    %185 = arith.mulf %175, %184 : vector<8x512xf32>
    %c0_88 = arith.constant 0 : index
    %c0_89 = arith.constant 0 : index
    %c0_90 = arith.constant 0 : index
    %186 = vector.load %arg5[%c0_88, %c0_89, %c0_90] : memref<1x8x1xf32, #tpu.memory_space<vmem>>, vector<1x8x1xf32>
    %187 = vector.shape_cast %186 : vector<1x8x1xf32> to vector<8x1xf32>
    %188 = vector.broadcast %187 : vector<8x1xf32> to vector<8x512xf32>
    %189 = arith.mulf %185, %188 : vector<8x512xf32>
    %c0_91 = arith.constant 0 : index
    %c0_92 = arith.constant 0 : index
    %c0_93 = arith.constant 0 : index
    %190 = vector.load %arg6[%c0_91, %c0_92, %c0_93] : memref<1x8x1xf32, #tpu.memory_space<vmem>>, vector<1x8x1xf32>
    %191 = vector.shape_cast %190 : vector<1x8x1xf32> to vector<8x1xf32>
    %192 = vector.broadcast %191 : vector<8x1xf32> to vector<8x512xf32>
    %193 = arith.addf %189, %192 : vector<8x512xf32>
    %cst_94 = arith.constant 0.000000e+00 : f32
    %194 = vector.broadcast %cst_94 : f32 to vector<8x512xf32>
    %195 = arith.subf %194, %193 : vector<8x512xf32>
    %196 = math.exp %195 : vector<8x512xf32>
    %cst_95 = arith.constant 1.000000e+00 : f32
    %197 = vector.broadcast %cst_95 : f32 to vector<8x512xf32>
    %198 = arith.addf %197, %196 : vector<8x512xf32>
    %199 = tpu.reciprocal %198 {approx = true} : vector<8x512xf32> -> vector<8x512xf32>
    %200 = arith.mulf %193, %199 : vector<8x512xf32>
    %c73_i32_96 = arith.constant 73 : i32
    %201 = tpu.dynamic_rotate %200 by %c73_i32_96 dim 1 : vector<8x512xf32>, i32 -> vector<8x512xf32>
    %c0_97 = arith.constant 0 : index
    %c0_98 = arith.constant 0 : index
    %202 = vector.load %arg11[%c0_97, %c0_98] : memref<27x512xf32, #tpu.memory_space<vmem>>, vector<1x512xf32>
    %203 = vector.broadcast %202 : vector<1x512xf32> to vector<8x512xf32>
    %204 = arith.mulf %201, %203 : vector<8x512xf32>
    %c0_99 = arith.constant 0 : index
    %c0_100 = arith.constant 0 : index
    %205 = vector.load %arg14[%c0_99, %c0_100] : memref<216x512xf32, #tpu.memory_space<vmem>>, vector<8x512xf32>
    tpu.vector_store %arg14[%c0_99, %c0_100], %204 {strides = array<i32>} : memref<216x512xf32, #tpu.memory_space<vmem>>, vector<8x512xf32>,
    %c72_i32_101 = arith.constant 72 : i32
    %206 = tpu.dynamic_rotate %200 by %c72_i32_101 dim 1 : vector<8x512xf32>, i32 -> vector<8x512xf32>
    %c1_102 = arith.constant 1 : index
    %c0_103 = arith.constant 0 : index
    %207 = vector.load %arg11[%c1_102, %c0_103] : memref<27x512xf32, #tpu.memory_space<vmem>>, vector<1x512xf32>
    %208 = vector.broadcast %207 : vector<1x512xf32> to vector<8x512xf32>
    %209 = arith.mulf %206, %208 : vector<8x512xf32>
    %c8_104 = arith.constant 8 : index
    %c0_105 = arith.constant 0 : index
    %210 = vector.load %arg14[%c8_104, %c0_105] : memref<216x512xf32, #tpu.memory_space<vmem>>, vector<8x512xf32>
    tpu.vector_store %arg14[%c8_104, %c0_105], %209 {strides = array<i32>} : memref<216x512xf32, #tpu.memory_space<vmem>>, vector<8x512xf32>,
    %c71_i32_106 = arith.constant 71 : i32
    %211 = tpu.dynamic_rotate %200 by %c71_i32_106 dim 1 : vector<8x512xf32>, i32 -> vector<8x512xf32>
    %c2_107 = arith.constant 2 : index
    %c0_108 = arith.constant 0 : index
    %212 = vector.load %arg11[%c2_107, %c0_108] : memref<27x512xf32, #tpu.memory_space<vmem>>, vector<1x512xf32>
    %213 = vector.broadcast %212 : vector<1x512xf32> to vector<8x512xf32>
    %214 = arith.mulf %211, %213 : vector<8x512xf32>
    %c16_109 = arith.constant 16 : index
    %c0_110 = arith.constant 0 : index
    %215 = vector.load %arg14[%c16_109, %c0_110] : memref<216x512xf32, #tpu.memory_space<vmem>>, vector<8x512xf32>
    tpu.vector_store %arg14[%c16_109, %c0_110], %214 {strides = array<i32>} : memref<216x512xf32, #tpu.memory_space<vmem>>, vector<8x512xf32>,
    %c65_i32_111 = arith.constant 65 : i32
    %216 = tpu.dynamic_rotate %200 by %c65_i32_111 dim 1 : vector<8x512xf32>, i32 -> vector<8x512xf32>
    %c3_112 = arith.constant 3 : index
    %c0_113 = arith.constant 0 : index
    %217 = vector.load %arg11[%c3_112, %c0_113] : memref<27x512xf32, #tpu.memory_space<vmem>>, vector<1x512xf32>
    %218 = vector.broadcast %217 : vector<1x512xf32> to vector<8x512xf32>
    %219 = arith.mulf %216, %218 : vector<8x512xf32>
    %c24_114 = arith.constant 24 : index
    %c0_115 = arith.constant 0 : index
    %220 = vector.load %arg14[%c24_114, %c0_115] : memref<216x512xf32, #tpu.memory_space<vmem>>, vector<8x512xf32>
    tpu.vector_store %arg14[%c24_114, %c0_115], %219 {strides = array<i32>} : memref<216x512xf32, #tpu.memory_space<vmem>>, vector<8x512xf32>,
    %c64_i32_116 = arith.constant 64 : i32
    %221 = tpu.dynamic_rotate %200 by %c64_i32_116 dim 1 : vector<8x512xf32>, i32 -> vector<8x512xf32>
    %c4_117 = arith.constant 4 : index
    %c0_118 = arith.constant 0 : index
    %222 = vector.load %arg11[%c4_117, %c0_118] : memref<27x512xf32, #tpu.memory_space<vmem>>, vector<1x512xf32>
    %223 = vector.broadcast %222 : vector<1x512xf32> to vector<8x512xf32>
    %224 = arith.mulf %221, %223 : vector<8x512xf32>
    %c32_119 = arith.constant 32 : index
    %c0_120 = arith.constant 0 : index
    %225 = vector.load %arg14[%c32_119, %c0_120] : memref<216x512xf32, #tpu.memory_space<vmem>>, vector<8x512xf32>
    tpu.vector_store %arg14[%c32_119, %c0_120], %224 {strides = array<i32>} : memref<216x512xf32, #tpu.memory_space<vmem>>, vector<8x512xf32>,
    %c63_i32_121 = arith.constant 63 : i32
    %226 = tpu.dynamic_rotate %200 by %c63_i32_121 dim 1 : vector<8x512xf32>, i32 -> vector<8x512xf32>
    %c5_122 = arith.constant 5 : index
    %c0_123 = arith.constant 0 : index
    %227 = vector.load %arg11[%c5_122, %c0_123] : memref<27x512xf32, #tpu.memory_space<vmem>>, vector<1x512xf32>
    %228 = vector.broadcast %227 : vector<1x512xf32> to vector<8x512xf32>
    %229 = arith.mulf %226, %228 : vector<8x512xf32>
    %c40_124 = arith.constant 40 : index
    %c0_125 = arith.constant 0 : index
    %230 = vector.load %arg14[%c40_124, %c0_125] : memref<216x512xf32, #tpu.memory_space<vmem>>, vector<8x512xf32>
    tpu.vector_store %arg14[%c40_124, %c0_125], %229 {strides = array<i32>} : memref<216x512xf32, #tpu.memory_space<vmem>>, vector<8x512xf32>,
    %c57_i32_126 = arith.constant 57 : i32
    %231 = tpu.dynamic_rotate %200 by %c57_i32_126 dim 1 : vector<8x512xf32>, i32 -> vector<8x512xf32>
    %c6_127 = arith.constant 6 : index
    %c0_128 = arith.constant 0 : index
    %232 = vector.load %arg11[%c6_127, %c0_128] : memref<27x512xf32, #tpu.memory_space<vmem>>, vector<1x512xf32>
    %233 = vector.broadcast %232 : vector<1x512xf32> to vector<8x512xf32>
    %234 = arith.mulf %231, %233 : vector<8x512xf32>
    %c48_129 = arith.constant 48 : index
    %c0_130 = arith.constant 0 : index
    %235 = vector.load %arg14[%c48_129, %c0_130] : memref<216x512xf32, #tpu.memory_space<vmem>>, vector<8x512xf32>
    tpu.vector_store %arg14[%c48_129, %c0_130], %234 {strides = array<i32>} : memref<216x512xf32, #tpu.memory_space<vmem>>, vector<8x512xf32>,
    %c56_i32_131 = arith.constant 56 : i32
    %236 = tpu.dynamic_rotate %200 by %c56_i32_131 dim 1 : vector<8x512xf32>, i32 -> vector<8x512xf32>
    %c7_132 = arith.constant 7 : index
    %c0_133 = arith.constant 0 : index
    %237 = vector.load %arg11[%c7_132, %c0_133] : memref<27x512xf32, #tpu.memory_space<vmem>>, vector<1x512xf32>
    %238 = vector.broadcast %237 : vector<1x512xf32> to vector<8x512xf32>
    %239 = arith.mulf %236, %238 : vector<8x512xf32>
    %c56_134 = arith.constant 56 : index
    %c0_135 = arith.constant 0 : index
    %240 = vector.load %arg14[%c56_134, %c0_135] : memref<216x512xf32, #tpu.memory_space<vmem>>, vector<8x512xf32>
    tpu.vector_store %arg14[%c56_134, %c0_135], %239 {strides = array<i32>} : memref<216x512xf32, #tpu.memory_space<vmem>>, vector<8x512xf32>,
    %c55_i32_136 = arith.constant 55 : i32
    %241 = tpu.dynamic_rotate %200 by %c55_i32_136 dim 1 : vector<8x512xf32>, i32 -> vector<8x512xf32>
    %c8_137 = arith.constant 8 : index
    %c0_138 = arith.constant 0 : index
    %242 = vector.load %arg11[%c8_137, %c0_138] : memref<27x512xf32, #tpu.memory_space<vmem>>, vector<1x512xf32>
    %243 = vector.broadcast %242 : vector<1x512xf32> to vector<8x512xf32>
    %244 = arith.mulf %241, %243 : vector<8x512xf32>
    %c64_139 = arith.constant 64 : index
    %c0_140 = arith.constant 0 : index
    %245 = vector.load %arg14[%c64_139, %c0_140] : memref<216x512xf32, #tpu.memory_space<vmem>>, vector<8x512xf32>
    tpu.vector_store %arg14[%c64_139, %c0_140], %244 {strides = array<i32>} : memref<216x512xf32, #tpu.memory_space<vmem>>, vector<8x512xf32>,
    %c9_i32_141 = arith.constant 9 : i32
    %246 = tpu.dynamic_rotate %200 by %c9_i32_141 dim 1 : vector<8x512xf32>, i32 -> vector<8x512xf32>
    %c9_142 = arith.constant 9 : index
    %c0_143 = arith.constant 0 : index
    %247 = vector.load %arg11[%c9_142, %c0_143] : memref<27x512xf32, #tpu.memory_space<vmem>>, vector<1x512xf32>
    %248 = vector.broadcast %247 : vector<1x512xf32> to vector<8x512xf32>
    %249 = arith.mulf %246, %248 : vector<8x512xf32>
    %c72_144 = arith.constant 72 : index
    %c0_145 = arith.constant 0 : index
    %250 = vector.load %arg14[%c72_144, %c0_145] : memref<216x512xf32, #tpu.memory_space<vmem>>, vector<8x512xf32>
    tpu.vector_store %arg14[%c72_144, %c0_145], %249 {strides = array<i32>} : memref<216x512xf32, #tpu.memory_space<vmem>>, vector<8x512xf32>,
    %c8_i32_146 = arith.constant 8 : i32
    %251 = tpu.dynamic_rotate %200 by %c8_i32_146 dim 1 : vector<8x512xf32>, i32 -> vector<8x512xf32>
    %c10_147 = arith.constant 10 : index
    %c0_148 = arith.constant 0 : index
    %252 = vector.load %arg11[%c10_147, %c0_148] : memref<27x512xf32, #tpu.memory_space<vmem>>, vector<1x512xf32>
    %253 = vector.broadcast %252 : vector<1x512xf32> to vector<8x512xf32>
    %254 = arith.mulf %251, %253 : vector<8x512xf32>
    %c80_149 = arith.constant 80 : index
    %c0_150 = arith.constant 0 : index
    %255 = vector.load %arg14[%c80_149, %c0_150] : memref<216x512xf32, #tpu.memory_space<vmem>>, vector<8x512xf32>
    tpu.vector_store %arg14[%c80_149, %c0_150], %254 {strides = array<i32>} : memref<216x512xf32, #tpu.memory_space<vmem>>, vector<8x512xf32>,
    %c7_i32_151 = arith.constant 7 : i32
    %256 = tpu.dynamic_rotate %200 by %c7_i32_151 dim 1 : vector<8x512xf32>, i32 -> vector<8x512xf32>
    %c11_152 = arith.constant 11 : index
    %c0_153 = arith.constant 0 : index
    %257 = vector.load %arg11[%c11_152, %c0_153] : memref<27x512xf32, #tpu.memory_space<vmem>>, vector<1x512xf32>
    %258 = vector.broadcast %257 : vector<1x512xf32> to vector<8x512xf32>
    %259 = arith.mulf %256, %258 : vector<8x512xf32>
    %c88_154 = arith.constant 88 : index
    %c0_155 = arith.constant 0 : index
    %260 = vector.load %arg14[%c88_154, %c0_155] : memref<216x512xf32, #tpu.memory_space<vmem>>, vector<8x512xf32>
    tpu.vector_store %arg14[%c88_154, %c0_155], %259 {strides = array<i32>} : memref<216x512xf32, #tpu.memory_space<vmem>>, vector<8x512xf32>,
    %c1_i32_156 = arith.constant 1 : i32
    %261 = tpu.dynamic_rotate %200 by %c1_i32_156 dim 1 : vector<8x512xf32>, i32 -> vector<8x512xf32>
    %c12_157 = arith.constant 12 : index
    %c0_158 = arith.constant 0 : index
    %262 = vector.load %arg11[%c12_157, %c0_158] : memref<27x512xf32, #tpu.memory_space<vmem>>, vector<1x512xf32>
    %263 = vector.broadcast %262 : vector<1x512xf32> to vector<8x512xf32>
    %264 = arith.mulf %261, %263 : vector<8x512xf32>
    %c96_159 = arith.constant 96 : index
    %c0_160 = arith.constant 0 : index
    %265 = vector.load %arg14[%c96_159, %c0_160] : memref<216x512xf32, #tpu.memory_space<vmem>>, vector<8x512xf32>
    tpu.vector_store %arg14[%c96_159, %c0_160], %264 {strides = array<i32>} : memref<216x512xf32, #tpu.memory_space<vmem>>, vector<8x512xf32>,
    %c104_161 = arith.constant 104 : index
    %c0_162 = arith.constant 0 : index
    %266 = vector.load %arg14[%c104_161, %c0_162] : memref<216x512xf32, #tpu.memory_space<vmem>>, vector<8x512xf32>
    tpu.vector_store %arg14[%c104_161, %c0_162], %200 {strides = array<i32>} : memref<216x512xf32, #tpu.memory_space<vmem>>, vector<8x512xf32>,
    %c511_i32_163 = arith.constant 511 : i32
    %267 = tpu.dynamic_rotate %200 by %c511_i32_163 dim 1 : vector<8x512xf32>, i32 -> vector<8x512xf32>
    %c14_164 = arith.constant 14 : index
    %c0_165 = arith.constant 0 : index
    %268 = vector.load %arg11[%c14_164, %c0_165] : memref<27x512xf32, #tpu.memory_space<vmem>>, vector<1x512xf32>
    %269 = vector.broadcast %268 : vector<1x512xf32> to vector<8x512xf32>
    %270 = arith.mulf %267, %269 : vector<8x512xf32>
    %c112 = arith.constant 112 : index
    %c0_166 = arith.constant 0 : index
    %271 = vector.load %arg14[%c112, %c0_166] : memref<216x512xf32, #tpu.memory_space<vmem>>, vector<8x512xf32>
    tpu.vector_store %arg14[%c112, %c0_166], %270 {strides = array<i32>} : memref<216x512xf32, #tpu.memory_space<vmem>>, vector<8x512xf32>,
    %c505_i32_167 = arith.constant 505 : i32
    %272 = tpu.dynamic_rotate %200 by %c505_i32_167 dim 1 : vector<8x512xf32>, i32 -> vector<8x512xf32>
    %c15_168 = arith.constant 15 : index
    %c0_169 = arith.constant 0 : index
    %273 = vector.load %arg11[%c15_168, %c0_169] : memref<27x512xf32, #tpu.memory_space<vmem>>, vector<1x512xf32>
    %274 = vector.broadcast %273 : vector<1x512xf32> to vector<8x512xf32>
    %275 = arith.mulf %272, %274 : vector<8x512xf32>
    %c120 = arith.constant 120 : index
    %c0_170 = arith.constant 0 : index
    %276 = vector.load %arg14[%c120, %c0_170] : memref<216x512xf32, #tpu.memory_space<vmem>>, vector<8x512xf32>
    tpu.vector_store %arg14[%c120, %c0_170], %275 {strides = array<i32>} : memref<216x512xf32, #tpu.memory_space<vmem>>, vector<8x512xf32>,
    %c504_i32_171 = arith.constant 504 : i32
    %277 = tpu.dynamic_rotate %200 by %c504_i32_171 dim 1 : vector<8x512xf32>, i32 -> vector<8x512xf32>
    %c16_172 = arith.constant 16 : index
    %c0_173 = arith.constant 0 : index
    %278 = vector.load %arg11[%c16_172, %c0_173] : memref<27x512xf32, #tpu.memory_space<vmem>>, vector<1x512xf32>
    %279 = vector.broadcast %278 : vector<1x512xf32> to vector<8x512xf32>
    %280 = arith.mulf %277, %279 : vector<8x512xf32>
    %c128 = arith.constant 128 : index
    %c0_174 = arith.constant 0 : index
    %281 = vector.load %arg14[%c128, %c0_174] : memref<216x512xf32, #tpu.memory_space<vmem>>, vector<8x512xf32>
    tpu.vector_store %arg14[%c128, %c0_174], %280 {strides = array<i32>} : memref<216x512xf32, #tpu.memory_space<vmem>>, vector<8x512xf32>,
    %c503_i32_175 = arith.constant 503 : i32
    %282 = tpu.dynamic_rotate %200 by %c503_i32_175 dim 1 : vector<8x512xf32>, i32 -> vector<8x512xf32>
    %c17_176 = arith.constant 17 : index
    %c0_177 = arith.constant 0 : index
    %283 = vector.load %arg11[%c17_176, %c0_177] : memref<27x512xf32, #tpu.memory_space<vmem>>, vector<1x512xf32>
    %284 = vector.broadcast %283 : vector<1x512xf32> to vector<8x512xf32>
    %285 = arith.mulf %282, %284 : vector<8x512xf32>
    %c136 = arith.constant 136 : index
    %c0_178 = arith.constant 0 : index
    %286 = vector.load %arg14[%c136, %c0_178] : memref<216x512xf32, #tpu.memory_space<vmem>>, vector<8x512xf32>
    tpu.vector_store %arg14[%c136, %c0_178], %285 {strides = array<i32>} : memref<216x512xf32, #tpu.memory_space<vmem>>, vector<8x512xf32>,
    %c457_i32_179 = arith.constant 457 : i32
    %287 = tpu.dynamic_rotate %200 by %c457_i32_179 dim 1 : vector<8x512xf32>, i32 -> vector<8x512xf32>
    %c18_180 = arith.constant 18 : index
    %c0_181 = arith.constant 0 : index
    %288 = vector.load %arg11[%c18_180, %c0_181] : memref<27x512xf32, #tpu.memory_space<vmem>>, vector<1x512xf32>
    %289 = vector.broadcast %288 : vector<1x512xf32> to vector<8x512xf32>
    %290 = arith.mulf %287, %289 : vector<8x512xf32>
    %c144 = arith.constant 144 : index
    %c0_182 = arith.constant 0 : index
    %291 = vector.load %arg14[%c144, %c0_182] : memref<216x512xf32, #tpu.memory_space<vmem>>, vector<8x512xf32>
    tpu.vector_store %arg14[%c144, %c0_182], %290 {strides = array<i32>} : memref<216x512xf32, #tpu.memory_space<vmem>>, vector<8x512xf32>,
    %c456_i32_183 = arith.constant 456 : i32
    %292 = tpu.dynamic_rotate %200 by %c456_i32_183 dim 1 : vector<8x512xf32>, i32 -> vector<8x512xf32>
    %c19_184 = arith.constant 19 : index
    %c0_185 = arith.constant 0 : index
    %293 = vector.load %arg11[%c19_184, %c0_185] : memref<27x512xf32, #tpu.memory_space<vmem>>, vector<1x512xf32>
    %294 = vector.broadcast %293 : vector<1x512xf32> to vector<8x512xf32>
    %295 = arith.mulf %292, %294 : vector<8x512xf32>
    %c152 = arith.constant 152 : index
    %c0_186 = arith.constant 0 : index
    %296 = vector.load %arg14[%c152, %c0_186] : memref<216x512xf32, #tpu.memory_space<vmem>>, vector<8x512xf32>
    tpu.vector_store %arg14[%c152, %c0_186], %295 {strides = array<i32>} : memref<216x512xf32, #tpu.memory_space<vmem>>, vector<8x512xf32>,
    %c455_i32_187 = arith.constant 455 : i32
    %297 = tpu.dynamic_rotate %200 by %c455_i32_187 dim 1 : vector<8x512xf32>, i32 -> vector<8x512xf32>
    %c20_188 = arith.constant 20 : index
    %c0_189 = arith.constant 0 : index
    %298 = vector.load %arg11[%c20_188, %c0_189] : memref<27x512xf32, #tpu.memory_space<vmem>>, vector<1x512xf32>
    %299 = vector.broadcast %298 : vector<1x512xf32> to vector<8x512xf32>
    %300 = arith.mulf %297, %299 : vector<8x512xf32>
    %c160 = arith.constant 160 : index
    %c0_190 = arith.constant 0 : index
    %301 = vector.load %arg14[%c160, %c0_190] : memref<216x512xf32, #tpu.memory_space<vmem>>, vector<8x512xf32>
    tpu.vector_store %arg14[%c160, %c0_190], %300 {strides = array<i32>} : memref<216x512xf32, #tpu.memory_space<vmem>>, vector<8x512xf32>,
    %c449_i32_191 = arith.constant 449 : i32
    %302 = tpu.dynamic_rotate %200 by %c449_i32_191 dim 1 : vector<8x512xf32>, i32 -> vector<8x512xf32>
    %c21_192 = arith.constant 21 : index
    %c0_193 = arith.constant 0 : index
    %303 = vector.load %arg11[%c21_192, %c0_193] : memref<27x512xf32, #tpu.memory_space<vmem>>, vector<1x512xf32>
    %304 = vector.broadcast %303 : vector<1x512xf32> to vector<8x512xf32>
    %305 = arith.mulf %302, %304 : vector<8x512xf32>
    %c168 = arith.constant 168 : index
    %c0_194 = arith.constant 0 : index
    %306 = vector.load %arg14[%c168, %c0_194] : memref<216x512xf32, #tpu.memory_space<vmem>>, vector<8x512xf32>
    tpu.vector_store %arg14[%c168, %c0_194], %305 {strides = array<i32>} : memref<216x512xf32, #tpu.memory_space<vmem>>, vector<8x512xf32>,
    %c448_i32_195 = arith.constant 448 : i32
    %307 = tpu.dynamic_rotate %200 by %c448_i32_195 dim 1 : vector<8x512xf32>, i32 -> vector<8x512xf32>
    %c22_196 = arith.constant 22 : index
    %c0_197 = arith.constant 0 : index
    %308 = vector.load %arg11[%c22_196, %c0_197] : memref<27x512xf32, #tpu.memory_space<vmem>>, vector<1x512xf32>
    %309 = vector.broadcast %308 : vector<1x512xf32> to vector<8x512xf32>
    %310 = arith.mulf %307, %309 : vector<8x512xf32>
    %c176 = arith.constant 176 : index
    %c0_198 = arith.constant 0 : index
    %311 = vector.load %arg14[%c176, %c0_198] : memref<216x512xf32, #tpu.memory_space<vmem>>, vector<8x512xf32>
    tpu.vector_store %arg14[%c176, %c0_198], %310 {strides = array<i32>} : memref<216x512xf32, #tpu.memory_space<vmem>>, vector<8x512xf32>,
    %c447_i32_199 = arith.constant 447 : i32
    %312 = tpu.dynamic_rotate %200 by %c447_i32_199 dim 1 : vector<8x512xf32>, i32 -> vector<8x512xf32>
    %c23_200 = arith.constant 23 : index
    %c0_201 = arith.constant 0 : index
    %313 = vector.load %arg11[%c23_200, %c0_201] : memref<27x512xf32, #tpu.memory_space<vmem>>, vector<1x512xf32>
    %314 = vector.broadcast %313 : vector<1x512xf32> to vector<8x512xf32>
    %315 = arith.mulf %312, %314 : vector<8x512xf32>
    %c184 = arith.constant 184 : index
    %c0_202 = arith.constant 0 : index
    %316 = vector.load %arg14[%c184, %c0_202] : memref<216x512xf32, #tpu.memory_space<vmem>>, vector<8x512xf32>
    tpu.vector_store %arg14[%c184, %c0_202], %315 {strides = array<i32>} : memref<216x512xf32, #tpu.memory_space<vmem>>, vector<8x512xf32>,
    %c441_i32_203 = arith.constant 441 : i32
    %317 = tpu.dynamic_rotate %200 by %c441_i32_203 dim 1 : vector<8x512xf32>, i32 -> vector<8x512xf32>
    %c24_204 = arith.constant 24 : index
    %c0_205 = arith.constant 0 : index
    %318 = vector.load %arg11[%c24_204, %c0_205] : memref<27x512xf32, #tpu.memory_space<vmem>>, vector<1x512xf32>
    %319 = vector.broadcast %318 : vector<1x512xf32> to vector<8x512xf32>
    %320 = arith.mulf %317, %319 : vector<8x512xf32>
    %c192 = arith.constant 192 : index
    %c0_206 = arith.constant 0 : index
    %321 = vector.load %arg14[%c192, %c0_206] : memref<216x512xf32, #tpu.memory_space<vmem>>, vector<8x512xf32>
    tpu.vector_store %arg14[%c192, %c0_206], %320 {strides = array<i32>} : memref<216x512xf32, #tpu.memory_space<vmem>>, vector<8x512xf32>,
    %c440_i32_207 = arith.constant 440 : i32
    %322 = tpu.dynamic_rotate %200 by %c440_i32_207 dim 1 : vector<8x512xf32>, i32 -> vector<8x512xf32>
    %c25_208 = arith.constant 25 : index
    %c0_209 = arith.constant 0 : index
    %323 = vector.load %arg11[%c25_208, %c0_209] : memref<27x512xf32, #tpu.memory_space<vmem>>, vector<1x512xf32>
    %324 = vector.broadcast %323 : vector<1x512xf32> to vector<8x512xf32>
    %325 = arith.mulf %322, %324 : vector<8x512xf32>
    %c200 = arith.constant 200 : index
    %c0_210 = arith.constant 0 : index
    %326 = vector.load %arg14[%c200, %c0_210] : memref<216x512xf32, #tpu.memory_space<vmem>>, vector<8x512xf32>
    tpu.vector_store %arg14[%c200, %c0_210], %325 {strides = array<i32>} : memref<216x512xf32, #tpu.memory_space<vmem>>, vector<8x512xf32>,
    %c439_i32_211 = arith.constant 439 : i32
    %327 = tpu.dynamic_rotate %200 by %c439_i32_211 dim 1 : vector<8x512xf32>, i32 -> vector<8x512xf32>
    %c26_212 = arith.constant 26 : index
    %c0_213 = arith.constant 0 : index
    %328 = vector.load %arg11[%c26_212, %c0_213] : memref<27x512xf32, #tpu.memory_space<vmem>>, vector<1x512xf32>
    %329 = vector.broadcast %328 : vector<1x512xf32> to vector<8x512xf32>
    %330 = arith.mulf %327, %329 : vector<8x512xf32>
    %c208 = arith.constant 208 : index
    %c0_214 = arith.constant 0 : index
    %331 = vector.load %arg14[%c208, %c0_214] : memref<216x512xf32, #tpu.memory_space<vmem>>, vector<8x512xf32>
    tpu.vector_store %arg14[%c208, %c0_214], %330 {strides = array<i32>} : memref<216x512xf32, #tpu.memory_space<vmem>>, vector<8x512xf32>,
    %c0_215 = arith.constant 0 : index
    %c0_216 = arith.constant 0 : index
    %332 = vector.load %arg7[%c0_215, %c0_216] : memref<8x216xf32, #tpu.memory_space<vmem>>, vector<8x216xf32>
    %c0_217 = arith.constant 0 : index
    %c0_218 = arith.constant 0 : index
    %333 = vector.load %arg14[%c0_217, %c0_218] : memref<216x512xf32, #tpu.memory_space<vmem>>, vector<216x512xf32>
    %cst_219 = arith.constant dense<0.000000e+00> : vector<8x512xf32>
    %334 = tpu.matmul %332, %333, %cst_219 {dimension_numbers = #tpu.dot_dimension_numbers<[1], [0], [0], [1], [0, 0, 1, 1], [], []>} : vector<8x216xf32>, vector<216x512xf32>, vector<8x512xf32> -> vector<8x512xf32>
    %c0_220 = arith.constant 0 : index
    %c0_221 = arith.constant 0 : index
    %335 = vector.load %arg8[%c0_220, %c0_221] : memref<8x1xf32, #tpu.memory_space<vmem>>, vector<8x1xf32>
    %336 = vector.broadcast %335 : vector<8x1xf32> to vector<8x512xf32>
    %337 = arith.addf %334, %336 : vector<8x512xf32>
    %338 = arith.addf %337, %6 : vector<8x512xf32>
    %c0_222 = arith.constant 0 : index
    %c0_223 = arith.constant 0 : index
    %c0_224 = arith.constant 0 : index
    %339 = vector.load %arg12[%c0_222, %c0_223, %c0_224] : memref<1x8x512xf32, #tpu.memory_space<vmem>>, vector<1x8x512xf32>
    %340 = vector.shape_cast %339 : vector<1x8x512xf32> to vector<8x512xf32>
    %341 = vector.shape_cast %338 : vector<8x512xf32> to vector<1x8x512xf32>
    tpu.vector_store %arg12[%c0_222, %c0_223, %c0_224], %341 {strides = array<i32>} : memref<1x8x512xf32, #tpu.memory_space<vmem>>, vector<1x8x512xf32>,
    return
  }
  func.func @transform_0(%arg0: i32) -> (i32, i32, i32) {
    %c0_i32 = arith.constant 0 : i32
    %c0_i32_0 = arith.constant 0 : i32
    %c0_i32_1 = arith.constant 0 : i32
    return %arg0, %c0_i32, %c0_i32_0 : i32, i32, i32
  }
  func.func @transform_1(%arg0: i32) -> (i32, i32) {
    %c0_i32 = arith.constant 0 : i32
    %c0_i32_0 = arith.constant 0 : i32
    %c0_i32_1 = arith.constant 0 : i32
    return %c0_i32, %c0_i32_0 : i32, i32
  }
  func.func @transform_2(%arg0: i32) -> (i32, i32) {
    %c0_i32 = arith.constant 0 : i32
    %c0_i32_0 = arith.constant 0 : i32
    %c0_i32_1 = arith.constant 0 : i32
    return %c0_i32, %c0_i32_0 : i32, i32
  }
  func.func @transform_3(%arg0: i32) -> (i32, i32) {
    %c0_i32 = arith.constant 0 : i32
    %c0_i32_0 = arith.constant 0 : i32
    %c0_i32_1 = arith.constant 0 : i32
    return %c0_i32, %c0_i32_0 : i32, i32
  }
  func.func @transform_4(%arg0: i32) -> (i32, i32, i32) {
    %c0_i32 = arith.constant 0 : i32
    %c0_i32_0 = arith.constant 0 : i32
    %c0_i32_1 = arith.constant 0 : i32
    return %arg0, %c0_i32, %c0_i32_0 : i32, i32, i32
  }
  func.func @transform_5(%arg0: i32) -> (i32, i32, i32) {
    %c0_i32 = arith.constant 0 : i32
    %c0_i32_0 = arith.constant 0 : i32
    %c0_i32_1 = arith.constant 0 : i32
    return %arg0, %c0_i32, %c0_i32_0 : i32, i32, i32
  }
  func.func @transform_6(%arg0: i32) -> (i32, i32) {
    %c0_i32 = arith.constant 0 : i32
    %c0_i32_0 = arith.constant 0 : i32
    %c0_i32_1 = arith.constant 0 : i32
    return %c0_i32, %c0_i32_0 : i32, i32
  }
  func.func @transform_7(%arg0: i32) -> (i32, i32) {
    %c0_i32 = arith.constant 0 : i32
    %c0_i32_0 = arith.constant 0 : i32
    %c0_i32_1 = arith.constant 0 : i32
    return %c0_i32, %c0_i32_0 : i32, i32
  }
  func.func @transform_8(%arg0: i32) -> (i32, i32) {
    %c0_i32 = arith.constant 0 : i32
    %c0_i32_0 = arith.constant 0 : i32
    %c0_i32_1 = arith.constant 0 : i32
    return %c0_i32, %c0_i32_0 : i32, i32
  }
  func.func @transform_9(%arg0: i32) -> (i32, i32) {
    %c0_i32 = arith.constant 0 : i32
    %c0_i32_0 = arith.constant 0 : i32
    %c0_i32_1 = arith.constant 0 : i32
    return %c0_i32, %c0_i32_0 : i32, i32
  }
  func.func @transform_10(%arg0: i32) -> (i32, i32) {
    %c0_i32 = arith.constant 0 : i32
    %c0_i32_0 = arith.constant 0 : i32
    %c0_i32_1 = arith.constant 0 : i32
    return %c0_i32, %c0_i32_0 : i32, i32
  }
  func.func @transform_11(%arg0: i32) -> (i32, i32, i32) {
    %c0_i32 = arith.constant 0 : i32
    %c0_i32_0 = arith.constant 0 : i32
    %c0_i32_1 = arith.constant 0 : i32
    return %arg0, %c0_i32, %c0_i32_0 : i32, i32, i32
  }
}

</mosaic_0001>

<bundles_post_ra>
// kernel: res_conv_block_forward.1
= control target key start
LH: loop header
LB: loop body
LE: loop exit
PB: predicated region body
PF: predicated region fallthrough
CT: control target
= control target key end

     0   :  { %s3721_s17 = smov 0   ;;  %s5640_s0 = inlined_call_operand.vmem [shape: f32[2,4,512], index: 0, kind: input, shape index: {}]   ;;  %s5641_s1 = inlined_call_operand.vmem [shape: f32[4,1], index: 1, kind: input, shape index: {}]   ;;  %s5642_s2 = inlined_call_operand.vmem [shape: f32[4,1], index: 2, kind: input, shape index: {}]   ;;  %s5643_s3 = inlined_call_operand.vmem [shape: f32[8,108], index: 3, kind: input, shape index: {}]   ;;  %s5644_s4 = inlined_call_operand.vmem [shape: f32[2,8,1], index: 4, kind: input, shape index: {}]   ;;  %s5645_s5 = inlined_call_operand.vmem [shape: f32[2,8,1], index: 5, kind: input, shape index: {}]   ;;  %s5646_s6 = inlined_call_operand.vmem [shape: f32[8,216], index: 6, kind: input, shape index: {}]   ;;  %s5647_s7 = inlined_call_operand.vmem [shape: f32[8,1], index: 7, kind: input, shape index: {}]   ;;  %s5648_s8 = inlined_call_operand.vmem [shape: f32[8,4], index: 8, kind: input, shape index: {}]   ;;  %s5649_s9 = inlined_call_operand.vmem [shape: f32[8,1], index: 9, kind: input, shape index: {}]   ;;  %s5650_s10 = inlined_call_operand.vmem [shape: f32[27,512], index: 10, kind: input, shape index: {}]   ;;  %s5651_s11 = inlined_call_operand.vmem [shape: f32[2,8,512], index: 11, kind: output, shape index: {}]  }
   0x1 LB: > { %s3494_s18 = sadd.s32 4294967295, %s3639_s17   ;;  %p3498_p0 = scmp.ge.s32.totalorder %s3639_s17, 1  ;;  %s3639_s17 = sphi %s3721_s17, %s21_s17  }
   0x2   : > { %p355_p1 = scmp.lt.s32.totalorder %s3639_s17, 3 }
   0x4   : > { %p356_p2 = pnand %p3498_p0, %p355_p1 }
   0x6   : > { %359 = sbr.rel (%p356_p2) target bundleno = 1690 (0x69a), region = 64 }
   0xb   : > { %p403_p3 = scmp.lt.s32.totalorder %s3494_s18, 1  ;;  %vm438_vm0 = vcmask 1043456   ;;  %v644_v11 = vld [vmem:[%s5641_s1] sm:$0xf]  ;;  %v3641_v12 = vmov 0   ;;  %v606_v16 = vlaneseq  ;;  %s3643_s27 = smov 63  }
   0xc   : > { %3601 = vset.pattern.permute.xlu1 %v3641_v12  ;;  %3602 = vset.pattern.permute.xlu0 %v3641_v12  ;;  %v659_v13 = vld [vmem:[%s5642_s2] sm:$0xf]  ;;  %v3642_v14 = vmov 839922192   ;;  %s3644_s28 = smov 56   ;;  %s3645_s29 = smov 57  }
   0xd   : > { %s5812_s18 = smov (!%p403_p3, %s3494_s18), 1  ;;  %647 = vperm.xlu1 %3601, %v644_v11   ;;  %v604_v15 = vunpack.c.l.s4 %v3642_v14  ;;  %v3750_v18 = vshrl.u32 %v606_v16, 7  ;;  %s3646_s30 = smov 55   ;;  %vm434_vm1 = vcmask 31744  }
   0xe   : > { %s3571_s19 = sshll.u32 %s5812_s18, 4  ;;  %s5662_s12 = smov 65  }
   0xf   : > { %s407_s22 = scalar_lea.vmem %s5640_s0, %s3571_s19  ;;  %v605_v17 = vunpack.c.0.s8 %v604_v15  ;;  %s3648_s13 = smov 64  }
  0x10   : > { %v421_v0 = vld [vmem:[%s407_s22] sm:$0xff]  ;;  %v422_v1 = vld [vmem:[%s407_s22 + $0x8] sm:$0xff]  ;;  %s5658_s14 = smov 72   ;;  %s5660_s15 = smov 71  }
  0x11   : > { %v432_v2 = vcombine.high %v421_v0, %v421_v0  ;;  %v433_v3 = vcombine.high %v422_v1, %v422_v1  ;;  %v591_v4 = vsel %vm438_vm0, %v421_v0, 0.0  ;;  %v594_v6 = vsel %vm438_vm0, %v422_v1, 0.0  ;;  %662 = vperm.xlu1 %3601, %v659_v13   ;;  %s5656_s16 = smov 73   ;;  %s3652_s19 = smov 121  }
  0x12   : > { %v608_v19 = vsub.s32 %v605_v17, %v3750_v18  ;;  %s3653_s20 = smov 127   ;;  %s5654_s21 = smov 119  }
  0x13   : > { %v592_v5 = vsel %vm438_vm0, %v432_v2, 0.0  ;;  %3505 = vmatprep.subr.msk.mxu0 %vm438_vm0, %v432_v2  ;;  %3508 = vmatprep.subr.msk.mxu1 %vm438_vm0, %v433_v3  ;;  %v596_v8 = vsel %vm438_vm0, %v433_v3, 0.0  ;;  %s3655_s22 = smov 7   ;;  %v3656_v2 = vmov 0.0   ;;  %v423_v3 = vld [vmem:[%s5648_s8] sm:$0xff]  ;;  %s5652_s25 = smov 120  }
  0x14   : > { %v593_v7 = vadd.f32 %v592_v5, %v591_v4  ;;  %3506 = vmatpush1.msk.msra.mxu0 %vm438_vm0, %v421_v0  ;;  %3509 = vmatpush1.msk.msra.mxu1 %vm438_vm0, %v422_v1  ;;  %s3658_s26 = smov 1   ;;  %s3659_s23 = smov 9  }
  0x15   : > { %511 = vmatprep.mubr.f32.mxu0 %v3656_v2  ;;  %582 = vmatprep.mubr.f32.mxu1 %v3656_v2  ;;  %s3660_s24 = smov 8  }
  0x16   : > { %v595_v9 = vadd.f32 %v594_v6, %v593_v7  ;;  %3507 = vmatmul.mubr.msk.f32.vlgmr.msra.gmra.mxu0 %vm434_vm1, %v423_v3  ;;  %3510 = vmatmul.mubr.msk.f32.vlgmr.msra.gmra.mxu1 %vm434_vm1, %v423_v3  ;;  %v4091_v3 = vld [vmem:[%s5650_s10 + $0x43] ss:$8 sm:$0xf] }
  0x17   : > { %2009 = vmatprep.mubr.f32.mxu0 %v3656_v2  ;;  %2080 = vmatprep.mubr.f32.mxu1 %v3656_v2 }
  0x18   : > { %v597_v10 = vadd.f32 %v596_v8, %v595_v9 }
  0x1a   : > { %598 = vadd.xlane.f32.xlu0 %v597_v10 }
  0x88   : > { %v648_v39 = vpop.permute.xlu1 %647 }
  0x89   : > { %v655_v45 = vrot.slane %v648_v39, %v608_v19 }
  0x8c   : > { %v663_v42 = vpop.permute.xlu1 %662 }
  0x8d   : > { %v670_v48 = vrot.slane %v663_v42, %v608_v19 }
  0xa3   : > { %v599_v20 = vpop.xlane.xlu0 %598 }
  0xa4   : > { %v601_v21 = vmul.f32 0.001953125, %v599_v20 }
  0xa6   : > { %v609_v22 = vrot.slane %v601_v21, %v608_v19 }
  0xa8   : > { %v611_v23 = vsub.f32 %v421_v0, %v609_v22  ;;  %v612_v24 = vsub.f32 %v422_v1, %v609_v22 }
  0xaa   : > { %v613_v25 = vmul.f32 %v611_v23, %v611_v23  ;;  %v614_v26 = vmul.f32 %v612_v24, %v612_v24 }
  0xac   : > { %v617_v27 = vcombine.high %v613_v25, %v613_v25  ;;  %v618_v28 = vcombine.high %v614_v26, %v614_v26  ;;  %v621_v29 = vsel %vm438_vm0, %v613_v25, 0.0  ;;  %v624_v32 = vsel %vm438_vm0, %v614_v26, 0.0 }
  0xae   : > { %v622_v30 = vsel %vm438_vm0, %v617_v27, 0.0  ;;  %v626_v34 = vsel %vm438_vm0, %v618_v28, 0.0  ;;  %v3936_v27 = vand.u32 127, %v606_v16  ;;  %v3959_v16 = vld [vmem:[%s5650_s10 + $0x62] ss:$8 sm:$0xf] }
  0xaf   : > { %v623_v31 = vadd.f32 %v622_v30, %v621_v29  ;;  %v3943_v30 = vsub.s32 0, %v3750_v18 }
  0xb0   : > { %vm1101_vm2 = vcmp.lt.s32.totalorder %v3936_v27, 55  ;;  %vm945_vm3 = vcmp.lt.s32.totalorder %v3936_v27, 63  ;;  %vm1001_vm4 = vcmp.lt.s32.totalorder %v3936_v27, 57  ;;  %vm845_vm5 = vcmp.lt.s32.totalorder %v3936_v27, 65 }
  0xb1   : > { %v625_v33 = vadd.f32 %v624_v32, %v623_v31  ;;  %v3946_v31 = vsub.s32 1, %v3750_v18  ;;  %v3949_v32 = vsub.s32 2, %v3750_v18  ;;  %vm901_vm6 = vcmp.lt.s32.totalorder %v3936_v27, 64 }
  0xb2   : > { %vm1045_vm7 = vcmp.lt.s32.totalorder %v3936_v27, 56  ;;  %vm745_vm8 = vcmp.lt.s32.totalorder %v3936_v27, 72  ;;  %vm801_vm9 = vcmp.lt.s32.totalorder %v3936_v27, 71  ;;  %vm702_vm10 = vcmp.lt.s32.totalorder %v3936_v27, 73 }
  0xb3   : > { %v627_v35 = vadd.f32 %v626_v34, %v625_v33  ;;  %v3954_v33 = vld [vmem:[%s5650_s10 + $0x20] ss:$8 sm:$0xf]  ;;  %v3962_v34 = vsub.s32 3, %v3750_v18  ;;  %v1851_v42 = vrot.slane %v3959_v16, %v3946_v31  ;;  %vm5678_vm11 = vcmp.lt.s32.totalorder %v3936_v27, 119 }
  0xb4   : > { %v3982_v18 = vld [vmem:[%s5650_s10 + $0x6] ss:$8 sm:$0xf]  ;;  %v1116_v39 = vrot.slane %v3954_v33, %v3946_v31  ;;  %vm1397_vm12 = vcmp.lt.s32.totalorder %v3936_v27, 121  ;;  %vm1353_vm13 = vcmp.lt.s32.totalorder %v3936_v27, 127  ;;  %vm5677_vm14 = vcmp.lt.s32.totalorder %v3936_v27, 120 }
  0xb5   : > { %628 = vadd.xlane.f32.xlu0 %v627_v35  ;;  %vm1245_vm15 = vcmp.lt.s32.totalorder %v3936_v27, 7  ;;  %vm1201_vm1 = vcmp.lt.s32.totalorder %v3936_v27, 8 }
 0x13e   : > { %v629_v36 = vpop.xlane.xlu0 %628 }
 0x13f   : > { %v630_v37 = vmul.f32 0.001953125, %v629_v36 }
 0x141   : > { %v631_v38 = vadd.f32 1e-05, %v630_v37  ;;  %v3972_v37 = vld [vmem:[%s5650_s10 + $0x5] ss:$8 sm:$0xf] }
 0x143   : > { %3605 = vrsqrt.f32 %v631_v38  ;;  %v3977_v38 = vld [vmem:[%s5650_s10 + $0x47] ss:$8 sm:$0xf] }
 0x150   : > { %v3606_v40 = vpop.eup %3605 }
 0x151   : > { %v640_v41 = vrot.slane %v3606_v40, %v608_v19  ;;  %v1120_v40 = vrot.slane %v3954_v33, %v3949_v32 }
 0x153   : > { %v642_v43 = vmul.f32 %v640_v41, %v611_v23  ;;  %v643_v44 = vmul.f32 %v640_v41, %v612_v24  ;;  %v1847_v41 = vrot.slane %v3959_v16, %v3943_v30 }
 0x155   : > { %v657_v46 = vmul.f32 %v655_v45, %v642_v43  ;;  %v658_v47 = vmul.f32 %v655_v45, %v643_v44  ;;  %v3995_v43 = vld [vmem:[%s5650_s10 + $0x60] ss:$8 sm:$0xf]  ;;  %v960_v44 = vrot.slane %v3972_v37, %v3946_v31  ;;  %v964_v45 = vrot.slane %v3972_v37, %v3949_v32 }
 0x157   : > { %v672_v49 = vadd.f32 %v670_v48, %v657_v46  ;;  %v673_v50 = vadd.f32 %v670_v48, %v658_v47  ;;  %v1730_v48 = vrot.slane %v3977_v38, %v3943_v30 }
 0x159   : > { %v674_v51 = vsub.f32 0.0, %v672_v49  ;;  %v675_v52 = vsub.f32 0.0, %v673_v50 }
 0x15b   : > { %v676_v53 = vmul.f32 1.442695, %v674_v51  ;;  %v678_v54 = vmul.f32 1.442695, %v675_v52  ;;  %v1020_v51 = vrot.slane %v3982_v18, %v3949_v32 }
 0x15c   : > { %v4016_v52 = vld [vmem:[%s5650_s10 + $0x3] ss:$8 sm:$0xf] }
 0x15d   : > { %3607 = vpow2.f32 %v676_v53  ;;  %v4021_v53 = vld [vmem:[%s5650_s10 + $0x45] ss:$8 sm:$0xf] }
 0x15e   : > { %3609 = vpow2.f32 %v678_v54 }
 0x16a   : > { %v3608_v55 = vpop.eup %3607 }
 0x16b   : > { %v3610_v56 = vpop.eup %3609  ;;  %v680_v57 = vadd.f32 1.0, %v3608_v55 }
 0x16c   : > { %v681_v58 = vadd.f32 1.0, %v3610_v56  ;;  %v1773_v56 = vrot.slane %v3995_v43, %v3943_v30 }
 0x16d   : > { %3611 = vrcp.f32 %v680_v57  ;;  %v1777_v57 = vrot.slane %v3995_v43, %v3946_v31 }
 0x16e   : > { %3613 = vrcp.f32 %v681_v58  ;;  %v4036_v58 = vld [vmem:[%s5650_s10 + $0x4] ss:$8 sm:$0xf] }
 0x17a   : > { %v3612_v59 = vpop.eup %3611 }
 0x17b   : > { %v3614_v60 = vpop.eup %3613  ;;  %v3757_v61 = vmul.f32 %v3612_v59, %v672_v49  ;;  %v1734_v49 = vrot.slane %v3977_v38, %v3946_v31  ;;  %v4041_v59 = vld [vmem:[%s5650_s10 + $0x46] ss:$8 sm:$0xf] }
 0x17c   : > { %v3759_v62 = vmul.f32 %v3614_v60, %v673_v50  ;;  %v1016_v50 = vrot.slane %v3982_v18, %v3946_v31 }
 0x17d   : > { %1342 = vst [vmem:[#allocation2 + $0xf8] sm:$0xf0] %v3757_v61  ;;  %v1337_v63 = vcombine.low %v3757_v61, %v3757_v61  ;;  %v3817_v1 = vcombine.high %v3757_v61, %v3757_v61 }
 0x17e   : > { %1344 = vst [vmem:[#allocation2 + $0xb8] sm:$0xf0] %v3759_v62  ;;  %941 = vrot.lane.b32.xlu0 %v3759_v62, %s3643_s27  ;;  %1041 = vrot.lane.b32.xlu1 %v3759_v62, %s3644_s28  ;;  %v1338_v0 = vcombine.low %v3759_v62, %v3759_v62  ;;  %v689_v4 = vcombine.high %v3759_v62, %v3759_v62 }
 0x17f   : > { %1341 = vst [vmem:[#allocation2 + $0xe8] sm:$0xf0] %v1337_v63 }
 0x180   : > { %1343 = vst [vmem:[#allocation2 + $0x190] sm:$0xf0] %v1338_v0  ;;  %v4047_v0 = vld [vmem:[%s5650_s10 + $0x7] ss:$8 sm:$0xf] }
 0x182   : > { %997 = vrot.lane.b32.xlu0 %v3759_v62, %s3645_s29  ;;  %1097 = vrot.lane.b32.xlu1 %v3759_v62, %s3646_s30 }
 0x186   : > { %993 = vrot.lane.b32.xlu0 %v3757_v61, %s3645_s29  ;;  %1037 = vrot.lane.b32.xlu1 %v3757_v61, %s3644_s28 }
 0x18a   : > { %841 = vrot.lane.b32.xlu0 %v3759_v62, %s5662_s12  ;;  %1093 = vrot.lane.b32.xlu1 %v3757_v61, %s3646_s30 }
 0x18e   : > { %897 = vrot.lane.b32.xlu0 %v3759_v62, %s3648_s13  ;;  %937 = vrot.lane.b32.xlu1 %v3757_v61, %s3643_s27 }
 0x192   : > { %893 = vrot.lane.b32.xlu0 %v3757_v61, %s3648_s13  ;;  %837 = vrot.lane.b32.xlu1 %v3757_v61, %s5662_s12 }
 0x196   : > { %741 = vrot.lane.b32.xlu0 %v3759_v62, %s5658_s14  ;;  %737 = vrot.lane.b32.xlu1 %v3757_v61, %s5658_s14 }
 0x19a   : > { %797 = vrot.lane.b32.xlu0 %v3759_v62, %s5660_s15  ;;  %692 = vrot.lane.b32.xlu1 %v3757_v61, %s5656_s16 }
 0x19e   : > { %793 = vrot.lane.b32.xlu0 %v3757_v61, %s5660_s15  ;;  %1389 = vrot.lane.b32.xlu1 %v3757_v61, %s3652_s19 }
 0x1a2   : > { %696 = vrot.lane.b32.xlu0 %v3759_v62, %s5656_s16  ;;  %1349 = vrot.lane.b32.xlu1 %v3759_v62, %s3653_s20 }
 0x1a6   : > { %1493 = vrot.lane.b32.xlu0 %v3759_v62, %s5654_s21  ;;  %1345 = vrot.lane.b32.xlu1 %v3757_v61, %s3653_s20 }
 0x1aa   : > { %1489 = vrot.lane.b32.xlu0 %v3757_v61, %s5654_s21  ;;  %1241 = vrot.lane.b32.xlu1 %v3759_v62, %s3655_s22 }
 0x1ae   : > { %1393 = vrot.lane.b32.xlu0 %v3759_v62, %s3652_s19  ;;  %1095 = vrot.lane.b32.xlu1 %v3817_v1, %s3646_s30 }
 0x1b2   : > { %1449 = vrot.lane.b32.xlu0 %v3759_v62, %s5652_s25  ;;  %939 = vrot.lane.b32.xlu1 %v3817_v1, %s3643_s27 }
 0x1b6   : > { %1445 = vrot.lane.b32.xlu0 %v3757_v61, %s5652_s25  ;;  %995 = vrot.lane.b32.xlu1 %v3817_v1, %s3645_s29 }
 0x1ba   : > { %1237 = vrot.lane.b32.xlu0 %v3757_v61, %s3655_s22  ;;  %839 = vrot.lane.b32.xlu1 %v3817_v1, %s5662_s12 }
 0x1be   : > { %1293 = vrot.lane.b32.xlu0 %v3757_v61, %s3658_s26  ;;  %895 = vrot.lane.b32.xlu1 %v3817_v1, %s3648_s13 }
 0x1c2   : > { %1137 = vrot.lane.b32.xlu0 %v3757_v61, %s3659_s23  ;;  %1043 = vrot.lane.b32.xlu1 %v689_v4, %s3644_s28 }
 0x1c6   : > { %1193 = vrot.lane.b32.xlu0 %v3757_v61, %s3660_s24  ;;  %739 = vrot.lane.b32.xlu1 %v3817_v1, %s5658_s14 }
 0x1ca   : > { %1297 = vrot.lane.b32.xlu0 %v3759_v62, %s3658_s26  ;;  %795 = vrot.lane.b32.xlu1 %v3817_v1, %s5660_s15 }
 0x1ce   : > { %943 = vrot.lane.b32.xlu1 %v689_v4, %s3643_s27  ;;  %1039 = vrot.lane.b32.xlu0 %v3817_v1, %s3644_s28 }
 0x1d2   : > { %694 = vrot.lane.b32.xlu1 %v3817_v1, %s5656_s16  ;;  %1099 = vrot.lane.b32.xlu0 %v689_v4, %s3646_s30 }
 0x1d6   : > { %843 = vrot.lane.b32.xlu1 %v689_v4, %s5662_s12  ;;  %999 = vrot.lane.b32.xlu0 %v689_v4, %s3645_s29 }
 0x1da   : > { %1491 = vrot.lane.b32.xlu1 %v3817_v1, %s5654_s21  ;;  %899 = vrot.lane.b32.xlu0 %v689_v4, %s3648_s13 }
 0x1de   : > { %743 = vrot.lane.b32.xlu1 %v689_v4, %s5658_s14  ;;  %799 = vrot.lane.b32.xlu0 %v689_v4, %s5660_s15  ;;  %s3572_s15 = sshll.u32 %s5812_s18, 5 }
 0x1e2   : > { %1391 = vrot.lane.b32.xlu1 %v3817_v1, %s3652_s19  ;;  %1347 = vrot.lane.b32.xlu0 %v3817_v1, %s3653_s20 }
 0x1e6   : > { %1447 = vrot.lane.b32.xlu1 %v3817_v1, %s5652_s25  ;;  %1495 = vrot.lane.b32.xlu0 %v689_v4, %s5654_s21  ;;  %s3501_s21 = sshll.u32 %s5812_s18, 3 }
 0x1ea   : > { %698 = vrot.lane.b32.xlu1 %v689_v4, %s5656_s16  ;;  %1395 = vrot.lane.b32.xlu0 %v689_v4, %s3652_s19  ;;  %s415_s16 = scalar_lea.vmem %s5645_s5, %s3501_s21 }
 0x1ee   : > { %1239 = vrot.lane.b32.xlu1 %v3817_v1, %s3655_s22  ;;  %1243 = vrot.lane.b32.xlu0 %v689_v4, %s3655_s22 }
 0x1f0   : > { %v3880_v5 = vpop.permute.xlu0 %941  ;;  %v3882_v6 = vpop.permute.xlu1 %1041 }
 0x1f2   : > { %1295 = vrot.lane.b32.xlu1 %v3817_v1, %s3658_s26  ;;  %1351 = vrot.lane.b32.xlu0 %v689_v4, %s3653_s20 }
 0x1f4   : > { %v3887_v7 = vpop.permute.xlu0 %997  ;;  %v3889_v8 = vpop.permute.xlu1 %1097 }
 0x1f6   : > { %1451 = vrot.lane.b32.xlu1 %v689_v4, %s5652_s25  ;;  %1199 = vrot.lane.b32.xlu0 %v689_v4, %s3660_s24  ;;  %s411_s25 = scalar_lea.vmem %s5644_s4, %s3501_s21 }
 0x1f8   : > { %v3893_v9 = vpop.permute.xlu0 %993  ;;  %v3895_v10 = vpop.permute.xlu1 %1037 }
 0x1fa   : > { %1299 = vrot.lane.b32.xlu1 %v689_v4, %s3658_s26  ;;  %1197 = vrot.lane.b32.xlu0 %v3759_v62, %s3660_s24 }
 0x1fc   : > { %v3900_v11 = vpop.permute.xlu0 %841  ;;  %v3902_v12 = vpop.permute.xlu1 %1093 }
 0x1fe   : > { %1139 = vrot.lane.b32.xlu1 %v3817_v1, %s3659_s23 }
 0x200   : > { %v3906_v13 = vpop.permute.xlu0 %897  ;;  %v3908_v14 = vpop.permute.xlu1 %937 }
 0x202   : > { %1195 = vrot.lane.b32.xlu1 %v3817_v1, %s3660_s24 }
 0x204   : > { %v3912_v15 = vpop.permute.xlu0 %893  ;;  %v3914_v17 = vpop.permute.xlu1 %837 }
 0x206   : > { %1143 = vrot.lane.b32.xlu1 %v689_v4, %s3659_s23 }
 0x208   : > { %v3917_v19 = vpop.permute.xlu0 %741  ;;  %v3919_v20 = vpop.permute.xlu1 %737 }
 0x20a   : > { %1141 = vrot.lane.b32.xlu1 %v3759_v62, %s3659_s23 }
 0x20c   : > { %v3923_v21 = vpop.permute.xlu0 %797  ;;  %v3925_v22 = vpop.permute.xlu1 %692 }
 0x210   : > { %v3927_v23 = vpop.permute.xlu0 %793  ;;  %v3929_v24 = vpop.permute.xlu1 %1389 }
 0x214   : > { %v3931_v25 = vpop.permute.xlu0 %696  ;;  %v3933_v26 = vpop.permute.xlu1 %1349 }
 0x218   : > { %v3938_v28 = vpop.permute.xlu0 %1493  ;;  %v3940_v29 = vpop.permute.xlu1 %1345 }
 0x219   : > { %5679 = vst [vmem:[#allocation4_spill] sm:$0xff] %v3940_v29 }
 0x21c   : > { %v3964_v35 = vpop.permute.xlu0 %1489  ;;  %v3966_v36 = vpop.permute.xlu1 %1241 }
 0x21d   : > { %5680 = vst [vmem:[#allocation5_spill] sm:$0xff] %v3966_v36 }
 0x220   : > { %v4003_v46 = vpop.permute.xlu0 %1393  ;;  %v1096_v47 = vpop.permute.xlu1 %1095 }
 0x221   : > { %v1103_v54 = vsel %vm1101_vm2, %v1096_v47, %v3889_v8  ;;  %v1104_v55 = vsel %vm1101_vm2, %v3902_v12, %v1096_v47 }
 0x222   : > { %v1130_v60 = vmul.f32 %v1116_v39, %v1104_v55  ;;  %v1131_v61 = vmul.f32 %v1120_v40, %v1103_v54  ;;  %v1864_v62 = vmul.f32 %v1847_v41, %v1104_v55  ;;  %v1865_v63 = vmul.f32 %v1851_v42, %v1103_v54  ;;  %v4070_v55 = vld [vmem:[%s5650_s10 + $0x61] ss:$8 sm:$0xf] }
 0x224   : > { %1134 = vst [vmem:[#allocation2 + $0x188] sm:$0xf] %v1130_v60  ;;  %1135 = vst [vmem:[#allocation2 + $0x138] sm:$0xf] %v1131_v61  ;;  %v4057_v39 = vpop.permute.xlu0 %1449  ;;  %v940_v40 = vpop.permute.xlu1 %939 }
 0x225   : > { %1868 = vst [vmem:[#allocation2 + $0x58] sm:$0xf] %v1864_v62  ;;  %1869 = vst [vmem:[#allocation2 + $0xf0] sm:$0xf] %v1865_v63  ;;  %v947_v61 = vsel %vm945_vm3, %v940_v40, %v3880_v5  ;;  %v948_v62 = vsel %vm945_vm3, %v3908_v14, %v940_v40 }
 0x226   : > { %5681 = vst [vmem:[#allocation6_spill] sm:$0xff] %v4057_v39  ;;  %v4075_v60 = vld [vmem:[%s5650_s10 + $0x1] ss:$8 sm:$0xf]  ;;  %v974_v47 = vmul.f32 %v960_v44, %v948_v62  ;;  %v975_v42 = vmul.f32 %v964_v45, %v947_v61  ;;  %v1747_v41 = vmul.f32 %v1730_v48, %v948_v62  ;;  %v1748_v4 = vmul.f32 %v1734_v49, %v947_v61 }
 0x227   : > { %v4104_v45 = vld [vmem:[%s5650_s10 + $0x2] ss:$8 sm:$0xf]  ;;  %v4109_v48 = vld [vmem:[%s5650_s10 + $0x44] ss:$8 sm:$0xf] }
 0x228   : > { %v982_v49 = vrot.slane %v974_v47, 4  ;;  %v983_v61 = vrot.slane %v975_v42, 4  ;;  %v1755_v62 = vrot.slane %v1747_v41, 4  ;;  %v1756_v63 = vrot.slane %v1748_v4, 4  ;;  %v4111_v40 = vpop.permute.xlu0 %1445  ;;  %v996_v54 = vpop.permute.xlu1 %995 }
 0x229   : > { %5682 = vst [vmem:[#allocation7_spill] sm:$0xff] %v4111_v40  ;;  %v1003_v44 = vsel %vm1001_vm4, %v996_v54, %v3887_v7  ;;  %v1004_v2 = vsel %vm1001_vm4, %v3893_v9, %v996_v54 }
 0x22a   : > { %990 = vst [vmem:[#allocation2 + $0x110] sm:$0xf0] %v982_v49  ;;  %991 = vst [vmem:[#allocation2 + $0x118] sm:$0xf0] %v983_v61  ;;  %v1030_v4 = vmul.f32 %v1016_v50, %v1004_v2  ;;  %v1031_v41 = vmul.f32 %v1020_v51, %v1003_v44  ;;  %v1790_v42 = vmul.f32 %v1773_v56, %v1004_v2 }
 0x22b   : > { %1763 = vst [vmem:[#allocation2 + $0x70] sm:$0xf0] %v1755_v62  ;;  %1764 = vst [vmem:[#allocation2 + $0x78] sm:$0xf0] %v1756_v63  ;;  %v1791_v36 = vmul.f32 %v1777_v57, %v1003_v44  ;;  %v5685_v44 = vrot.slane %v4016_v52, %v3949_v32  ;;  %v5686_v57 = vrot.slane %v4021_v53, %v3943_v30 }
 0x22c   : > { %v1926_v40 = vld [vmem:[#allocation2 + $0xf0] sm:$0xf]  ;;  %v1925_v39 = vld [vmem:[#allocation2 + $0x58] sm:$0xf]  ;;  %1034 = vst [vmem:[#allocation2 + $0x150] sm:$0xf] %v1030_v4  ;;  %v4132_v50 = vpop.permute.xlu0 %1237  ;;  %v840_v51 = vpop.permute.xlu1 %839 }
 0x22d   : > { %1035 = vst [vmem:[#allocation2 + $0x108] sm:$0xf] %v1031_v41  ;;  %1794 = vst [vmem:[#allocation2 + $0x128] sm:$0xf] %v1790_v42  ;;  %3536 = vmatprep.subr.msk.mxu0 %vm438_vm0, %v1926_v40  ;;  %v847_v40 = vsel %vm845_vm5, %v840_v51, %v3900_v11  ;;  %v848_v61 = vsel %vm845_vm5, %v3914_v17, %v840_v51  ;;  %v5684_v41 = vrot.slane %v4016_v52, %v3946_v31 }
 0x22e   : > { %1795 = vst [vmem:[#allocation2 + $0x38] sm:$0xf] %v1791_v36  ;;  %5683 = vst [vmem:[#allocation8_spill] sm:$0xff] %v4132_v50  ;;  %v4146_v36 = vld [vmem:[%s5650_s10] ss:$8 sm:$0xf]  ;;  %3537 = vmatpush1.msk.msra.mxu0 %vm438_vm0, %v1925_v39  ;;  %v875_v2 = vmul.f32 %v5685_v44, %v847_v40  ;;  %v1673_v51 = vmul.f32 %v5686_v57, %v848_v61  ;;  %v5687_v39 = vrot.slane %v4021_v53, %v3946_v31 }
 0x22f   : > { %v874_v42 = vmul.f32 %v5684_v41, %v848_v61  ;;  %v4175_v4 = vld [vmem:[%s5650_s10 + $0x42] ss:$8 sm:$0xf]  ;;  %v5692_v57 = vrot.slane %v4041_v59, %v3946_v31 }
 0x230   : > { %v1674_v56 = vmul.f32 %v5687_v39, %v847_v40  ;;  %v883_v39 = vrot.slane %v875_v2, 4  ;;  %v1681_v62 = vrot.slane %v1673_v51, 4  ;;  %v4185_v49 = vpop.permute.xlu0 %1293  ;;  %v896_v1 = vpop.permute.xlu1 %895  ;;  %v5690_v51 = vrot.slane %v4036_v58, %v3949_v32 }
 0x231   : > { %v882_v40 = vrot.slane %v874_v42, 4  ;;  %5688 = vst [vmem:[#allocation9_spill] sm:$0xff] %v4185_v49  ;;  %v903_v41 = vsel %vm901_vm6, %v896_v1, %v3906_v13  ;;  %v904_v44 = vsel %vm901_vm6, %v3912_v15, %v896_v1  ;;  %v5691_v1 = vrot.slane %v4041_v59, %v3943_v30 }
 0x232   : > { %v1682_v63 = vrot.slane %v1674_v56, 4  ;;  %891 = vst [vmem:[#allocation2 + $0x130] sm:$0xf0] %v883_v39  ;;  %1689 = vst [vmem:[#allocation2 + $0x10] sm:$0xf0] %v1681_v62  ;;  %v5689_v56 = vrot.slane %v4036_v58, %v3946_v31  ;;  %v931_v61 = vmul.f32 %v5690_v51, %v903_v41  ;;  %v1717_v42 = vmul.f32 %v5692_v57, %v903_v41 }
 0x233   : > { %890 = vst [vmem:[#allocation2 + $0x168] sm:$0xf0] %v882_v40  ;;  %v1716_v54 = vmul.f32 %v5691_v1, %v904_v44  ;;  %v5694_v1 = vrot.slane %v4047_v0, %v3943_v30  ;;  %v5695_v57 = vrot.slane %v4047_v0, %v3962_v34  ;;  %v5696_v40 = vrot.slane %v4070_v55, %v3949_v32 }
 0x234   : > { %1690 = vst [vmem:[#allocation2 + $0x100] sm:$0xf0] %v1682_v63  ;;  %v930_v2 = vmul.f32 %v5689_v56, %v904_v44  ;;  %935 = vst [vmem:[#allocation2 + $0x118] sm:$0xf] %v931_v61  ;;  %v4218_v44 = vpop.permute.xlu0 %1137  ;;  %v1044_v41 = vpop.permute.xlu1 %1043 }
 0x235   : > { %1720 = vst [vmem:[#allocation2 + $0x70] sm:$0xf] %v1716_v54  ;;  %1721 = vst [vmem:[#allocation2 + $0x78] sm:$0xf] %v1717_v42  ;;  %v1046_v61 = vsel %vm1045_vm7, %v3882_v6, %v1044_v41  ;;  %v1049_v42 = vsel %vm1045_vm7, %v1044_v41, %v3895_v10  ;;  %v5697_v41 = vrot.slane %v4070_v55, %v3962_v34 }
 0x236   : > { %934 = vst [vmem:[#allocation2 + $0x110] sm:$0xf] %v930_v2  ;;  %5693 = vst [vmem:[#allocation10_spill] sm:$0xff] %v4218_v44  ;;  %v4231_v54 = vld [vmem:[%s5650_s10 + $0x41] ss:$8 sm:$0xf]  ;;  %v1073_v56 = vmul.f32 %v5694_v1, %v1049_v42  ;;  %v1076_v39 = vmul.f32 %v5695_v57, %v1046_v61  ;;  %v1823_v62 = vmul.f32 %v5696_v40, %v1046_v61 }
 0x237   : > { %v1824_v63 = vmul.f32 %v5697_v41, %v1049_v42  ;;  %v5702_v1 = vrot.slane %v4091_v3, %v3946_v31 }
 0x238   : > { %v1081_v47 = vrot.slane %v1073_v56, 4  ;;  %v1084_v44 = vrot.slane %v1076_v39, 4  ;;  %v1831_v49 = vrot.slane %v1823_v62, 4  ;;  %v4263_v61 = vpop.permute.xlu0 %1193  ;;  %v740_v50 = vpop.permute.xlu1 %739  ;;  %v5700_v39 = vrot.slane %v4075_v60, %v3949_v32 }
 0x239   : > { %v1832_v40 = vrot.slane %v1824_v63, 4  ;;  %5698 = vst [vmem:[#allocation11_spill] sm:$0xff] %v4263_v61  ;;  %v747_v42 = vsel %vm745_vm8, %v740_v50, %v3917_v19  ;;  %v748_v41 = vsel %vm745_vm8, %v3919_v20, %v740_v50  ;;  %v5699_v63 = vrot.slane %v4075_v60, %v3946_v31 }
 0x23a   : > { %1089 = vst [vmem:[#allocation2 + $0x120] sm:$0xf0] %v1081_v47  ;;  %1092 = vst [vmem:[#allocation2 + $0x60] sm:$0xf0] %v1084_v44  ;;  %v775_v57 = vmul.f32 %v5700_v39, %v747_v42  ;;  %v5701_v50 = vrot.slane %v4091_v3, %v3943_v30  ;;  %v1600_v56 = vmul.f32 %v5702_v1, %v747_v42 }
 0x23b   : > { %1839 = vst [vmem:[#allocation2 + $0x88] sm:$0xf0] %v1831_v49  ;;  %1840 = vst [vmem:[#allocation2 + $0x170] sm:$0xf0] %v1832_v40  ;;  %v774_v62 = vmul.f32 %v5699_v63, %v748_v41  ;;  %v5708_v40 = vrot.slane %v4109_v48, %v3943_v30  ;;  %v5709_v61 = vrot.slane %v4109_v48, %v3946_v31 }
 0x23c   : > { %v1599_v51 = vmul.f32 %v5701_v50, %v748_v41  ;;  %v783_v41 = vrot.slane %v775_v57, 4  ;;  %v1608_v50 = vrot.slane %v1600_v56, 4  ;;  %v4296_v2 = vpop.permute.xlu0 %1297  ;;  %v796_v1 = vpop.permute.xlu1 %795  ;;  %v4316_v57 = vld [vmem:[%s5650_s10 + $0x26] ss:$8 sm:$0xf]  ;;  %v5706_v56 = vrot.slane %v4104_v45, %v3946_v31 }
 0x23d   : > { %v782_v63 = vrot.slane %v774_v62, 4  ;;  %5703 = vst [vmem:[#allocation12_spill] sm:$0xff] %v4296_v2  ;;  %v803_v42 = vsel %vm801_vm9, %v796_v1, %v3923_v21  ;;  %v804_v49 = vsel %vm801_vm9, %v3927_v23, %v796_v1  ;;  %5705 = vst [vmem:[#allocation14_spill] sm:$0xff] %v4316_v57  ;;  %v5707_v62 = vrot.slane %v4104_v45, %v3949_v32 }
 0x23e   : > { %v1607_v39 = vrot.slane %v1599_v51, 4  ;;  %v4311_v51 = vld [vmem:[%s5650_s10 + $0x27] ss:$8 sm:$0xf]  ;;  %791 = vst [vmem:[#allocation2 + $0xd8] sm:$0xf0] %v783_v41  ;;  %v830_v1 = vmul.f32 %v5706_v56, %v804_v49  ;;  %v1642_v47 = vmul.f32 %v5708_v40, %v804_v49  ;;  %v1643_v2 = vmul.f32 %v5709_v61, %v803_v42 }
 0x23f   : > { %5704 = vst [vmem:[#allocation13_spill] sm:$0xff] %v4311_v51  ;;  %790 = vst [vmem:[#allocation2 + $0x1b0] sm:$0xf0] %v782_v63  ;;  %v831_v44 = vmul.f32 %v5707_v62, %v803_v42  ;;  %v5710_v62 = vrot.slane %v3972_v37, %v3943_v30  ;;  %v5711_v42 = vrot.slane %v3972_v37, %v3962_v34 }
 0x240   : > { %1615 = vst [vmem:[#allocation2 + $0x40] sm:$0xf0] %v1607_v39  ;;  %1616 = vst [vmem:[#allocation2 + $0xa8] sm:$0xf0] %v1608_v50  ;;  %v944_v49 = vpop.permute.xlu1 %943  ;;  %v1040_v40 = vpop.permute.xlu0 %1039  ;;  %v5712_v61 = vrot.slane %v3977_v38, %v3949_v32  ;;  %v5716_v37 = vrot.slane %v4070_v55, %v3943_v30 }
 0x241   : > { %834 = vst [vmem:[#allocation2 + $0x168] sm:$0xf] %v830_v1  ;;  %835 = vst [vmem:[#allocation2 + $0x130] sm:$0xf] %v831_v44  ;;  %v946_v44 = vsel %vm945_vm3, %v3880_v5, %v944_v49  ;;  %v1048_v1 = vsel %vm1045_vm7, %v3895_v10, %v1040_v40  ;;  %v5714_v10 = vrot.slane %v4047_v0, %v3946_v31 }
 0x242   : > { %1646 = vst [vmem:[#allocation2 + $0x10] sm:$0xf] %v1642_v47  ;;  %1647 = vst [vmem:[#allocation2 + $0x100] sm:$0xf] %v1643_v2  ;;  %v949_v2 = vsel %vm945_vm3, %v944_v49, %v3908_v14  ;;  %v1047_v47 = vsel %vm1045_vm7, %v1040_v40, %v3882_v6  ;;  %v976_v5 = vmul.f32 %v5711_v42, %v946_v44 }
 0x243   : > { %v973_v56 = vmul.f32 %v5710_v62, %v949_v2  ;;  %v1749_v14 = vmul.f32 %v5712_v61, %v946_v44  ;;  %v5713_v49 = vrot.slane %v3977_v38, %v3962_v34  ;;  %v1074_v40 = vmul.f32 %v5714_v10, %v1048_v1 }
 0x244   : > { %v5715_v62 = vrot.slane %v4047_v0, %v3949_v32  ;;  %v1821_v42 = vmul.f32 %v5716_v37, %v1048_v1  ;;  %v5717_v61 = vrot.slane %v4070_v55, %v3946_v31  ;;  %v695_v41 = vpop.permute.xlu1 %694  ;;  %v1100_v63 = vpop.permute.xlu0 %1099  ;;  %v5719_v1 = vrot.slane %v4146_v36, %v3949_v32 }
 0x245   : > { %v1750_v6 = vmul.f32 %v5713_v49, %v949_v2  ;;  %v981_v38 = vrot.slane %v973_v56, 4  ;;  %v984_v2 = vrot.slane %v976_v5, 4  ;;  %v1757_v49 = vrot.slane %v1749_v14, 4 }
 0x246   : > { %v1075_v50 = vmul.f32 %v5715_v62, %v1047_v47  ;;  %v1822_v44 = vmul.f32 %v5717_v61, %v1047_v47  ;;  %v1082_v57 = vrot.slane %v1074_v40, 4  ;;  %v1829_v29 = vrot.slane %v1821_v42, 4 }
 0x247   : > { %v1758_v39 = vrot.slane %v1750_v6, 4  ;;  %989 = vst [vmem:[#allocation2 + $0x180] sm:$0xf0] %v981_v38  ;;  %992 = vst [vmem:[#allocation2 + $0x98] sm:$0xf0] %v984_v2  ;;  %v704_v0 = vsel %vm702_vm10, %v695_v41, %v3931_v25  ;;  %v705_v55 = vsel %vm702_vm10, %v3925_v22, %v695_v41  ;;  %v1102_v56 = vsel %vm1101_vm2, %v3889_v8, %v1100_v63 }
 0x248   : > { %v1083_v10 = vrot.slane %v1075_v50, 4  ;;  %v1830_v51 = vrot.slane %v1822_v44, 4  ;;  %1765 = vst [vmem:[#allocation2 + $0xa0] sm:$0xf0] %v1757_v49  ;;  %v1105_v50 = vsel %vm1101_vm2, %v1100_v63, %v3902_v12  ;;  %1090 = vst [vmem:[#allocation2 + $0x150] sm:$0xf0] %v1082_v57  ;;  %v731_v41 = vmul.f32 %v5719_v1, %v704_v0  ;;  %v844_v42 = vpop.permute.xlu1 %843  ;;  %v1000_v61 = vpop.permute.xlu0 %999 }
 0x249   : > { %1766 = vst [vmem:[#allocation2 + $0x158] sm:$0xf0] %v1758_v39  ;;  %1837 = vst [vmem:[#allocation2 + $0x128] sm:$0xf0] %v1829_v29  ;;  %v5718_v39 = vrot.slane %v4146_v36, %v3946_v31  ;;  %v5720_v5 = vrot.slane %v4175_v4, %v3943_v30  ;;  %v5721_v14 = vrot.slane %v4175_v4, %v3946_v31 }
 0x24a   : > { %1091 = vst [vmem:[#allocation2 + $0x108] sm:$0xf0] %v1083_v10  ;;  %1838 = vst [vmem:[#allocation2 + $0x38] sm:$0xf0] %v1830_v51  ;;  %v5722_v29 = vrot.slane %v3954_v33, %v3943_v30  ;;  %v5723_v57 = vrot.slane %v3954_v33, %v3962_v34  ;;  %v5724_v6 = vrot.slane %v3959_v16, %v3949_v32 }
 0x24b   : > { %v730_v47 = vmul.f32 %v5718_v39, %v705_v55  ;;  %v1568_v8 = vmul.f32 %v5720_v5, %v705_v55  ;;  %v1569_v12 = vmul.f32 %v5721_v14, %v704_v0  ;;  %v5725_v62 = vrot.slane %v3959_v16, %v3962_v34  ;;  %735 = vst [vmem:[#allocation2 + $0xd8] sm:$0xf] %v731_v41  ;;  %v4460_v41 = vld [vmem:[%s5650_s10 + $0x40] ss:$8 sm:$0xf] }
 0x24c   : > { %v1129_v51 = vmul.f32 %v5722_v29, %v1105_v50  ;;  %v1132_v63 = vmul.f32 %v5723_v57, %v1102_v56  ;;  %v1866_v40 = vmul.f32 %v5724_v6, %v1102_v56  ;;  %v846_v44 = vsel %vm845_vm5, %v3900_v11, %v844_v42  ;;  %v1492_v29 = vpop.permute.xlu1 %1491 }
 0x24d   : > { %v1867_v37 = vmul.f32 %v5725_v62, %v1105_v50  ;;  %734 = vst [vmem:[#allocation2 + $0x1b0] sm:$0xf] %v730_v47  ;;  %1572 = vst [vmem:[#allocation2 + $0x40] sm:$0xf] %v1568_v8  ;;  %v849_v33 = vsel %vm845_vm5, %v844_v42, %v3914_v17  ;;  %v1002_v38 = vsel %vm1001_vm4, %v3887_v7, %v1000_v61 }
 0x24e   : > { %1573 = vst [vmem:[#allocation2 + $0xa8] sm:$0xf] %v1569_v12  ;;  %v1005_v16 = vsel %vm1001_vm4, %v1000_v61, %v3893_v9  ;;  %1133 = vst [vmem:[#allocation2 + $0xe0] sm:$0xf] %v1129_v51  ;;  %v5726_v2 = vrot.slane %v4016_v52, %v3943_v30  ;;  %v5727_v49 = vrot.slane %v4016_v52, %v3962_v34 }
 0x24f   : > { %1136 = vst [vmem:[#allocation2 + $0x140] sm:$0xf] %v1132_v63  ;;  %1870 = vst [vmem:[#allocation2 + $0x30] sm:$0xf] %v1866_v40  ;;  %v5728_v10 = vrot.slane %v4021_v53, %v3949_v32  ;;  %v5729_v0 = vrot.slane %v4021_v53, %v3962_v34  ;;  %v5730_v55 = vrot.slane %v3982_v18, %v3943_v30 }
 0x250   : > { %1871 = vst [vmem:[#allocation2 + $0x198] sm:$0xf] %v1867_v37  ;;  %v873_v11 = vmul.f32 %v5726_v2, %v849_v33  ;;  %v876_v17 = vmul.f32 %v5727_v49, %v846_v44  ;;  %v5731_v52 = vrot.slane %v3982_v18, %v3962_v34  ;;  %v5732_v39 = vrot.slane %v3995_v43, %v3949_v32  ;;  %v900_v18 = vpop.permute.xlu0 %899 }
 0x251   : > { %v1675_v7 = vmul.f32 %v5728_v10, %v846_v44  ;;  %v1676_v9 = vmul.f32 %v5729_v0, %v849_v33  ;;  %v1029_v56 = vmul.f32 %v5730_v55, %v1005_v16  ;;  %v5733_v53 = vrot.slane %v3995_v43, %v3962_v34  ;;  %v1922_v44 = vld [vmem:[#allocation2 + $0x38] sm:$0xff]  ;;  %v1921_v33 = vld [vmem:[#allocation2 + $0x128] sm:$0xff] }
 0x252   : > { %v1032_v50 = vmul.f32 %v5731_v52, %v1002_v38  ;;  %v1792_v47 = vmul.f32 %v5732_v39, %v1002_v38  ;;  %v881_v5 = vrot.slane %v873_v11, 4  ;;  %v884_v8 = vrot.slane %v876_v17, 4  ;;  %1951 = vmatprep.subr.mxu0 %v1922_v44 }
 0x253   : > { %v1793_v1 = vmul.f32 %v5733_v53, %v1005_v16  ;;  %v1683_v14 = vrot.slane %v1675_v7, 4  ;;  %v1684_v12 = vrot.slane %v1676_v9, 4  ;;  %1033 = vst [vmem:[#allocation2 + $0x120] sm:$0xf] %v1029_v56  ;;  %v1499_v43 = vsel %vm5678_vm11, %v1492_v29, %v3938_v28  ;;  %1952 = vmatpush1.msra.mxu0 %v1921_v33  ;;  %v744_v7 = vpop.permute.xlu1 %743  ;;  %v1918_v9 = vld [vmem:[#allocation2 + $0x78] sm:$0xff] }
 0x254   : > { %1036 = vst [vmem:[#allocation2 + $0x60] sm:$0xf] %v1032_v50  ;;  %1796 = vst [vmem:[#allocation2 + $0x88] sm:$0xf] %v1792_v47  ;;  %v1500_v51 = vsel %vm5678_vm11, %v3964_v35, %v1492_v29  ;;  %v902_v57 = vsel %vm901_vm6, %v3906_v13, %v900_v18  ;;  %v905_v63 = vsel %vm901_vm6, %v900_v18, %v3912_v15  ;;  %v800_v0 = vpop.permute.xlu0 %799  ;;  %1953 = vmatprep.subr.mxu0 %v1918_v9 }
 0x255   : > { %1797 = vst [vmem:[#allocation2 + $0x170] sm:$0xf] %v1793_v1  ;;  %889 = vst [vmem:[#allocation2 + $0x50] sm:$0xf0] %v881_v5  ;;  %v5734_v6 = vrot.slane %v4231_v54, %v3943_v30  ;;  %v5735_v62 = vrot.slane %v4231_v54, %v3946_v31  ;;  %v5736_v42 = vrot.slane %v4036_v58, %v3943_v30 }
 0x256   : > { %892 = vst [vmem:[#allocation2 + $0x48] sm:$0xf0] %v884_v8  ;;  %1691 = vst [vmem:[#allocation2 + $0x160] sm:$0xf0] %v1683_v14  ;;  %v5737_v61 = vrot.slane %v4036_v58, %v3962_v34  ;;  %v5738_v38 = vrot.slane %v4041_v59, %v3949_v32  ;;  %v5739_v2 = vrot.slane %v4041_v59, %v3962_v34  ;;  %v1927_v53 = vld [vmem:[#allocation2 + $0x30] sm:$0xf] }
 0x257   : > { %1692 = vst [vmem:[#allocation2 + $0x20] sm:$0xf0] %v1684_v12  ;;  %v1525_v40 = vmul.f32 %v5734_v6, %v1500_v51  ;;  %v1526_v37 = vmul.f32 %v5735_v62, %v1499_v43  ;;  %v929_v13 = vmul.f32 %v5736_v42, %v905_v63  ;;  %v1464_v49 = vrot.slane %v4460_v41, %v3943_v30  ;;  %v1928_v50 = vld [vmem:[#allocation2 + $0x198] sm:$0xf]  ;;  %v1917_v12 = vld [vmem:[#allocation2 + $0x70] sm:$0xff]  ;;  %v1914_v6 = vld [vmem:[#allocation2 + $0x100] sm:$0xff] }
 0x258   : > { %v932_v15 = vmul.f32 %v5737_v61, %v902_v57  ;;  %v1718_v16 = vmul.f32 %v5738_v38, %v902_v57  ;;  %v1719_v11 = vmul.f32 %v5739_v2, %v905_v63  ;;  %v1468_v17 = vrot.slane %v4460_v41, %v3946_v31  ;;  %3539 = vmatprep.subr.msk.mxu1 %vm438_vm0, %v1928_v50  ;;  %v5748_v2 = vld [vmem:[#allocation13_spill] sm:$0xff] }
 0x259   : > { %v1533_v10 = vrot.slane %v1525_v40, 4  ;;  %v1534_v58 = vrot.slane %v1526_v37, 4  ;;  %933 = vst [vmem:[#allocation2 + $0x180] sm:$0xf] %v929_v13  ;;  %v1516_v55 = vrot.slane %v4231_v54, %v3949_v32  ;;  %v1520_v59 = vrot.slane %v4231_v54, %v3962_v34  ;;  %1954 = vmatpush1.msra.mxu0 %v1917_v12  ;;  %v1913_v40 = vld [vmem:[#allocation2 + $0x10] sm:$0xff]  ;;  %3540 = vmatpush1.msk.msra.mxu1 %vm438_vm0, %v1927_v53 }
 0x25a   : > { %936 = vst [vmem:[#allocation2 + $0x98] sm:$0xf] %v932_v15  ;;  %1722 = vst [vmem:[#allocation2 + $0xa0] sm:$0xf] %v1718_v16  ;;  %v746_v56 = vsel %vm745_vm8, %v3917_v19, %v744_v7  ;;  %v749_v52 = vsel %vm745_vm8, %v744_v7, %v3919_v20  ;;  %v802_v39 = vsel %vm801_vm9, %v3923_v21, %v800_v0  ;;  %1955 = vmatprep.subr.mxu0 %v1914_v6  ;;  %v1348_v15 = vpop.permute.xlu0 %1347  ;;  %v1910_v16 = vld [vmem:[#allocation2 + $0xa8] sm:$0xff] }
 0x25b   : > { %1723 = vst [vmem:[#allocation2 + $0x158] sm:$0xf] %v1719_v11  ;;  %v805_v47 = vsel %vm801_vm9, %v800_v0, %v3927_v23  ;;  %1541 = vst [vmem:[#allocation2] sm:$0xf0] %v1533_v10  ;;  %v5740_v19 = vrot.slane %v4075_v60, %v3943_v30  ;;  %v5741_v20 = vrot.slane %v4075_v60, %v3962_v34  ;;  %v1923_v44 = vld [vmem:[#allocation2 + $0x88] sm:$0xff]  ;;  %1956 = vmatpush1.msra.mxu0 %v1913_v40  ;;  %v5751_v0 = vld [vmem:[#allocation4_spill] sm:$0xff] }
 0x25c   : > { %1542 = vst [vmem:[#allocation2 + $0x68] sm:$0xf0] %v1534_v58  ;;  %v5742_v8 = vrot.slane %v4091_v3, %v3949_v32  ;;  %v5743_v14 = vrot.slane %v4091_v3, %v3962_v34  ;;  %v5744_v29 = vrot.slane %v4104_v45, %v3943_v30  ;;  %v5745_v43 = vrot.slane %v4104_v45, %v3962_v34  ;;  %v1392_v45 = vpop.permute.xlu1 %1391  ;;  %v1924_v61 = vld [vmem:[#allocation2 + $0x170] sm:$0xff] }
 0x25d   : > { %v773_v1 = vmul.f32 %v5740_v19, %v749_v52  ;;  %v776_v5 = vmul.f32 %v5741_v20, %v746_v56  ;;  %v5746_v51 = vrot.slane %v4109_v48, %v3949_v32  ;;  %v5747_v63 = vrot.slane %v4109_v48, %v3962_v34  ;;  %2022 = vmatprep.subr.mxu1 %v1924_v61  ;;  %v4570_v20 = vld [vmem:[%s5650_s10 + $0x23] ss:$8 sm:$0xf] }
 0x25e   : > { %v1601_v21 = vmul.f32 %v5742_v8, %v746_v56  ;;  %v1602_v23 = vmul.f32 %v5743_v14, %v749_v52  ;;  %v829_v18 = vmul.f32 %v5744_v29, %v805_v47  ;;  %v832_v60 = vmul.f32 %v5745_v43, %v802_v39  ;;  %v5752_v56 = vld [vmem:[#allocation14_spill] sm:$0xff]  ;;  %1957 = vmatprep.subr.mxu0 %v1910_v16 }
 0x25f   : > { %v1644_v57 = vmul.f32 %v5746_v51, %v802_v39  ;;  %v1645_v3 = vmul.f32 %v5747_v63, %v805_v47  ;;  %v781_v62 = vrot.slane %v773_v1, 4  ;;  %v784_v37 = vrot.slane %v776_v5, 4  ;;  %v1909_v39 = vld [vmem:[#allocation2 + $0x40] sm:$0xff]  ;;  %2023 = vmatpush1.msra.mxu1 %v1923_v44 }
 0x260   : > { %v1609_v42 = vrot.slane %v1601_v21, 4  ;;  %v1610_v13 = vrot.slane %v1602_v23, 4  ;;  %833 = vst [vmem:[#allocation2 + $0x50] sm:$0xf] %v829_v18  ;;  %836 = vst [vmem:[#allocation2 + $0x48] sm:$0xf] %v832_v60  ;;  %v1399_v48 = vsel %vm1397_vm12, %v1392_v45, %v4003_v46  ;;  %v1400_v33 = vsel %vm1397_vm12, %v3929_v24, %v1392_v45  ;;  %1958 = vmatpush1.msra.mxu0 %v1909_v39  ;;  %v1448_v21 = vpop.permute.xlu1 %1447  ;;  %v1496_v23 = vpop.permute.xlu0 %1495 }
 0x261   : > { %1648 = vst [vmem:[#allocation2 + $0x160] sm:$0xf] %v1644_v57  ;;  %1649 = vst [vmem:[#allocation2 + $0x20] sm:$0xf] %v1645_v3  ;;  %v1355_v38 = vsel %vm1353_vm13, %v1348_v15, %v3933_v26  ;;  %v5749_v11 = vrot.slane %v5748_v2, %v3943_v30  ;;  %v5750_v58 = vrot.slane %v5748_v2, %v3946_v31  ;;  %v1919_v12 = vld [vmem:[#allocation2 + $0xa0] sm:$0xff]  ;;  %v5756_v60 = vld [vmem:[#allocation7_spill] sm:$0xff] }
 0x262   : > { %789 = vst [vmem:[#allocation2 + $0xb0] sm:$0xf0] %v781_v62  ;;  %792 = vst [vmem:[#allocation2 + $0x18] sm:$0xf0] %v784_v37  ;;  %v1356_v9 = vsel %vm1353_vm13, %v5751_v0, %v1348_v15  ;;  %v5753_v52 = vrot.slane %v5752_v56, %v3946_v31  ;;  %v5754_v47 = vrot.slane %v5752_v56, %v3943_v30  ;;  %v1920_v14 = vld [vmem:[#allocation2 + $0x158] sm:$0xff]  ;;  %vm1301_vm0 = vcmp.lt.s32.totalorder %v3936_v27, 1 }
 0x263   : > { %1617 = vst [vmem:[#allocation2 + $0xd0] sm:$0xf0] %v1609_v42  ;;  %1618 = vst [vmem:[#allocation2 + $0x1a0] sm:$0xf0] %v1610_v13  ;;  %v1425_v10 = vmul.f32 %v5749_v11, %v1400_v33  ;;  %v1426_v7 = vmul.f32 %v5750_v58, %v1399_v48  ;;  %v712_v19 = vrot.slane %v4146_v36, %v3943_v30  ;;  %2024 = vmatprep.subr.mxu1 %v1920_v14  ;;  %v5757_v39 = vld [vmem:[#allocation5_spill] sm:$0xff] }
 0x264   : > { %v1382_v50 = vmul.f32 %v5753_v52, %v1355_v38  ;;  %v1381_v53 = vmul.f32 %v5754_v47, %v1356_v9  ;;  %v724_v1 = vrot.slane %v4146_v36, %v3962_v34  ;;  %v1559_v29 = vrot.slane %v4175_v4, %v3949_v32  ;;  %v5755_v36 = vld [vmem:[#allocation6_spill] sm:$0xff]  ;;  %2025 = vmatpush1.msra.mxu1 %v1919_v12  ;;  %v699_v62 = vpop.permute.xlu1 %698  ;;  %v1396_v54 = vpop.permute.xlu0 %1395 }
 0x265   : > { %v1433_v5 = vrot.slane %v1425_v10, 4  ;;  %v1434_v8 = vrot.slane %v1426_v7, 4  ;;  %v1563_v18 = vrot.slane %v4175_v4, %v3962_v34  ;;  %v1455_v43 = vsel %vm5677_vm14, %v1448_v21, %v5755_v36  ;;  %v4626_v48 = vld [vmem:[%s5650_s10 + $0x24] ss:$8 sm:$0xf] }
 0x266   : > { %1386 = vst [vmem:[#allocation2 + $0xc0] sm:$0xf] %v1382_v50  ;;  %1385 = vst [vmem:[#allocation2 + $0x90] sm:$0xf] %v1381_v53  ;;  %v1456_v51 = vsel %vm5677_vm14, %v5756_v60, %v1448_v21  ;;  %v1498_v57 = vsel %vm5678_vm11, %v3938_v28, %v1496_v23  ;;  %v1501_v63 = vsel %vm5678_vm11, %v1496_v23, %v3964_v35  ;;  %v5758_v53 = vld [vmem:[#allocation8_spill] sm:$0xff]  ;;  %vm1929_vm11 = vcmask 883712  }
 0x267   : > { %1441 = vst [vmem:[#allocation2 + $0x90] sm:$0xf0] %v1433_v5  ;;  %1442 = vst [vmem:[#allocation2 + $0xc0] sm:$0xf0] %v1434_v8  ;;  %v1481_v4 = vmul.f32 %v1464_v49, %v1456_v51  ;;  %v1482_v3 = vmul.f32 %v1468_v17, %v1455_v43  ;;  %v1527_v6 = vmul.f32 %v1516_v55, %v1498_v57 }
 0x268   : > { %v1528_v28 = vmul.f32 %v1520_v59, %v1501_v63  ;;  %v1416_v35 = vrot.slane %v5748_v2, %v3949_v32  ;;  %v1420_v40 = vrot.slane %v5748_v2, %v3962_v34  ;;  %v1260_v49 = vrot.slane %v4570_v20, %v3946_v31  ;;  %v1916_v37 = vld [vmem:[#allocation2 + $0x20] sm:$0xff]  ;;  %v1244_v11 = vpop.permute.xlu0 %1243 }
 0x269   : > { %1485 = vst [vmem:[#allocation2] sm:$0xf] %v1481_v4  ;;  %1486 = vst [vmem:[#allocation2 + $0x68] sm:$0xf] %v1482_v3  ;;  %v1535_v17 = vrot.slane %v1527_v6, 4  ;;  %v1915_v59 = vld [vmem:[#allocation2 + $0x160] sm:$0xff]  ;;  %v1264_v42 = vrot.slane %v4570_v20, %v3949_v32  ;;  %v1256_v13 = vrot.slane %v4570_v20, %v3943_v30  ;;  %v703_v45 = vsel %vm702_vm10, %v3931_v25, %v699_v62 }
 0x26a   : > { %v1536_v55 = vrot.slane %v1528_v28, 4  ;;  %v706_v61 = vsel %vm702_vm10, %v699_v62, %v3925_v22  ;;  %2026 = vmatprep.subr.mxu1 %v1916_v37  ;;  %v1398_v15 = vsel %vm1397_vm12, %v4003_v46, %v1396_v54  ;;  %v1401_v44 = vsel %vm1397_vm12, %v1396_v54, %v3929_v24  ;;  %v1240_v24 = vpop.permute.xlu1 %1239  ;;  %v5759_v28 = vld [vmem:[#allocation12_spill] sm:$0xff] }
 0x26b   : > { %1543 = vst [vmem:[#allocation2 + $0x148] sm:$0xf0] %v1535_v17  ;;  %v729_v25 = vmul.f32 %v712_v19, %v706_v61  ;;  %v732_v33 = vmul.f32 %v724_v1, %v703_v45  ;;  %v1570_v38 = vmul.f32 %v1559_v29, %v703_v45  ;;  %v1571_v22 = vmul.f32 %v1563_v18, %v706_v61  ;;  %v4648_v1 = vld [vmem:[%s5650_s10 + $0x22] ss:$8 sm:$0xf] }
 0x26c   : > { %1544 = vst [vmem:[#allocation2 + $0x8] sm:$0xf0] %v1536_v55  ;;  %2027 = vmatpush1.msra.mxu1 %v1915_v59  ;;  %v1427_v16 = vmul.f32 %v1416_v35, %v1398_v15  ;;  %v1428_v2 = vmul.f32 %v1420_v40, %v1401_v44  ;;  %v1268_v46 = vrot.slane %v4570_v20, %v3962_v34  ;;  %v1352_v63 = vpop.permute.xlu0 %1351  ;;  %v5760_v40 = vld [vmem:[#allocation9_spill] sm:$0xff] }
 0x26d   : > { %733 = vst [vmem:[#allocation2 + $0xb0] sm:$0xf] %v729_v25  ;;  %736 = vst [vmem:[#allocation2 + $0x18] sm:$0xf] %v732_v33  ;;  %v1316_v10 = vrot.slane %v4626_v48, %v3946_v31  ;;  %v1320_v58 = vrot.slane %v4626_v48, %v3949_v32  ;;  %v1372_v7 = vrot.slane %v5752_v56, %v3949_v32  ;;  %v5761_v25 = vld [vmem:[#allocation11_spill] sm:$0xff] }
 0x26e   : > { %1574 = vst [vmem:[#allocation2 + $0xd0] sm:$0xf] %v1570_v38  ;;  %1575 = vst [vmem:[#allocation2 + $0x1a0] sm:$0xf] %v1571_v22  ;;  %v1376_v9 = vrot.slane %v5752_v56, %v3962_v34  ;;  %v1435_v52 = vrot.slane %v1427_v16, 4  ;;  %v1436_v50 = vrot.slane %v1428_v2, 4  ;;  %v1247_v47 = vsel %vm1245_vm15, %v1240_v24, %v5757_v39  ;;  %v1296_v57 = vpop.permute.xlu1 %1295 }
 0x26f   : > { %v1248_v19 = vsel %vm1245_vm15, %v5758_v53, %v1240_v24  ;;  %v1275_v5 = vmul.f32 %v1264_v42, %v1247_v47  ;;  %v1246_v56 = vsel %vm1245_vm15, %v5757_v39, %v1244_v11  ;;  %v1249_v8 = vsel %vm1245_vm15, %v1244_v11, %v5758_v53  ;;  %v1901_v54 = vld [vmem:[#allocation2 + $0x90] sm:$0xff] }
 0x270   : > { %v1274_v20 = vmul.f32 %v1260_v49, %v1248_v19  ;;  %1443 = vst [vmem:[#allocation2 + $0x178] sm:$0xf0] %v1435_v52  ;;  %1444 = vst [vmem:[#allocation2 + $0xc8] sm:$0xf0] %v1436_v50  ;;  %v1273_v21 = vmul.f32 %v1256_v13, %v1249_v8  ;;  %v1276_v14 = vmul.f32 %v1268_v46, %v1246_v56  ;;  %v1906_v23 = vld [vmem:[#allocation2 + $0x68] sm:$0xff]  ;;  %v1905_v12 = vld [vmem:[#allocation2] sm:$0xff]  ;;  %v1200_v15 = vpop.permute.xlu0 %1199 }
 0x271   : > { %v1472_v29 = vrot.slane %v4460_v41, %v3949_v32  ;;  %v1476_v18 = vrot.slane %v4460_v41, %v3962_v34  ;;  %v1283_v51 = vrot.slane %v1275_v5, 4  ;;  %1959 = vmatprep.subr.mxu0 %v1906_v23  ;;  %v1212_v4 = vrot.slane %v4648_v1, %v3943_v30  ;;  %v1902_v49 = vld [vmem:[#allocation2 + $0xc0] sm:$0xff]  ;;  %v5762_v47 = vld [vmem:[#allocation10_spill] sm:$0xff] }
 0x272   : > { %v1282_v43 = vrot.slane %v1274_v20, 4  ;;  %v1281_v3 = vrot.slane %v1273_v21, 4  ;;  %v1284_v6 = vrot.slane %v1276_v14, 4  ;;  %v1303_v35 = vsel %vm1301_vm0, %v1296_v57, %v5759_v28  ;;  %1960 = vmatpush1.msra.mxu0 %v1905_v12  ;;  %v1452_v61 = vpop.permute.xlu1 %1451 }
 0x273   : > { %v1304_v41 = vsel %vm1301_vm0, %v5760_v40, %v1296_v57  ;;  %1291 = vst [vmem:[#allocation2 + $0x1b8] sm:$0xf0] %v1283_v51  ;;  %v1331_v55 = vmul.f32 %v1320_v58, %v1303_v35  ;;  %v1354_v62 = vsel %vm1353_vm13, %v3933_v26, %v1352_v63  ;;  %v1357_v37 = vsel %vm1353_vm13, %v1352_v63, %v5751_v0 }
 0x274   : > { %1290 = vst [vmem:[#allocation2 + $0x1a8] sm:$0xf0] %v1282_v43  ;;  %v1330_v17 = vmul.f32 %v1316_v10, %v1304_v41  ;;  %1961 = vmatprep.subr.mxu0 %v1902_v49  ;;  %1289 = vst [vmem:[#allocation2 + $0x80] sm:$0xf0] %v1281_v3  ;;  %v1383_v59 = vmul.f32 %v1372_v7, %v1354_v62  ;;  %v1384_v42 = vmul.f32 %v1376_v9, %v1357_v37  ;;  %v1198_v24 = vpop.permute.xlu0 %1197 }
 0x275   : > { %1292 = vst [vmem:[#allocation2 + $0x28] sm:$0xf0] %v1284_v6  ;;  %1962 = vmatpush1.msra.mxu0 %v1901_v54  ;;  %v1912_v13 = vld [vmem:[#allocation2 + $0x1a0] sm:$0xff]  ;;  %v1911_v45 = vld [vmem:[#allocation2 + $0xd0] sm:$0xff]  ;;  %1335 = vst [vmem:[#allocation2 + $0x190] sm:$0xf] %v1331_v55  ;;  %v1312_v26 = vrot.slane %v4626_v48, %v3943_v30  ;;  %v1454_v0 = vsel %vm5677_vm14, %v5755_v36, %v1452_v61  ;;  %v1457_v44 = vsel %vm5677_vm14, %v1452_v61, %v5756_v60 }
 0x276   : > { %1334 = vst [vmem:[#allocation2 + $0xf8] sm:$0xf] %v1330_v17  ;;  %2028 = vmatprep.subr.mxu1 %v1912_v13  ;;  %1387 = vst [vmem:[#allocation2 + $0x178] sm:$0xf] %v1383_v59  ;;  %v1205_v33 = vsel %vm1201_vm1, %v1200_v15, %v5761_v25  ;;  %v1324_v38 = vrot.slane %v4626_v48, %v3962_v34  ;;  %v1483_v22 = vmul.f32 %v1472_v29, %v1454_v0  ;;  %v1300_v60 = vpop.permute.xlu1 %1299  ;;  %v1886_v0 = vld [vmem:[#allocation2 + $0x150] sm:$0xff] }
 0x277   : > { %1388 = vst [vmem:[#allocation2 + $0xc8] sm:$0xf] %v1384_v42  ;;  %2029 = vmatpush1.msra.mxu1 %v1911_v45  ;;  %v1484_v16 = vmul.f32 %v1476_v18, %v1457_v44  ;;  %v1229_v2 = vmul.f32 %v1212_v4, %v1205_v33  ;;  %v1224_v46 = vrot.slane %v4648_v1, %v3962_v34  ;;  %v3519_v36 = vld [vmem:[%s5650_s10 + $0x21] ss:$8 sm:$0xf]  ;;  %vm1145_vm14 = vcmp.lt.s32.totalorder %v3936_v27, 9 }
 0x278   : > { %1487 = vst [vmem:[#allocation2 + $0x148] sm:$0xf] %v1483_v22  ;;  %v1302_v11 = vsel %vm1301_vm0, %v5759_v28, %v1300_v60  ;;  %v1305_v48 = vsel %vm1301_vm0, %v1300_v60, %v5760_v40  ;;  %v1202_v10 = vsel %vm1201_vm1, %v1198_v24, %v1200_v15  ;;  %v1160_v52 = vrot.slane %v3519_v36, %v3946_v31  ;;  %v1885_v44 = vld [vmem:[#allocation2 + $0x120] sm:$0xff]  ;;  %v1887_v60 = vld [vmem:[#allocation2 + $0x108] sm:$0xff] }
 0x279   : > { %1488 = vst [vmem:[#allocation2 + $0x8] sm:$0xf] %v1484_v16  ;;  %1233 = vst [vmem:[#allocation2 + $0x80] sm:$0xf] %v1229_v2  ;;  %v1329_v58 = vmul.f32 %v1312_v26, %v1305_v48  ;;  %v1332_v7 = vmul.f32 %v1324_v38, %v1302_v11  ;;  %v1232_v9 = vmul.f32 %v1224_v46, %v1202_v10  ;;  %v1881_v33 = vld [vmem:[#allocation2 + $0x180] sm:$0xff]  ;;  %v1878_v16 = vld [vmem:[#allocation2 + $0x168] sm:$0xff] }
 0x27a   : > { %v1140_v39 = vpop.permute.xlu1 %1139  ;;  %v1216_v20 = vrot.slane %v4648_v1, %v3946_v31  ;;  %v1220_v5 = vrot.slane %v4648_v1, %v3949_v32  ;;  %v1156_v1 = vrot.slane %v3519_v36, %v3943_v30  ;;  %v1164_v40 = vrot.slane %v3519_v36, %v3949_v32  ;;  %v1877_v2 = vld [vmem:[#allocation2 + $0x50] sm:$0xff]  ;;  %v1888_v46 = vld [vmem:[#allocation2 + $0x60] sm:$0xff]  ;;  %v1884_v48 = vld [vmem:[#allocation2 + $0x98] sm:$0xff] }
 0x27b   : > { %1333 = vst [vmem:[#allocation2 + $0xe8] sm:$0xf] %v1329_v58  ;;  %1336 = vst [vmem:[#allocation2 + $0xb8] sm:$0xf] %v1332_v7  ;;  %v1148_v53 = vsel %vm1145_vm14, %v5762_v47, %v1140_v39  ;;  %v1168_v41 = vrot.slane %v3519_v36, %v3962_v34  ;;  %v1874_v36 = vld [vmem:[#allocation2 + $0x1b0] sm:$0xff]  ;;  %v1883_v10 = vld [vmem:[#allocation2 + $0x118] sm:$0xff] }
 0x27c   : > { %1236 = vst [vmem:[#allocation2 + $0x28] sm:$0xf] %v1232_v9  ;;  %v1174_v19 = vmul.f32 %v1160_v52, %v1148_v53  ;;  %v1899_v3 = vld [vmem:[#allocation2 + $0x190] sm:$0xff]  ;;  %v1880_v58 = vld [vmem:[#allocation2 + $0x48] sm:$0xff]  ;;  %v1876_v9 = vld [vmem:[#allocation2 + $0x18] sm:$0xff] }
 0x27d   : > { %v1898_v50 = vld [vmem:[#allocation2 + $0xf8] sm:$0xff]  ;;  %v1873_v11 = vld [vmem:[#allocation2 + $0xb0] sm:$0xff] }
 0x27e   : > { %1963 = vmatprep.subr.mxu0 %v1898_v50  ;;  %v1182_v21 = vrot.slane %v1174_v19, 4  ;;  %v1196_v14 = vpop.permute.xlu1 %1195  ;;  %v1904_v29 = vld [vmem:[#allocation2 + $0xc8] sm:$0xff]  ;;  %v1903_v51 = vld [vmem:[#allocation2 + $0x178] sm:$0xff]  ;;  %v1879_v7 = vld [vmem:[#allocation2 + $0x130] sm:$0xff]  ;;  %v4730_v50 = vpop.f32.mrf.mxu0 }
 0x27f   : > { %v1907_v8 = vld [vmem:[#allocation2 + $0x148] sm:$0xff]  ;;  %v1203_v23 = vsel %vm1201_vm1, %v1196_v14, %v1198_v24  ;;  %v1204_v12 = vsel %vm1201_vm1, %v5761_v25, %v1196_v14  ;;  %v1882_v25 = vld [vmem:[#allocation2 + $0x110] sm:$0xff]  ;;  %v1872_v24 = vld [vmem:[%s5643_s3] sm:$0xff] }
 0x280   : > { %v1908_v56 = vld [vmem:[#allocation2 + $0x8] sm:$0xff]  ;;  %1190 = vst [vmem:[#allocation2 + $0x188] sm:$0xf0] %v1182_v21  ;;  %v1230_v18 = vmul.f32 %v1216_v20, %v1204_v12  ;;  %v1231_v43 = vmul.f32 %v1220_v5, %v1203_v23  ;;  %v1893_v61 = vld [vmem:[#allocation2 + $0x80] sm:$0xff]  ;;  %v1875_v52 = vld [vmem:[#allocation2 + $0xd8] sm:$0xff] }
 0x281   : > { %2030 = vmatprep.subr.mxu1 %v1908_v56  ;;  %v2123_v23 = vld [vmem:[%s415_s16] sm:$0xff] }
 0x282   : > { %2031 = vmatpush1.msra.mxu1 %v1907_v8  ;;  %v1897_v57 = vld [vmem:[#allocation2 + $0xe8] sm:$0xff]  ;;  %v1900_v63 = vld [vmem:[#allocation2 + $0xb8] sm:$0xff]  ;;  %1234 = vst [vmem:[#allocation2 + $0x1a8] sm:$0xf] %v1230_v18  ;;  %1235 = vst [vmem:[#allocation2 + $0x1b8] sm:$0xf] %v1231_v43  ;;  %v1144_v4 = vpop.permute.xlu1 %1143 }
 0x283   : > { %2032 = vmatprep.subr.mxu1 %v1904_v29  ;;  %1964 = vmatpush1.msra.mxu0 %v1897_v57  ;;  %v1149_v6 = vsel %vm1145_vm14, %v1144_v4, %v5762_v47  ;;  %v1896_v28 = vld [vmem:[#allocation2 + $0x28] sm:$0xff]  ;;  %v4734_v47 = vpop.f32.mrf.mxu1 }
 0x284   : > { %2033 = vmatpush1.msra.mxu1 %v1903_v51  ;;  %v1173_v35 = vmul.f32 %v1156_v1, %v1149_v6  ;;  %5764 = vst [vmem:[#allocation4_spill] sm:$0xff] %v4734_v47 }
 0x285   : > { %2034 = vmatprep.subr.mxu1 %v1900_v63  ;;  %v4736_v20 = vpop.f32.mrf.mxu1 }
 0x286   : > { %2035 = vmatpush1.msra.mxu1 %v1899_v3  ;;  %v1181_v49 = vrot.slane %v1173_v35, 4  ;;  %v1142_v17 = vpop.permute.xlu1 %1141  ;;  %5765 = vst [vmem:[#allocation14_spill] sm:$0xff] %v4736_v20 }
 0x287   : > { %2036 = vmatprep.subr.mxu1 %v1896_v28  ;;  %v1146_v55 = vsel %vm1145_vm14, %v1142_v17, %v1144_v4  ;;  %v1147_v62 = vsel %vm1145_vm14, %v1140_v39, %v1142_v17  ;;  %v1890_v15 = vld [vmem:[#allocation2 + $0x188] sm:$0xff]  ;;  %v4732_v39 = vpop.f32.mrf.mxu0 }
 0x288   : > { %1189 = vst [vmem:[#allocation2 + $0xe0] sm:$0xf0] %v1181_v49  ;;  %v1175_v37 = vmul.f32 %v1164_v40, %v1147_v62  ;;  %v1176_v54 = vmul.f32 %v1168_v41, %v1146_v55  ;;  %5763 = vst [vmem:[#allocation13_spill] sm:$0xff] %v4732_v39  ;;  %v2113_v40 = vld [vmem:[%s411_s25] sm:$0xff] }
 0x289   : > { %v1894_v59 = vld [vmem:[#allocation2 + $0x1a8] sm:$0xff]  ;;  %v1895_v42 = vld [vmem:[#allocation2 + $0x1b8] sm:$0xff] }
 0x28a   : > { %v1183_v13 = vrot.slane %v1175_v37, 4  ;;  %v1184_v45 = vrot.slane %v1176_v54, 4  ;;  %1965 = vmatprep.subr.mxu0 %v1894_v59  ;;  %2037 = vmatpush1.msra.mxu1 %v1895_v42 }
 0x28b   : > { %1966 = vmatpush1.msra.mxu0 %v1893_v61 }
 0x28c   : > { %1191 = vst [vmem:[#allocation2 + $0x138] sm:$0xf0] %v1183_v13  ;;  %1192 = vst [vmem:[#allocation2 + $0x140] sm:$0xf0] %v1184_v45  ;;  %1967 = vmatprep.subr.mxu0 %v1890_v15 }
 0x28f   : > { %v1889_v26 = vld [vmem:[#allocation2 + $0xe0] sm:$0xff] }
 0x290   : > { %1968 = vmatpush1.msra.mxu0 %v1889_v26 }
 0x291   : > { %1969 = vmatprep.subr.mxu0 %v1886_v0 }
 0x292   : > { %1970 = vmatpush1.msra.mxu0 %v1885_v44 }
 0x293   : > { %1971 = vmatprep.subr.mxu0 %v1882_v25  ;;  %v1892_v38 = vld [vmem:[#allocation2 + $0x140] sm:$0xff]  ;;  %v1891_v22 = vld [vmem:[#allocation2 + $0x138] sm:$0xff] }
 0x294   : > { %1972 = vmatpush1.msra.mxu0 %v1881_v33  ;;  %2038 = vmatprep.subr.mxu1 %v1892_v38 }
 0x295   : > { %1973 = vmatprep.subr.mxu0 %v1878_v16  ;;  %2039 = vmatpush1.msra.mxu1 %v1891_v22 }
 0x296   : > { %1974 = vmatpush1.msra.mxu0 %v1877_v2  ;;  %2040 = vmatprep.subr.mxu1 %v1888_v46 }
 0x297   : > { %1975 = vmatprep.subr.mxu0 %v1874_v36  ;;  %2041 = vmatpush1.msra.mxu1 %v1887_v60 }
 0x298   : > { %1976 = vmatpush1.msra.mxu0 %v1873_v11  ;;  %2042 = vmatprep.subr.mxu1 %v1884_v48 }
 0x299   : > { %3538 = vmatmul.mubr.msk.f32.vlgmr.msra.gmra.mxu0 %vm1929_vm11, %v1872_v24  ;;  %2043 = vmatpush1.msra.mxu1 %v1883_v10 }
 0x29a   : > { %2044 = vmatprep.subr.mxu1 %v1880_v58 }
 0x29b   : > { %2045 = vmatpush1.msra.mxu1 %v1879_v7 }
 0x29c   : > { %2046 = vmatprep.subr.mxu1 %v1876_v9 }
 0x29d   : > { %2047 = vmatpush1.msra.mxu1 %v1875_v52 }
 0x29e   : > { %3541 = vmatmul.mubr.msk.f32.vlgmr.msra.gmra.mxu1 %vm1929_vm11, %v1872_v24  ;;  %vm3261_vm11 = vcmask 719872  }
 0x359   : > { %v2011_v53 = vpop.f32.mrf.mxu0 }
 0x35b   : > { %v2013_v19 = vpop.f32.mrf.mxu0 }
 0x35c   : > { %v2087_v5 = vadd.f32 %v2013_v19, %v2011_v53 }
 0x35e   : > { %v2082_v56 = vpop.f32.mrf.mxu1 }
 0x35f   : > { %v2088_v8 = vadd.f32 %v2087_v5, %v2082_v56 }
 0x360   : > { %v2084_v21 = vpop.f32.mrf.mxu1 }
 0x361   : > { %v2089_v14 = vadd.f32 %v2088_v8, %v2084_v21 }
 0x363   : > { %2090 = vadd.xlane.f32.xlu1 %v2089_v14 }
 0x374   : > { %2126 = vperm.xlu1 %3601, %v2123_v23  }
 0x3ec   : > { %v2091_v12 = vpop.xlane.xlu1 %2090 }
 0x3ed   : > { %v2092_v29 = vmul.f32 0.001953125, %v2091_v12 }
 0x3ef   : > { %v2093_v18 = vsub.f32 %v2011_v53, %v2092_v29  ;;  %v2094_v43 = vsub.f32 %v2013_v19, %v2092_v29  ;;  %v2095_v51 = vsub.f32 %v2082_v56, %v2092_v29  ;;  %v2096_v1 = vsub.f32 %v2084_v21, %v2092_v29 }
 0x3f0   : > { %v2127_v26 = vpop.permute.xlu1 %2126 }
 0x3f1   : > { %v2097_v57 = vmul.f32 %v2093_v18, %v2093_v18  ;;  %v2098_v63 = vmul.f32 %v2094_v43, %v2094_v43  ;;  %v2099_v4 = vmul.f32 %v2095_v51, %v2095_v51  ;;  %v2100_v6 = vmul.f32 %v2096_v1, %v2096_v1 }
 0x3f3   : > { %v2101_v3 = vadd.f32 %v2098_v63, %v2097_v57 }
 0x3f5   : > { %v2102_v28 = vadd.f32 %v2101_v3, %v2099_v4 }
 0x3f7   : > { %v2103_v35 = vadd.f32 %v2102_v28, %v2100_v6  ;;  %v424_v28 = vld [vmem:[%s5649_s9] sm:$0xff] }
 0x3f9   : > { %2104 = vadd.xlane.f32.xlu0 %v2103_v35 }
 0x40f   : > { %2116 = vperm.xlu0 %3602, %v2113_v40  }
 0x482   : > { %v2105_v41 = vpop.xlane.xlu0 %2104 }
 0x483   : > { %v2106_v49 = vmul.f32 0.001953125, %v2105_v41 }
 0x485   : > { %v2107_v17 = vadd.f32 1e-05, %v2106_v49 }
 0x487   : > { %3615 = vrsqrt.f32 %v2107_v17 }
 0x48a   : > { %v2117_v62 = vpop.permute.xlu0 %2116 }
 0x494   : > { %v3616_v55 = vpop.eup %3615 }
 0x495   : > { %v2109_v37 = vmul.f32 %v3616_v55, %v2093_v18  ;;  %v2110_v54 = vmul.f32 %v3616_v55, %v2094_v43  ;;  %v2111_v59 = vmul.f32 %v3616_v55, %v2095_v51  ;;  %v2112_v42 = vmul.f32 %v3616_v55, %v2096_v1  ;;  %v3555_v43 = vld [vmem:[%s5650_s10 + $0x27] ss:$8 sm:$0xf] }
 0x496   : > { %v2770_v57 = vrot.slane %v3555_v43, %v3946_v31  ;;  %v2766_v63 = vrot.slane %v3555_v43, %v3943_v30  ;;  %v2774_v41 = vrot.slane %v3555_v43, %v3949_v32  ;;  %v2778_v49 = vrot.slane %v3555_v43, %v3962_v34 }
 0x497   : > { %v2119_v13 = vmul.f32 %v2117_v62, %v2109_v37  ;;  %v2120_v45 = vmul.f32 %v2117_v62, %v2110_v54  ;;  %v2121_v61 = vmul.f32 %v2117_v62, %v2111_v59  ;;  %v2122_v15 = vmul.f32 %v2117_v62, %v2112_v42 }
 0x499   : > { %v2129_v0 = vadd.f32 %v2127_v26, %v2119_v13  ;;  %v2130_v44 = vadd.f32 %v2127_v26, %v2120_v45  ;;  %v2131_v25 = vadd.f32 %v2127_v26, %v2121_v61  ;;  %v2132_v33 = vadd.f32 %v2127_v26, %v2122_v15  ;;  %v3554_v13 = vld [vmem:[%s5650_s10 + $0x26] ss:$8 sm:$0xf] }
 0x49a   : > { %v2724_v15 = vrot.slane %v3554_v13, %v3943_v30  ;;  %v2728_v26 = vrot.slane %v3554_v13, %v3946_v31 }
 0x49b   : > { %v2133_v38 = vsub.f32 0.0, %v2129_v0  ;;  %v2134_v22 = vsub.f32 0.0, %v2130_v44  ;;  %v2135_v16 = vsub.f32 0.0, %v2131_v25  ;;  %v2136_v2 = vsub.f32 0.0, %v2132_v33 }
 0x49d   : > { %v2137_v46 = vmul.f32 1.442695, %v2133_v38  ;;  %v2139_v36 = vmul.f32 1.442695, %v2134_v22  ;;  %v2141_v60 = vmul.f32 1.442695, %v2135_v16  ;;  %v2732_v16 = vrot.slane %v3554_v13, %v3949_v32 }
 0x49e   : > { %v2143_v24 = vmul.f32 1.442695, %v2136_v2  ;;  %v2736_v2 = vrot.slane %v3554_v13, %v3962_v34 }
 0x49f   : > { %3617 = vpow2.f32 %v2137_v46  ;;  %v3553_v46 = vld [vmem:[%s5650_s10 + $0x24] ss:$8 sm:$0xf] }
 0x4a0   : > { %3619 = vpow2.f32 %v2139_v36 }
 0x4a1   : > { %3621 = vpow2.f32 %v2141_v60 }
 0x4a2   : > { %3623 = vpow2.f32 %v2143_v24 }
 0x4ac   : > { %v3618_v11 = vpop.eup %3617 }
 0x4ad   : > { %v3620_v48 = vpop.eup %3619  ;;  %v2145_v10 = vadd.f32 1.0, %v3618_v11 }
 0x4ae   : > { %v3622_v58 = vpop.eup %3621  ;;  %v2146_v7 = vadd.f32 1.0, %v3620_v48 }
 0x4af   : > { %v2147_v9 = vadd.f32 1.0, %v3622_v58  ;;  %3625 = vrcp.f32 %v2145_v10  ;;  %v3624_v52 = vpop.eup %3623  ;;  %v2682_v58 = vrot.slane %v3553_v46, %v3946_v31 }
 0x4b0   : > { %3627 = vrcp.f32 %v2146_v7  ;;  %v2148_v53 = vadd.f32 1.0, %v3624_v52  ;;  %v3146_v7 = vld [vmem:[%s5646_s6 + $0x8] sm:$0xff] }
 0x4b1   : > { %3629 = vrcp.f32 %v2147_v9  ;;  %3567 = vmatprep.mubr.msk.f32.mxu0 %vm3261_vm11, %v3146_v7  ;;  %3568 = vmatprep.mubr.msk.f32.mxu1 %vm3261_vm11, %v3146_v7 }
 0x4b2   : > { %3631 = vrcp.f32 %v2148_v53 }
 0x4bc   : > { %v3626_v19 = vpop.eup %3625 }
 0x4bd   : > { %v3628_v5 = vpop.eup %3627  ;;  %v4745_v56 = vmul.f32 %v3626_v19, %v2129_v0 }
 0x4be   : > { %v3630_v8 = vpop.eup %3629  ;;  %v4751_v14 = vmul.f32 %v3628_v5, %v2130_v44  ;;  %v2678_v5 = vrot.slane %v3553_v46, %v3943_v30 }
 0x4bf   : > { %v4747_v21 = vmul.f32 %v3630_v8, %v2131_v25  ;;  %2749 = vrot.lane.b32.xlu1 %v4745_v56, %s3652_s19  ;;  %v3632_v23 = vpop.eup %3631  ;;  %v2686_v8 = vrot.slane %v3553_v46, %v3949_v32 }
 0x4c0   : > { %v4761_v12 = vmul.f32 %v3632_v23, %v2132_v33  ;;  %v3552_v23 = vld [vmem:[%s5650_s10 + $0x23] ss:$8 sm:$0xf] }
 0x4c1   : > { %2711 = vrot.lane.b32.xlu0 %v4747_v21, %s3653_s20 }
 0x4c3   : > { %2751 = vrot.lane.b32.xlu1 %v4751_v14, %s3652_s19 }
 0x4c5   : > { %2661 = vrot.lane.b32.xlu0 %v4745_v56, %s3658_s26 }
 0x4c7   : > { %2753 = vrot.lane.b32.xlu1 %v4747_v21, %s3652_s19 }
 0x4c9   : > { %2665 = vrot.lane.b32.xlu0 %v4747_v21, %s3658_s26 }
 0x4cb   : > { %2755 = vrot.lane.b32.xlu1 %v4761_v12, %s3652_s19  ;;  %s5766_s19 = smov 65  }
 0x4cd   : > { %2619 = vrot.lane.b32.xlu0 %v4745_v56, %s3655_s22 }
 0x4cf   : > { %2707 = vrot.lane.b32.xlu1 %v4745_v56, %s3653_s20 }
 0x4d1   : > { %2623 = vrot.lane.b32.xlu0 %v4747_v21, %s3655_s22 }
 0x4d3   : > { %2709 = vrot.lane.b32.xlu1 %v4751_v14, %s3653_s20 }
 0x4d5   : > { %2577 = vrot.lane.b32.xlu0 %v4745_v56, %s3660_s24 }
 0x4d7   : > { %2713 = vrot.lane.b32.xlu1 %v4761_v12, %s3653_s20 }
 0x4d9   : > { %2581 = vrot.lane.b32.xlu0 %v4747_v21, %s3660_s24 }
 0x4db   : > { %2663 = vrot.lane.b32.xlu1 %v4751_v14, %s3658_s26 }
 0x4dd   : > { %2535 = vrot.lane.b32.xlu0 %v4745_v56, %s3659_s23 }
 0x4df   : > { %2667 = vrot.lane.b32.xlu1 %v4761_v12, %s3658_s26 }
 0x4e1   : > { %2539 = vrot.lane.b32.xlu0 %v4747_v21, %s3659_s23 }
 0x4e3   : > { %2621 = vrot.lane.b32.xlu1 %v4751_v14, %s3655_s22 }
 0x4e5   : > { %2493 = vrot.lane.b32.xlu0 %v4745_v56, %s3646_s30 }
 0x4e7   : > { %2625 = vrot.lane.b32.xlu1 %v4761_v12, %s3655_s22 }
 0x4e9   : > { %2497 = vrot.lane.b32.xlu0 %v4747_v21, %s3646_s30 }
 0x4eb   : > { %2579 = vrot.lane.b32.xlu1 %v4751_v14, %s3660_s24 }
 0x4ed   : > { %2451 = vrot.lane.b32.xlu0 %v4745_v56, %s3644_s28 }
 0x4ef   : > { %2583 = vrot.lane.b32.xlu1 %v4761_v12, %s3660_s24 }
 0x4f1   : > { %2455 = vrot.lane.b32.xlu0 %v4747_v21, %s3644_s28 }
 0x4f3   : > { %2537 = vrot.lane.b32.xlu1 %v4751_v14, %s3659_s23 }
 0x4f5   : > { %2409 = vrot.lane.b32.xlu0 %v4745_v56, %s3645_s29 }
 0x4f7   : > { %2541 = vrot.lane.b32.xlu1 %v4761_v12, %s3659_s23 }
 0x4f9   : > { %2413 = vrot.lane.b32.xlu0 %v4747_v21, %s3645_s29 }
 0x4fb   : > { %2495 = vrot.lane.b32.xlu1 %v4751_v14, %s3646_s30 }
 0x4fd   : > { %2367 = vrot.lane.b32.xlu0 %v4745_v56, %s3643_s27 }
 0x4ff   : > { %2499 = vrot.lane.b32.xlu1 %v4761_v12, %s3646_s30  ;;  %s5767_s30 = smov 71  }
 0x501   : > { %2371 = vrot.lane.b32.xlu0 %v4747_v21, %s3643_s27 }
 0x503   : > { %2453 = vrot.lane.b32.xlu1 %v4751_v14, %s3644_s28 }
 0x505   : > { %2325 = vrot.lane.b32.xlu0 %v4745_v56, %s3648_s13 }
 0x507   : > { %2457 = vrot.lane.b32.xlu1 %v4761_v12, %s3644_s28  ;;  %s5768_s28 = smov 72  }
 0x509   : > { %2329 = vrot.lane.b32.xlu0 %v4747_v21, %s3648_s13 }
 0x50b   : > { %2411 = vrot.lane.b32.xlu1 %v4751_v14, %s3645_s29 }
 0x50d   : > { %2283 = vrot.lane.b32.xlu0 %v4745_v56, %s5766_s19 }
 0x50f   : > { %2415 = vrot.lane.b32.xlu1 %v4761_v12, %s3645_s29  ;;  %s5769_s29 = smov 73  }
 0x511   : > { %2287 = vrot.lane.b32.xlu0 %v4747_v21, %s5766_s19 }
 0x513   : > { %2369 = vrot.lane.b32.xlu1 %v4751_v14, %s3643_s27 }
 0x515   : > { %2241 = vrot.lane.b32.xlu0 %v4745_v56, %s5767_s30 }
 0x517   : > { %2373 = vrot.lane.b32.xlu1 %v4761_v12, %s3643_s27  ;;  %s5770_s27 = smov 119  }
 0x519   : > { %2245 = vrot.lane.b32.xlu0 %v4747_v21, %s5767_s30 }
 0x51b   : > { %2327 = vrot.lane.b32.xlu1 %v4751_v14, %s3648_s13 }
 0x51d   : > { %2199 = vrot.lane.b32.xlu0 %v4745_v56, %s5768_s28 }
 0x51f   : > { %2331 = vrot.lane.b32.xlu1 %v4761_v12, %s3648_s13  ;;  %s5771_s13 = smov 120  }
 0x521   : > { %2203 = vrot.lane.b32.xlu0 %v4747_v21, %s5768_s28 }
 0x523   : > { %2285 = vrot.lane.b32.xlu1 %v4751_v14, %s5766_s19 }
 0x525   : > { %2157 = vrot.lane.b32.xlu0 %v4745_v56, %s5769_s29 }
 0x527   : > { %2289 = vrot.lane.b32.xlu1 %v4761_v12, %s5766_s19 }
 0x529   : > { %2161 = vrot.lane.b32.xlu0 %v4747_v21, %s5769_s29 }
 0x52b   : > { %2243 = vrot.lane.b32.xlu1 %v4751_v14, %s5767_s30 }
 0x52d   : > { %2833 = vrot.lane.b32.xlu0 %v4745_v56, %s5770_s27 }
 0x52f   : > { %2247 = vrot.lane.b32.xlu1 %v4761_v12, %s5767_s30  ;;  %s420_s30 = scalar_lea.vmem %s5651_s11, %s3572_s15 }
 0x531   : > { %2837 = vrot.lane.b32.xlu0 %v4747_v21, %s5770_s27  ;;  %v2750_v29 = vpop.permute.xlu1 %2749 }
 0x533   : > { %v2712_v18 = vpop.permute.xlu0 %2711  ;;  %2201 = vrot.lane.b32.xlu1 %v4751_v14, %s5768_s28 }
 0x535   : > { %2791 = vrot.lane.b32.xlu0 %v4745_v56, %s5771_s13  ;;  %v2752_v51 = vpop.permute.xlu1 %2751 }
 0x536   : > { %v2759_v4 = vsel %vm1397_vm12, %v2750_v29, %v2752_v51 }
 0x537   : > { %v4876_v1 = vpop.permute.xlu0 %2661  ;;  %2205 = vrot.lane.b32.xlu1 %v4761_v12, %s5768_s28  ;;  %v2783_v17 = vmul.f32 %v2766_v63, %v2759_v4  ;;  %v2640_v63 = vrot.slane %v3552_v23, %v3946_v31 }
 0x539   : > { %2795 = vrot.lane.b32.xlu0 %v4747_v21, %s5771_s13  ;;  %v2754_v3 = vpop.permute.xlu1 %2753 }
 0x53a   : > { %v2758_v6 = vsel %vm1397_vm12, %v2752_v51, %v2754_v3 }
 0x53b   : > { %v4891_v35 = vpop.permute.xlu0 %2665  ;;  %v2784_v40 = vmul.f32 %v2770_v57, %v2758_v6  ;;  %2159 = vrot.lane.b32.xlu1 %v4751_v14, %s5769_s29 }
 0x53d   : > { %427 = vperm.xlu0 %3602, %v424_v28   ;;  %3265 = vmatprep.subr.mxu0 %v2784_v40  ;;  %v2756_v55 = vpop.permute.xlu1 %2755  ;;  %v2648_v40 = vrot.slane %v3552_v23, %v3962_v34 }
 0x53e   : > { %v2757_v62 = vsel %vm1397_vm12, %v2754_v3, %v2756_v55  ;;  %v2760_v37 = vsel %vm1397_vm12, %v2756_v55, %v2750_v29  ;;  %3266 = vmatpush1.msra.mxu0 %v2783_v17 }
 0x53f   : > { %v4901_v54 = vpop.permute.xlu0 %2619  ;;  %v2785_v59 = vmul.f32 %v2774_v41, %v2757_v62  ;;  %v2786_v42 = vmul.f32 %v2778_v49, %v2760_v37  ;;  %2163 = vrot.lane.b32.xlu1 %v4761_v12, %s5769_s29  ;;  %v2644_v41 = vrot.slane %v3552_v23, %v3949_v32  ;;  %v3551_v49 = vld [vmem:[%s5650_s10 + $0x22] ss:$8 sm:$0xf] }
 0x541   : > { %3336 = vmatprep.subr.mxu1 %v2786_v42  ;;  %v2708_v45 = vpop.permute.xlu1 %2707 }
 0x542   : > { %3337 = vmatpush1.msra.mxu1 %v2785_v59 }
 0x543   : > { %v4908_v61 = vpop.permute.xlu0 %2623  ;;  %2835 = vrot.lane.b32.xlu1 %v4751_v14, %s5770_s27 }
 0x545   : > { %v2710_v0 = vpop.permute.xlu1 %2709 }
 0x546   : > { %v2716_v44 = vsel %vm1353_vm13, %v2710_v0, %v2712_v18  ;;  %v2717_v25 = vsel %vm1353_vm13, %v2708_v45, %v2710_v0 }
 0x547   : > { %v4918_v33 = vpop.permute.xlu0 %2577  ;;  %v2741_v38 = vmul.f32 %v2724_v15, %v2717_v25  ;;  %v2742_v22 = vmul.f32 %v2728_v26, %v2716_v44  ;;  %2839 = vrot.lane.b32.xlu1 %v4761_v12, %s5770_s27  ;;  %v2594_v25 = vrot.slane %v3551_v49, %v3943_v30 }
 0x549   : > { %3267 = vmatprep.subr.mxu0 %v2742_v22  ;;  %v2714_v36 = vpop.permute.xlu1 %2713  ;;  %v3550_v22 = vld [vmem:[%s5650_s10 + $0x21] ss:$8 sm:$0xf] }
 0x54a   : > { %v2715_v60 = vsel %vm1353_vm13, %v2712_v18, %v2714_v36  ;;  %v2718_v24 = vsel %vm1353_vm13, %v2714_v36, %v2708_v45  ;;  %3268 = vmatpush1.msra.mxu0 %v2741_v38  ;;  %v2598_v45 = vrot.slane %v3551_v49, %v3946_v31  ;;  %v2602_v38 = vrot.slane %v3551_v49, %v3949_v32 }
 0x54b   : > { %v4931_v11 = vpop.permute.xlu0 %2581  ;;  %v2743_v48 = vmul.f32 %v2732_v16, %v2715_v60  ;;  %v2744_v10 = vmul.f32 %v2736_v2, %v2718_v24  ;;  %2793 = vrot.lane.b32.xlu1 %v4751_v14, %s5771_s13  ;;  %3269 = vmatprep.subr.mxu0 %v4751_v14  ;;  %v3255_v14 = vld [vmem:[%s5647_s7] sm:$0xff] }
 0x54c   : > { %3270 = vmatpush1.msra.mxu0 %v4745_v56  ;;  %v2690_v56 = vrot.slane %v3553_v46, %v3962_v34 }
 0x54d   : > { %3338 = vmatprep.subr.mxu1 %v2744_v10  ;;  %v2664_v9 = vpop.permute.xlu1 %2663  ;;  %v2556_v10 = vrot.slane %v3550_v22, %v3946_v31 }
 0x54e   : > { %v2671_v52 = vsel %vm1301_vm0, %v4876_v1, %v2664_v9  ;;  %3339 = vmatpush1.msra.mxu1 %v2743_v48 }
 0x54f   : > { %v4944_v53 = vpop.permute.xlu0 %2535  ;;  %v2696_v19 = vmul.f32 %v2682_v58, %v2671_v52  ;;  %2797 = vrot.lane.b32.xlu1 %v4761_v12, %s5771_s13  ;;  %3340 = vmatprep.subr.mxu1 %v4761_v12  ;;  %v2670_v12 = vsel %vm1301_vm0, %v2664_v9, %v4891_v35 }
 0x550   : > { %3341 = vmatpush1.msra.mxu1 %v4747_v21  ;;  %v2697_v4 = vmul.f32 %v2686_v8, %v2670_v12 }
 0x551   : > { %3271 = vmatprep.subr.mxu0 %v2696_v19  ;;  %v2668_v29 = vpop.permute.xlu1 %2667  ;;  %v2552_v19 = vrot.slane %v3550_v22, %v3943_v30 }
 0x552   : > { %v2669_v18 = vsel %vm1301_vm0, %v4891_v35, %v2668_v29  ;;  %v2672_v21 = vsel %vm1301_vm0, %v2668_v29, %v4876_v1  ;;  %v2636_v1 = vrot.slane %v3552_v23, %v3943_v30 }
 0x553   : > { %v4968_v43 = vpop.permute.xlu0 %2539  ;;  %v2695_v51 = vmul.f32 %v2678_v5, %v2672_v21  ;;  %v2698_v57 = vmul.f32 %v2690_v56, %v2669_v18  ;;  %3258 = vperm.xlu1 %3601, %v3255_v14   ;;  %v2560_v5 = vrot.slane %v3550_v22, %v3949_v32  ;;  %v3549_v56 = vld [vmem:[%s5650_s10 + $0x20] ss:$8 sm:$0xf] }
 0x555   : > { %3272 = vmatpush1.msra.mxu0 %v2695_v51  ;;  %3342 = vmatprep.subr.mxu1 %v2698_v57  ;;  %v2622_v3 = vpop.permute.xlu1 %2621  ;;  %v2514_v51 = vrot.slane %v3549_v56, %v3946_v31 }
 0x556   : > { %v2629_v6 = vsel %vm1245_vm15, %v4901_v54, %v2622_v3  ;;  %3343 = vmatpush1.msra.mxu1 %v2697_v4  ;;  %v2628_v17 = vsel %vm1245_vm15, %v2622_v3, %v4908_v61 }
 0x557   : > { %v4974_v28 = vpop.permute.xlu0 %2493  ;;  %v2654_v35 = vmul.f32 %v2640_v63, %v2629_v6  ;;  %v2655_v15 = vmul.f32 %v2644_v41, %v2628_v17  ;;  %v2522_v6 = vrot.slane %v3549_v56, %v3962_v34 }
 0x559   : > { %3273 = vmatprep.subr.mxu0 %v2654_v35  ;;  %v2626_v55 = vpop.permute.xlu1 %2625  ;;  %v2518_v35 = vrot.slane %v3549_v56, %v3949_v32 }
 0x55a   : > { %v2627_v62 = vsel %vm1245_vm15, %v4908_v61, %v2626_v55  ;;  %v2630_v37 = vsel %vm1245_vm15, %v2626_v55, %v4901_v54  ;;  %v2606_v54 = vrot.slane %v3551_v49, %v3962_v34 }
 0x55b   : > { %v2498_v59 = vpop.permute.xlu0 %2497  ;;  %v2653_v42 = vmul.f32 %v2636_v1, %v2630_v37  ;;  %v2656_v13 = vmul.f32 %v2648_v40, %v2627_v62  ;;  %v3548_v1 = vld [vmem:[%s5650_s10 + $0x7] ss:$8 sm:$0xf] }
 0x55d   : > { %3274 = vmatpush1.msra.mxu0 %v2653_v42  ;;  %3344 = vmatprep.subr.mxu1 %v2656_v13  ;;  %v2580_v26 = vpop.permute.xlu1 %2579  ;;  %v2472_v42 = vrot.slane %v3548_v1, %v3946_v31 }
 0x55e   : > { %v2587_v0 = vsel %vm1201_vm1, %v4918_v33, %v2580_v26  ;;  %3345 = vmatpush1.msra.mxu1 %v2655_v15  ;;  %v2586_v16 = vsel %vm1201_vm1, %v2580_v26, %v4931_v11  ;;  %v2468_v26 = vrot.slane %v3548_v1, %v3943_v30 }
 0x55f   : > { %v4995_v44 = vpop.permute.xlu0 %2451  ;;  %v2612_v61 = vmul.f32 %v2598_v45, %v2587_v0  ;;  %v2613_v58 = vmul.f32 %v2602_v38, %v2586_v16  ;;  %v2480_v0 = vrot.slane %v3548_v1, %v3962_v34 }
 0x561   : > { %3275 = vmatprep.subr.mxu0 %v2612_v61  ;;  %v2584_v2 = vpop.permute.xlu1 %2583  ;;  %v2476_v61 = vrot.slane %v3548_v1, %v3949_v32 }
 0x562   : > { %v2585_v46 = vsel %vm1201_vm1, %v4931_v11, %v2584_v2  ;;  %v2588_v36 = vsel %vm1201_vm1, %v2584_v2, %v4918_v33  ;;  %v2564_v33 = vrot.slane %v3550_v22, %v3962_v34 }
 0x563   : > { %v2456_v60 = vpop.permute.xlu0 %2455  ;;  %v2611_v24 = vmul.f32 %v2594_v25, %v2588_v36  ;;  %v2614_v48 = vmul.f32 %v2606_v54, %v2585_v46  ;;  %v3547_v25 = vld [vmem:[%s5650_s10 + $0x6] ss:$8 sm:$0xf] }
 0x564   : > { %v2430_v36 = vrot.slane %v3547_v25, %v3946_v31 }
 0x565   : > { %3276 = vmatpush1.msra.mxu0 %v2611_v24  ;;  %3346 = vmatprep.subr.mxu1 %v2614_v48  ;;  %v2538_v7 = vpop.permute.xlu1 %2537 }
 0x566   : > { %v2545_v9 = vsel %vm1145_vm14, %v4944_v53, %v2538_v7  ;;  %3347 = vmatpush1.msra.mxu1 %v2613_v58  ;;  %v2544_v8 = vsel %vm1145_vm14, %v2538_v7, %v4968_v43  ;;  %v2426_v58 = vrot.slane %v3547_v25, %v3943_v30  ;;  %v2438_v7 = vrot.slane %v3547_v25, %v3962_v34 }
 0x567   : > { %v5016_v52 = vpop.permute.xlu0 %2409  ;;  %v2570_v11 = vmul.f32 %v2556_v10, %v2545_v9  ;;  %v2571_v57 = vmul.f32 %v2560_v5, %v2544_v8  ;;  %v2434_v9 = vrot.slane %v3547_v25, %v3949_v32  ;;  %v3544_v25 = vld [vmem:[%s5650_s10 + $0x3] ss:$8 sm:$0xf] }
 0x569   : > { %3277 = vmatprep.subr.mxu0 %v2570_v11  ;;  %v2542_v14 = vpop.permute.xlu1 %2541  ;;  %v3546_v11 = vld [vmem:[%s5650_s10 + $0x5] ss:$8 sm:$0xf] }
 0x56a   : > { %v2543_v23 = vsel %vm1145_vm14, %v4968_v43, %v2542_v14  ;;  %v2546_v12 = vsel %vm1145_vm14, %v2542_v14, %v4944_v53  ;;  %v2510_v53 = vrot.slane %v3549_v56, %v3943_v30 }
 0x56b   : > { %v2414_v29 = vpop.permute.xlu0 %2413  ;;  %v2569_v18 = vmul.f32 %v2552_v19, %v2546_v12  ;;  %v2572_v21 = vmul.f32 %v2564_v33, %v2543_v23  ;;  %v2388_v12 = vrot.slane %v3546_v11, %v3946_v31 }
 0x56d   : > { %3278 = vmatpush1.msra.mxu0 %v2569_v18  ;;  %3348 = vmatprep.subr.mxu1 %v2572_v21  ;;  %v2496_v63 = vpop.permute.xlu1 %2495 }
 0x56e   : > { %v5037_v4 = vsel %vm1101_vm2, %v4974_v28, %v2496_v63  ;;  %3349 = vmatpush1.msra.mxu1 %v2571_v57  ;;  %v5050_v40 = vsel %vm1101_vm2, %v2496_v63, %v2498_v59  ;;  %v2396_v57 = vrot.slane %v3546_v11, %v3962_v34 }
 0x56f   : > { %v5039_v43 = vpop.permute.xlu0 %2367  ;;  %v2528_v3 = vmul.f32 %v2514_v51, %v5037_v4  ;;  %v2529_v13 = vmul.f32 %v2518_v35, %v5050_v40  ;;  %v2384_v51 = vrot.slane %v3546_v11, %v3943_v30 }
 0x571   : > { %3279 = vmatprep.subr.mxu0 %v2528_v3  ;;  %v2500_v41 = vpop.permute.xlu1 %2499  ;;  %v2392_v3 = vrot.slane %v3546_v11, %v3949_v32  ;;  %v2300_v11 = vrot.slane %v3544_v25, %v3943_v30 }
 0x572   : > { %v5054_v49 = vsel %vm1101_vm2, %v2498_v59, %v2500_v41  ;;  %v5059_v17 = vsel %vm1101_vm2, %v2500_v41, %v4974_v28  ;;  %vm5800_vm2 = vcmp.lt.s32.totalorder %v3936_v27, 119 }
 0x573   : > { %v2372_v55 = vpop.permute.xlu0 %2371  ;;  %v2527_v62 = vmul.f32 %v2510_v53, %v5059_v17  ;;  %v2530_v37 = vmul.f32 %v2522_v6, %v5054_v49  ;;  %v3545_v53 = vld [vmem:[%s5650_s10 + $0x4] ss:$8 sm:$0xf] }
 0x575   : > { %3280 = vmatpush1.msra.mxu0 %v2527_v62  ;;  %3350 = vmatprep.subr.mxu1 %v2530_v37  ;;  %v2454_v45 = vpop.permute.xlu1 %2453 }
 0x576   : > { %v5068_v59 = vsel %vm1045_vm7, %v4995_v44, %v2454_v45  ;;  %3351 = vmatpush1.msra.mxu1 %v2529_v13  ;;  %v5081_v54 = vsel %vm1045_vm7, %v2454_v45, %v2456_v60 }
 0x577   : > { %v5070_v28 = vpop.permute.xlu0 %2325  ;;  %v2486_v15 = vmul.f32 %v2472_v42, %v5068_v59  ;;  %v2487_v24 = vmul.f32 %v2476_v61, %v5081_v54  ;;  %v2346_v42 = vrot.slane %v3545_v53, %v3946_v31  ;;  %v2350_v61 = vrot.slane %v3545_v53, %v3949_v32 }
 0x579   : > { %3281 = vmatprep.subr.mxu0 %v2486_v15  ;;  %v2458_v38 = vpop.permute.xlu1 %2457 }
 0x57a   : > { %v5085_v22 = vsel %vm1045_vm7, %v2456_v60, %v2458_v38  ;;  %v5090_v16 = vsel %vm1045_vm7, %v2458_v38, %v4995_v44 }
 0x57b   : > { %v2485_v2 = vmul.f32 %v2468_v26, %v5090_v16  ;;  %v2488_v46 = vmul.f32 %v2480_v0, %v5085_v22  ;;  %v2330_v48 = vpop.permute.xlu0 %2329  ;;  %v2342_v26 = vrot.slane %v3545_v53, %v3943_v30  ;;  %v2354_v0 = vrot.slane %v3545_v53, %v3962_v34 }
 0x57d   : > { %3282 = vmatpush1.msra.mxu0 %v2485_v2  ;;  %3352 = vmatprep.subr.mxu1 %v2488_v46  ;;  %v2412_v10 = vpop.permute.xlu1 %2411 }
 0x57e   : > { %v5099_v60 = vsel %vm1001_vm4, %v5016_v52, %v2412_v10  ;;  %3353 = vmatpush1.msra.mxu1 %v2487_v24  ;;  %v5110_v19 = vsel %vm1001_vm4, %v2412_v10, %v2414_v29 }
 0x57f   : > { %v2444_v44 = vmul.f32 %v2430_v36, %v5099_v60  ;;  %v5112_v5 = vpop.permute.xlu0 %2283  ;;  %v2445_v18 = vmul.f32 %v2434_v9, %v5110_v19 }
 0x581   : > { %3283 = vmatprep.subr.mxu0 %v2444_v44  ;;  %v2416_v33 = vpop.permute.xlu1 %2415  ;;  %v2304_v44 = vrot.slane %v3544_v25, %v3946_v31 }
 0x582   : > { %v5116_v56 = vsel %vm1001_vm4, %v2414_v29, %v2416_v33  ;;  %v5121_v8 = vsel %vm1001_vm4, %v2416_v33, %v5016_v52  ;;  %v2312_v33 = vrot.slane %v3544_v25, %v3962_v34  ;;  %vm5802_vm4 = vmmov %vm5800_vm2 }
 0x583   : > { %v2443_v14 = vmul.f32 %v2426_v58, %v5121_v8  ;;  %v2446_v23 = vmul.f32 %v2438_v7, %v5116_v56  ;;  %v2288_v63 = vpop.permute.xlu0 %2287 }
 0x585   : > { %3284 = vmatpush1.msra.mxu0 %v2443_v14  ;;  %3354 = vmatprep.subr.mxu1 %v2446_v23  ;;  %v2370_v21 = vpop.permute.xlu1 %2369  ;;  %v2308_v14 = vrot.slane %v3544_v25, %v3949_v32  ;;  %v3543_v23 = vld [vmem:[%s5650_s10 + $0x2] ss:$8 sm:$0xf] }
 0x586   : > { %v5130_v29 = vsel %vm945_vm3, %v5039_v43, %v2370_v21  ;;  %3355 = vmatpush1.msra.mxu1 %v2445_v18  ;;  %v5141_v6 = vsel %vm945_vm3, %v2370_v21, %v2372_v55  ;;  %v2262_v53 = vrot.slane %v3543_v23, %v3946_v31 }
 0x587   : > { %v2402_v52 = vmul.f32 %v2388_v12, %v5130_v29  ;;  %v2403_v13 = vmul.f32 %v2392_v3, %v5141_v6  ;;  %v2242_v15 = vpop.permute.xlu0 %2241 }
 0x589   : > { %3285 = vmatprep.subr.mxu0 %v2402_v52  ;;  %v2374_v35 = vpop.permute.xlu1 %2373 }
 0x58a   : > { %v5145_v1 = vsel %vm945_vm3, %v2372_v55, %v2374_v35  ;;  %v5150_v41 = vsel %vm945_vm3, %v2374_v35, %v5039_v43  ;;  %vm5801_vm3 = vmmov %vm5800_vm2 }
 0x58b   : > { %v2401_v62 = vmul.f32 %v2384_v51, %v5150_v41  ;;  %v2404_v37 = vmul.f32 %v2396_v57, %v5145_v1  ;;  %v2246_v58 = vpop.permute.xlu0 %2245 }
 0x58d   : > { %3286 = vmatpush1.msra.mxu0 %v2401_v62  ;;  %3356 = vmatprep.subr.mxu1 %v2404_v37  ;;  %v2328_v45 = vpop.permute.xlu1 %2327 }
 0x58e   : > { %v5159_v55 = vsel %vm901_vm6, %v5070_v28, %v2328_v45  ;;  %3357 = vmatpush1.msra.mxu1 %v2403_v13  ;;  %v5170_v38 = vsel %vm901_vm6, %v2328_v45, %v2330_v48  ;;  %v2266_v45 = vrot.slane %v3543_v23, %v3949_v32 }
 0x58f   : > { %v2360_v43 = vmul.f32 %v2346_v42, %v5159_v55  ;;  %v2361_v7 = vmul.f32 %v2350_v61, %v5170_v38  ;;  %v2200_v21 = vpop.permute.xlu0 %2199  ;;  %v2270_v42 = vrot.slane %v3543_v23, %v3962_v34 }
 0x591   : > { %3287 = vmatprep.subr.mxu0 %v2360_v43  ;;  %v2332_v2 = vpop.permute.xlu1 %2331  ;;  %v3542_v43 = vld [vmem:[%s5650_s10 + $0x1] ss:$8 sm:$0xf] }
 0x592   : > { %v5174_v46 = vsel %vm901_vm6, %v2330_v48, %v2332_v2  ;;  %v5179_v36 = vsel %vm901_vm6, %v2332_v2, %v5070_v28  ;;  %vm5804_vm6 = vmmov %vm5800_vm2 }
 0x593   : > { %v2359_v24 = vmul.f32 %v2342_v26, %v5179_v36  ;;  %v2362_v10 = vmul.f32 %v2354_v0, %v5174_v46  ;;  %v2204_v13 = vpop.permute.xlu0 %2203 }
 0x595   : > { %3288 = vmatpush1.msra.mxu0 %v2359_v24  ;;  %3358 = vmatprep.subr.mxu1 %v2362_v10  ;;  %v2286_v9 = vpop.permute.xlu1 %2285  ;;  %v2220_v10 = vrot.slane %v3542_v43, %v3946_v31 }
 0x596   : > { %v5188_v48 = vsel %vm845_vm5, %v5112_v5, %v2286_v9  ;;  %3359 = vmatpush1.msra.mxu1 %v2361_v7  ;;  %v5199_v12 = vsel %vm845_vm5, %v2286_v9, %v2288_v63  ;;  %v5244_v7 = vld [vmem:[%s5650_s10 + $0x62] ss:$8 sm:$0xf] }
 0x597   : > { %v2318_v28 = vmul.f32 %v2304_v44, %v5188_v48  ;;  %v2319_v35 = vmul.f32 %v2308_v14, %v5199_v12  ;;  %v5251_v9 = vpop.permute.xlu0 %2157  ;;  %v2228_v14 = vrot.slane %v3542_v43, %v3962_v34 }
 0x599   : > { %3289 = vmatprep.subr.mxu0 %v2318_v28  ;;  %v2290_v18 = vpop.permute.xlu1 %2289 }
 0x59a   : > { %v5203_v52 = vsel %vm845_vm5, %v2288_v63, %v2290_v18  ;;  %v5208_v51 = vsel %vm845_vm5, %v2290_v18, %v5112_v5  ;;  %v2258_v5 = vrot.slane %v3543_v23, %v3943_v30  ;;  %v3124_v18 = vrot.slane %v5244_v7, %v3946_v31 }
 0x59b   : > { %v2317_v57 = vmul.f32 %v2300_v11, %v5208_v51  ;;  %v2320_v3 = vmul.f32 %v2312_v33, %v5203_v52  ;;  %v2216_v33 = vrot.slane %v3542_v43, %v3943_v30  ;;  %vm5803_vm5 = vcmp.lt.s32.totalorder %v3936_v27, 120 }
 0x59c   : > { %vm5805_vm7 = vmmov %vm5803_vm5 }
 0x59d   : > { %3290 = vmatpush1.msra.mxu0 %v2317_v57  ;;  %3360 = vmatprep.subr.mxu1 %v2320_v3  ;;  %v2244_v62 = vpop.permute.xlu1 %2243  ;;  %v2224_v57 = vrot.slane %v3542_v43, %v3949_v32  ;;  %v5268_v3 = vld [vmem:[%s5650_s10] ss:$8 sm:$0xf]  ;;  %v5329_v43 = vld [vmem:[%s5650_s10 + $0x45] ss:$8 sm:$0xf] }
 0x59e   : > { %v5216_v63 = vsel %vm801_vm9, %v2242_v15, %v2244_v62  ;;  %3361 = vmatpush1.msra.mxu1 %v2319_v35  ;;  %v5227_v26 = vsel %vm801_vm9, %v2244_v62, %v2246_v58  ;;  %v3138_v35 = vmul.f32 %v3124_v18, %v5050_v40  ;;  %v5773_v40 = vrot.slane %v5244_v7, %v3962_v34 }
 0x59f   : > { %v2276_v37 = vmul.f32 %v2262_v53, %v5216_v63  ;;  %v2277_v44 = vmul.f32 %v2266_v45, %v5227_v26  ;;  %v2182_v53 = vrot.slane %v5268_v3, %v3949_v32 }
 0x5a0   : > { %v3140_v18 = vmul.f32 %v5773_v40, %v5059_v17 }
 0x5a1   : > { %3291 = vmatprep.subr.mxu0 %v2276_v37  ;;  %v2248_v0 = vpop.permute.xlu1 %2247  ;;  %v5279_v37 = vld [vmem:[%s5650_s10 + $0x60] ss:$8 sm:$0xf] }
 0x5a2   : > { %v5231_v61 = vsel %vm801_vm9, %v2246_v58, %v2248_v0  ;;  %v5235_v25 = vsel %vm801_vm9, %v2248_v0, %v2242_v15  ;;  %v5249_v15 = vld [vmem:[%s5650_s10 + $0x61] ss:$8 sm:$0xf]  ;;  %v5292_v0 = vld [vmem:[%s5650_s10 + $0x47] ss:$8 sm:$0xf]  ;;  %vm5807_vm9 = vmmov %vm5803_vm5 }
 0x5a3   : > { %v2275_v2 = vmul.f32 %v2258_v5, %v5235_v25  ;;  %v2278_v24 = vmul.f32 %v2270_v42, %v5231_v61  ;;  %v5777_v40 = vrot.slane %v5249_v15, %v3962_v34 }
 0x5a5   : > { %3292 = vmatpush1.msra.mxu0 %v2275_v2  ;;  %3362 = vmatprep.subr.mxu1 %v2278_v24  ;;  %v2202_v58 = vpop.permute.xlu1 %2201 }
 0x5a6   : > { %v5255_v28 = vsel %vm745_vm8, %v2200_v21, %v2202_v58  ;;  %3363 = vmatpush1.msra.mxu1 %v2277_v44  ;;  %v5283_v5 = vsel %vm745_vm8, %v2202_v58, %v2204_v13  ;;  %v5307_v44 = vld [vmem:[%s5650_s10 + $0x46] ss:$8 sm:$0xf] }
 0x5a7   : > { %v2234_v11 = vmul.f32 %v2220_v10, %v5255_v28  ;;  %v2162_v10 = vpop.permute.xlu0 %2161  ;;  %v2235_v62 = vmul.f32 %v2224_v57, %v5283_v5 }
 0x5a9   : > { %3293 = vmatprep.subr.mxu0 %v2234_v11  ;;  %v2206_v42 = vpop.permute.xlu1 %2205 }
 0x5aa   : > { %v5296_v2 = vsel %vm745_vm8, %v2204_v13, %v2206_v42  ;;  %v5300_v24 = vsel %vm745_vm8, %v2206_v42, %v2200_v21  ;;  %v2178_v13 = vrot.slane %v5268_v3, %v3946_v31  ;;  %v5371_v21 = vld [vmem:[%s5650_s10 + $0x43] ss:$8 sm:$0xf]  ;;  %vm5806_vm8 = vmmov %vm5803_vm5 }
 0x5ab   : > { %v2233_v58 = vmul.f32 %v2216_v33, %v5300_v24  ;;  %v2236_v11 = vmul.f32 %v2228_v14, %v5296_v2  ;;  %v2174_v33 = vrot.slane %v5268_v3, %v3943_v30  ;;  %v2186_v14 = vrot.slane %v5268_v3, %v3962_v34 }
 0x5ac   : > { %v2918_v39 = vrot.slane %v5371_v21, %v3949_v32  ;;  %v2922_v17 = vrot.slane %v5371_v21, %v3962_v34 }
 0x5ad   : > { %3294 = vmatpush1.msra.mxu0 %v2233_v58  ;;  %3364 = vmatprep.subr.mxu1 %v2236_v11  ;;  %v2160_v42 = vpop.permute.xlu1 %2159  ;;  %v5347_v11 = vld [vmem:[%s5650_s10 + $0x44] ss:$8 sm:$0xf] }
 0x5ae   : > { %v5340_v45 = vsel %vm702_vm10, %v5251_v9, %v2160_v42  ;;  %3365 = vmatpush1.msra.mxu1 %v2235_v62  ;;  %v5375_v58 = vsel %vm702_vm10, %v2160_v42, %v2162_v10  ;;  %v5377_v62 = vpop.permute.xlu0 %2833  ;;  %v2948_v42 = vrot.slane %v5347_v11, %v3949_v32 }
 0x5af   : > { %v2192_v57 = vmul.f32 %v2178_v13, %v5340_v45 }
 0x5b1   : > { %3295 = vmatprep.subr.mxu0 %v2192_v57  ;;  %v2164_v3 = vpop.permute.xlu1 %2163 }
 0x5b2   : > { %v5385_v23 = vsel %vm702_vm10, %v2162_v10, %v2164_v3  ;;  %v5390_v20 = vsel %vm702_vm10, %v2164_v3, %v5251_v9  ;;  %v5406_v9 = vld [vmem:[%s5650_s10 + $0x42] ss:$8 sm:$0xf]  ;;  %v2193_v3 = vmul.f32 %v2182_v53, %v5375_v58  ;;  %v5774_v53 = vrot.slane %v5244_v7, %v3949_v32 }
 0x5b3   : > { %v2191_v13 = vmul.f32 %v2174_v33, %v5390_v20  ;;  %v2194_v47 = vmul.f32 %v2186_v14, %v5385_v23  ;;  %v5772_v33 = vrot.slane %v5244_v7, %v3943_v30  ;;  %v2880_v7 = vrot.slane %v5406_v9, %v3943_v30 }
 0x5b4   : > { %v3139_v57 = vmul.f32 %v5774_v53, %v5054_v49  ;;  %v3110_v53 = vmul.f32 %v5777_v40, %v5090_v16  ;;  %v5780_v16 = vrot.slane %v5279_v37, %v3943_v30 }
 0x5b5   : > { %v3137_v14 = vmul.f32 %v5772_v33, %v5037_v4  ;;  %3296 = vmatpush1.msra.mxu0 %v2191_v13  ;;  %3366 = vmatprep.subr.mxu1 %v2194_v47  ;;  %v5419_v10 = vpop.permute.xlu1 %2835  ;;  %v5775_v4 = vrot.slane %v5249_v15, %v3946_v31  ;;  %v5434_v13 = vld [vmem:[%s5650_s10 + $0x41] ss:$8 sm:$0xf]  ;;  %v5776_v47 = vrot.slane %v5249_v15, %v3943_v30 }
 0x5b6   : > { %3307 = vmatprep.subr.mxu0 %v3138_v35  ;;  %3367 = vmatpush1.msra.mxu1 %v2193_v3  ;;  %v5778_v35 = vrot.slane %v5279_v37, %v3946_v31  ;;  %v2850_v40 = vrot.slane %v5434_v13, %v3943_v30 }
 0x5b7   : > { %v3108_v33 = vmul.f32 %v5775_v4, %v5081_v54  ;;  %v3107_v49 = vmul.f32 %v5776_v47, %v5068_v59  ;;  %v2884_v54 = vrot.slane %v5406_v9, %v3946_v31  ;;  %3308 = vmatpush2.msra.mxu0 %v3137_v14  ;;  %3378 = vmatprep.subr.mxu1 %v3140_v18  ;;  %v5452_v4 = vpop.permute.xlu0 %2837 }
 0x5b8   : > { %v3078_v3 = vmul.f32 %v5778_v35, %v5110_v19  ;;  %v2888_v59 = vrot.slane %v5406_v9, %v3949_v32  ;;  %3379 = vmatpush2.msra.mxu1 %v3139_v57  ;;  %v5779_v14 = vrot.slane %v5249_v15, %v3949_v32  ;;  %v3077_v47 = vmul.f32 %v5780_v16, %v5099_v60 }
 0x5b9   : > { %3309 = vmatprep.subr.mxu0 %v3108_v33  ;;  %v2892_v19 = vrot.slane %v5406_v9, %v3962_v34  ;;  %v5468_v35 = vpop.permute.xlu1 %2839  ;;  %v5781_v57 = vrot.slane %v5279_v37, %v3962_v34  ;;  %v2854_v60 = vrot.slane %v5434_v13, %v3946_v31  ;;  %3380 = vmatprep.subr.mxu1 %v3110_v53 }
 0x5ba   : > { %v3109_v18 = vmul.f32 %v5779_v14, %v5085_v22  ;;  %3310 = vmatpush2.msra.mxu0 %v3107_v49  ;;  %v5782_v22 = vrot.slane %v5292_v0, %v3946_v31  ;;  %v5483_v49 = vld [vmem:[%s5650_s10 + $0x40] ss:$8 sm:$0xf]  ;;  %v5783_v14 = vrot.slane %v5279_v37, %v3949_v32  ;;  %v5784_v16 = vrot.slane %v5292_v0, %v3943_v30 }
 0x5bb   : > { %v3080_v15 = vmul.f32 %v5781_v57, %v5121_v8  ;;  %3311 = vmatprep.subr.mxu0 %v3078_v3  ;;  %v2858_v57 = vrot.slane %v5434_v13, %v3949_v32  ;;  %v5785_v53 = vrot.slane %v5292_v0, %v3962_v34  ;;  %v5786_v37 = vrot.slane %v5307_v44, %v3946_v31 }
 0x5bc   : > { %v3048_v33 = vmul.f32 %v5782_v22, %v5141_v6  ;;  %v3079_v8 = vmul.f32 %v5783_v14, %v5116_v56  ;;  %v3047_v6 = vmul.f32 %v5784_v16, %v5130_v29  ;;  %3381 = vmatpush2.msra.mxu1 %v3109_v18  ;;  %3312 = vmatpush2.msra.mxu0 %v3077_v47  ;;  %v2792_v14 = vpop.permute.xlu0 %2791 }
 0x5bd   : > { %v3050_v3 = vmul.f32 %v5785_v53, %v5150_v41  ;;  %v3018_v56 = vmul.f32 %v5786_v37, %v5170_v38  ;;  %v2862_v22 = vrot.slane %v5434_v13, %v3962_v34  ;;  %3382 = vmatprep.subr.mxu1 %v3080_v15  ;;  %v5787_v29 = vrot.slane %v5292_v0, %v3949_v32 }
 0x5be   : > { %3313 = vmatprep.subr.mxu0 %v3048_v33  ;;  %v5788_v47 = vrot.slane %v5307_v44, %v3943_v30  ;;  %3383 = vmatpush2.msra.mxu1 %v3079_v8  ;;  %v2808_v38 = vrot.slane %v5483_v49, %v3943_v30  ;;  %v5789_v15 = vrot.slane %v5307_v44, %v3962_v34  ;;  %v2794_v8 = vpop.permute.xlu1 %2793 }
 0x5bf   : > { %v3049_v18 = vmul.f32 %v5787_v29, %v5145_v1  ;;  %3314 = vmatpush2.msra.mxu0 %v3047_v6  ;;  %v5790_v0 = vrot.slane %v5329_v43, %v3946_v31  ;;  %3384 = vmatprep.subr.mxu1 %v3050_v3  ;;  %v5791_v16 = vrot.slane %v5307_v44, %v3949_v32 }
 0x5c0   : > { %v3017_v41 = vmul.f32 %v5788_v47, %v5159_v55  ;;  %v3020_v33 = vmul.f32 %v5789_v15, %v5179_v36  ;;  %v2812_v55 = vrot.slane %v5483_v49, %v3946_v31  ;;  %3315 = vmatprep.subr.mxu0 %v3018_v56  ;;  %v5792_v36 = vrot.slane %v5329_v43, %v3943_v30 }
 0x5c1   : > { %v2988_v1 = vmul.f32 %v5790_v0, %v5199_v12  ;;  %v3019_v6 = vmul.f32 %v5791_v16, %v5174_v46  ;;  %3385 = vmatpush2.msra.mxu1 %v3049_v18  ;;  %v2816_v12 = vrot.slane %v5483_v49, %v3949_v32  ;;  %v5793_v3 = vrot.slane %v5329_v43, %v3962_v34 }
 0x5c2   : > { %v2987_v53 = vmul.f32 %v5792_v36, %v5188_v48  ;;  %3316 = vmatpush2.msra.mxu0 %v3017_v41  ;;  %v5794_v44 = vrot.slane %v5347_v11, %v3946_v31  ;;  %3386 = vmatprep.subr.mxu1 %v3020_v33  ;;  %v2820_v48 = vrot.slane %v5483_v49, %v3962_v34 }
 0x5c3   : > { %v2990_v37 = vmul.f32 %v5793_v3, %v5208_v51  ;;  %3317 = vmatprep.subr.mxu0 %v2988_v1  ;;  %v5795_v56 = vrot.slane %v5329_v43, %v3949_v32  ;;  %v5796_v18 = vrot.slane %v5347_v11, %v3943_v30  ;;  %3387 = vmatpush2.msra.mxu1 %v3019_v6 }
 0x5c4   : > { %v2958_v46 = vmul.f32 %v5794_v44, %v5227_v26  ;;  %v2959_v26 = vmul.f32 %v2948_v42, %v5231_v61  ;;  %3318 = vmatpush2.msra.mxu0 %v2987_v53  ;;  %v5797_v49 = vrot.slane %v5347_v11, %v3962_v34  ;;  %v2929_v61 = vmul.f32 %v2918_v39, %v5296_v2 }
 0x5c5   : > { %v2989_v29 = vmul.f32 %v5795_v56, %v5203_v52  ;;  %v2957_v51 = vmul.f32 %v5796_v18, %v5216_v63  ;;  %v5798_v52 = vrot.slane %v5371_v21, %v3943_v30  ;;  %v5799_v63 = vrot.slane %v5371_v21, %v3946_v31  ;;  %3388 = vmatprep.subr.mxu1 %v2990_v37  ;;  %v3145_v30 = vld [vmem:[%s5646_s6] sm:$0xff] }
 0x5c6   : > { %v2960_v47 = vmul.f32 %v5797_v49, %v5235_v25  ;;  %3319 = vmatprep.subr.mxu0 %v2958_v46  ;;  %v2930_v25 = vmul.f32 %v2922_v17, %v5300_v24  ;;  %v2897_v11 = vmul.f32 %v2880_v7, %v5340_v45  ;;  %v2898_v39 = vmul.f32 %v2884_v54, %v5375_v58  ;;  %v2798_v24 = vpop.permute.xlu1 %2797 }
 0x5c7   : > { %v2927_v43 = vmul.f32 %v5798_v52, %v5255_v28  ;;  %v2928_v41 = vmul.f32 %v5799_v63, %v5283_v5  ;;  %v2842_v28 = vsel %vm5800_vm2, %v5419_v10, %v5452_v4  ;;  %3389 = vmatpush2.msra.mxu1 %v2989_v29  ;;  %3320 = vmatpush2.msra.mxu0 %v2957_v51  ;;  %v2796_v5 = vpop.permute.xlu0 %2795 }
 0x5c8   : > { %v2843_v2 = vsel %vm5801_vm3, %v5377_v62, %v5419_v10  ;;  %3390 = vmatprep.subr.mxu1 %v2960_v47  ;;  %v2900_v21 = vmul.f32 %v2892_v19, %v5390_v20  ;;  %v2844_v45 = vsel %vm5802_vm4, %v5468_v35, %v5377_v62  ;;  %v2800_v58 = vsel %vm5803_vm5, %v2794_v8, %v2796_v5 }
 0x5c9   : > { %3321 = vmatprep.subr.mxu0 %v2928_v41  ;;  %3391 = vmatpush2.msra.mxu1 %v2959_v26  ;;  %v2868_v42 = vmul.f32 %v2854_v60, %v2842_v28  ;;  %v2841_v34 = vsel %vm5804_vm6, %v5452_v4, %v5468_v35  ;;  %v2801_v20 = vsel %vm5805_vm7, %v2792_v14, %v2794_v8  ;;  %v5808_v35 = vld [vmem:[#allocation13_spill] sm:$0xff] }
 0x5ca   : > { %3322 = vmatpush2.msra.mxu0 %v2927_v43  ;;  %3392 = vmatprep.subr.mxu1 %v2930_v25  ;;  %v2899_v62 = vmul.f32 %v2888_v59, %v5385_v23  ;;  %v2867_v31 = vmul.f32 %v2850_v40, %v2843_v2  ;;  %v2802_v10 = vsel %vm5806_vm8, %v2798_v24, %v2792_v14 }
 0x5cb   : > { %3323 = vmatprep.subr.mxu0 %v2898_v39  ;;  %3393 = vmatpush2.msra.mxu1 %v2929_v61  ;;  %v2870_v17 = vmul.f32 %v2862_v22, %v2844_v45  ;;  %v2826_v7 = vmul.f32 %v2812_v55, %v2800_v58  ;;  %v2799_v54 = vsel %vm5807_vm9, %v2796_v5, %v2798_v24  ;;  %v428_v27 = vpop.permute.xlu0 %427  ;;  %v5810_v55 = vld [vmem:[#allocation14_spill] sm:$0xff] }
 0x5cc   : > { %3324 = vmatpush2.msra.mxu0 %v2897_v11  ;;  %3394 = vmatprep.subr.mxu1 %v2900_v21  ;;  %v2869_v23 = vmul.f32 %v2858_v57, %v2841_v34  ;;  %v2825_v9 = vmul.f32 %v2808_v38, %v2801_v20  ;;  %v2828_v4 = vmul.f32 %v2820_v48, %v2802_v10  ;;  %v5809_v38 = vld [vmem:[#allocation4_spill] sm:$0xff] }
 0x5cd   : > { %3325 = vmatprep.subr.mxu0 %v2868_v42  ;;  %3395 = vmatpush2.msra.mxu1 %v2899_v62  ;;  %v2827_v59 = vmul.f32 %v2816_v12, %v2799_v54  ;;  %v514_v19 = vadd.f32 %v4730_v50, %v428_v27  ;;  %v516_v60 = vadd.f32 %v5808_v35, %v428_v27 }
 0x5ce   : > { %3326 = vmatpush2.msra.mxu0 %v2867_v31  ;;  %3396 = vmatprep.subr.mxu1 %v2870_v17  ;;  %v3259_v32 = vpop.permute.xlu1 %3258  ;;  %v585_v15 = vadd.f32 %v5809_v38, %v428_v27  ;;  %v587_v8 = vadd.f32 %v5810_v55, %v428_v27 }
 0x5cf   : > { %3327 = vmatprep.subr.mxu0 %v2826_v7  ;;  %3397 = vmatpush2.msra.mxu1 %v2869_v23 }
 0x5d0   : > { %3328 = vmatpush2.msra.mxu0 %v2825_v9  ;;  %3398 = vmatprep.subr.mxu1 %v2828_v4 }
 0x5d1   : > { %3330 = vmatmul.mubr.f32.vlgmr.msra.gmra.mxu0 %v3145_v30  ;;  %3399 = vmatpush2.msra.mxu1 %v2827_v59 }
 0x5d2   : > { %3401 = vmatmul.mubr.f32.vlgmr.msra.gmra.mxu1 %v3145_v30 }
 0x691   : > { %v3331_v13 = vpop.f32.mrf.mxu0 }
 0x692   : > { %v3332_v40 = vadd.f32 %v3331_v13, %v3259_v32  ;;  %v3402_v57 = vpop.f32.mrf.mxu1 }
 0x693   : > { %v3333_v22 = vpop.f32.mrf.mxu0  ;;  %v3403_v0 = vadd.f32 %v3402_v57, %v3259_v32 }
 0x694   : > { %v3407_v33 = vadd.f32 %v3332_v40, %v514_v19  ;;  %v3334_v1 = vadd.f32 %v3333_v22, %v3259_v32  ;;  %v3404_v14 = vpop.f32.mrf.mxu1 }
 0x695   : > { %v3409_v16 = vadd.f32 %v3403_v0, %v585_v15  ;;  %v3405_v6 = vadd.f32 %v3404_v14, %v3259_v32 }
 0x696   : > { %3411 = vst [vmem:[%s420_s30] sm:$0xff] %v3407_v33  ;;  %v3408_v50 = vadd.f32 %v3334_v1, %v516_v60 }
 0x697   : > { %3413 = vst [vmem:[%s420_s30 + $0x10] sm:$0xff] %v3409_v16  ;;  %v3410_v36 = vadd.f32 %v3405_v6, %v587_v8 }
 0x698   : > { %3412 = vst [vmem:[%s420_s30 + $0x8] sm:$0xff] %v3408_v50 }
 0x699   : > { %3414 = vst [vmem:[%s420_s30 + $0x18] sm:$0xff] %v3410_v36 }
 0x69a PF: > { %s21_s17 = sadd.s32 1, %s3639_s17  }
 0x69b   : > { %p18_p4 = scmp.ge.s32.totalorder %s21_s17, 4  }
 0x69d   :  { %20 = sbr.rel (!%p18_p4) target bundleno = 1 (0x1), region = 125 }

</bundles_post_ra>
